<compile_context>
chip_gen: v7x
topology: tpu7x:2x2x1
jax: 0.10.0
libtpu: 0.0.40
codegen_flags: <defaults>
</compile_context>

<pallas_src>
import random
from functools import partial

import jax
import jax.numpy as jnp
import numpy as np
from jax.experimental import pallas as pl
from jax.experimental.pallas import tpu as pltpu

M, N, CIN, COUT = 28, 28, 64, 256
MN = M * N             # flattened spatial axis (lanes)
P, KJ = 9, 14          # unfold kernel height, inner feature width
PAD = 4                # unfold padding along the n axis
JP = 16                # j-group padded 14 -> 16 (exactly one bf16 sublane tile)


def _make_kernel(shift):
    def kernel(x_ref, w1t_ref, w0_ref, winmask_ref, ncol_ref, o_ref):
        # x_ref      : (CIN, MN)     f32   x[i, m*28+n]            (native NCHW order)
        # w1t_ref    : (2*JP, CIN)   bf16  row k*16+j = w1[:, k, j] (rows j>=14 zero)
        # w0_ref     : (COUT, P*JP)  bf16  col p*16+j = w0[:, p, j] (cols j>=14 zero)
        # winmask_ref: (P*JP, MN)    bf16  1.0 where 0 <= n + p - 4 < 28
        # ncol_ref   : (1, MN)       i32   n index of each column (col % 28)
        # o_ref      : (COUT, MN)    f32   y[c, m*28+n]             (native NCHW order)

        # ---- stage 1: einsum 'limn,ikj->lmnkj' as one MXU matmul ----------------
        x = x_ref[...].astype(jnp.bfloat16)
        kt = jnp.dot(w1t_ref[...], x, preferred_element_type=jnp.float32)  # (32, 784)
        kt = kt.astype(jnp.bfloat16)          # bf16 glue: halves shift/select traffic
        k0 = kt[:JP, :]                       # (16, 784)  k = 0 bank (tile aligned)
        k1 = kt[JP:, :]                       # (16, 784)  k = 1 bank

        winmask = winmask_ref[...]            # (144, 784) bf16

        # ---- unfold (9,1), padding (4,0): 9 lane shifts + one mask per bank -----
        def windows(bank):
            pieces = [bank if p == PAD else jnp.roll(bank, PAD - p, axis=1)
                      for p in range(P)]
            # 16-row (tile-aligned) sublane concat, then zero the out-of-image taps
            return jnp.concatenate(pieces, axis=0) * winmask        # (144, 784)

        a0 = windows(k0)
        a1 = windows(k1)

        # ---- torch.roll(+-1) over fused (n, k) + sum over k ---------------------
        # == one bank plus the other bank cyclically shifted by +-1 along its
        # *output* n axis (per m-group of 28 lanes).
        nfull = jnp.broadcast_to(ncol_ref[...], (P * JP, MN))
        if shift == 1:
            r = jnp.where(nfull == 0,
                          jnp.roll(a1, -(N - 1), axis=1),   # n == 0  reads n' = 27
                          jnp.roll(a1, 1, axis=1))          # n >= 1  reads n' = n-1
            a = a0 + r
        else:
            r = jnp.where(nfull == N - 1,
                          jnp.roll(a0, N - 1, axis=1),      # n == 27 reads n' = 0
                          jnp.roll(a0, -1, axis=1))         # n <= 26 reads n' = n+1
            a = a1 + r

        # ---- stage 2: einsum 'lmjnk,ijk->limn' as one MXU matmul ----------------
        o_ref[...] = jnp.dot(w0_ref[...], a, preferred_element_type=jnp.float32)

    return kernel


@partial(jax.jit, static_argnames=("shift",))
def forward(x, w0, w1, *, shift):
    """x: (1, CIN, 28, 28) f32 NCHW; w0: (COUT, 9, 14); w1: (CIN, 2, 14)."""
    # Native-layout input: pure reshape, no transpose / relayout.
    x_flat = x.reshape(CIN, MN)

    # Constant index / mask tensors (constant-folded by XLA under jit).
    n_idx = jnp.tile(jnp.arange(N, dtype=jnp.int32), M)               # (784,)  n = col % 28
    p_idx = jnp.repeat(jnp.arange(P, dtype=jnp.int32), JP)            # (144,)  p = row // 16
    src = n_idx[None, :] + p_idx[:, None] - PAD                       # (144, 784)
    winmask = ((src >= 0) & (src < N)).astype(jnp.bfloat16)           # unfold validity mask
    ncol = n_idx.reshape(1, MN)                                       # (1, 784) int32

    # Weight massaging (tiny, one-off).
    # TODO(synk): in a real model these reshaped/padded weights should be folded
    #             into the parameters instead of being rebuilt per call.
    w1t = jnp.pad(jnp.transpose(w1, (1, 2, 0)), ((0, 0), (0, JP - KJ), (0, 0)))
    w1t = w1t.reshape(2 * JP, CIN).astype(jnp.bfloat16)               # (32, 64)
    w0p = jnp.pad(w0, ((0, 0), (0, 0), (0, JP - KJ)))
    w0p = w0p.reshape(COUT, P * JP).astype(jnp.bfloat16)              # (256, 144)

    y = pl.pallas_call(
        _make_kernel(shift),
        out_shape=jax.ShapeDtypeStruct((COUT, MN), jnp.float32),
        in_specs=[
            pl.BlockSpec(memory_space=pltpu.MemorySpace.VMEM),
            pl.BlockSpec(memory_space=pltpu.MemorySpace.VMEM),
            pl.BlockSpec(memory_space=pltpu.MemorySpace.VMEM),
            pl.BlockSpec(memory_space=pltpu.MemorySpace.VMEM),
            pl.BlockSpec(memory_space=pltpu.MemorySpace.VMEM),
        ],
        out_specs=pl.BlockSpec(memory_space=pltpu.MemorySpace.VMEM),
    )(x_flat, w1t, w0p, winmask, ncol)

    # Output is already channel-major: the reshape to NCHW is free (no transpose).
    return y.reshape(1, COUT, M, N)


def reference_np(x, w0, w1, shift):
    """Pure numpy mirror of the torch forward (correctness check)."""
    x = np.asarray(x); w0 = np.asarray(w0); w1 = np.asarray(w1)
    t3 = np.einsum('limn,ikj->lmnkj', x, w1)                          # (1,28,28,2,14)
    t3r = t3.reshape(1, M, N, 2 * KJ)
    padded = np.pad(t3r, ((0, 0), (0, 0), (PAD, PAD), (0, 0)))
    u = np.stack([padded[:, :, p:p + N, :] for p in range(P)], axis=2)  # (1,28,9,28,28)
    t4 = u.reshape(1, M, P, 2 * N, KJ)
    t4 = np.roll(t4, shift, axis=3)
    t4 = t4.reshape(1, M, P, N, 2, KJ).sum(axis=4)
    y = np.einsum('lmjnk,ijk->limn', t4, w0)
    return y


if __name__ == "__main__":
    # The torch module draws its shift direction from Python's global RNG at
    # construction time; mirror that deterministically (seed 0) and pass it in
    # explicitly instead of re-rolling the RNG inside the kernel.
    random.seed(0)
    shift = int((random.random() > 0.5) * 2 - 1)   # -> +1 for seed 0

    key = jax.random.PRNGKey(0)
    kx, kw0, kw1 = jax.random.split(key, 3)
    # Shapes are fixed by the module's hard-coded reshape to (1, 28, 28, 28).
    x = jax.random.normal(kx, (1, CIN, M, N), dtype=jnp.float32)
    w0 = jax.random.normal(kw0, (COUT, P, KJ), dtype=jnp.float32)
    w1 = jax.random.normal(kw1, (CIN, 2, KJ), dtype=jnp.float32)

    y = forward(x, w0, w1, shift=shift)
    y = jax.block_until_ready(y)
    assert y.shape == (1, COUT, M, N)

    ref = reference_np(x, w0, w1, shift)
    y_np = np.asarray(y)
    # bf16 MXU operands + bf16 glue (f32 accumulation): per-element abs error is
    # O(1) on outputs whose std is ~120, so atol is sized for bf16 rounding; the
    # relative Frobenius-norm check keeps the comparison meaningful.
    np.testing.assert_allclose(y_np, ref, rtol=5e-2, atol=6.0)
    rel = np.linalg.norm(y_np - ref) / np.linalg.norm(ref)
    assert rel < 2e-2, f"relative error too high: {rel}"

    print("KERNEL_OK")
</pallas_src>

<mosaic_0001>
module attributes {stable_mosaic.version = 11 : i64} {
  func.func @kernel(%arg0: memref<64x784xf32, #tpu.memory_space<vmem>>, %arg1: memref<32x64xbf16, #tpu.memory_space<vmem>>, %arg2: memref<256x144xbf16, #tpu.memory_space<vmem>>, %arg3: memref<144x784xbf16, #tpu.memory_space<vmem>>, %arg4: memref<1x784xi32, #tpu.memory_space<vmem>>, %arg5: memref<256x784xf32, #tpu.memory_space<vmem>>) attributes {dimension_semantics = [], scalar_prefetch = 0 : i64, scratch_operands = 0 : i64, tpu.core_type = #tpu.core_type<tc>} {
    %c0 = arith.constant 0 : index
    %c0_0 = arith.constant 0 : index
    %0 = vector.load %arg0[%c0, %c0_0] : memref<64x784xf32, #tpu.memory_space<vmem>>, vector<64x784xf32>
    %1 = arith.truncf %0 : vector<64x784xf32> to vector<64x784xbf16>
    %c0_1 = arith.constant 0 : index
    %c0_2 = arith.constant 0 : index
    %2 = vector.load %arg1[%c0_1, %c0_2] : memref<32x64xbf16, #tpu.memory_space<vmem>>, vector<32x64xbf16>
    %cst = arith.constant dense<0.000000e+00> : vector<32x784xf32>
    %3 = tpu.matmul %2, %1, %cst {dimension_numbers = #tpu.dot_dimension_numbers<[1], [0], [0], [1], [0, 0, 1, 1], [], []>} : vector<32x64xbf16>, vector<64x784xbf16>, vector<32x784xf32> -> vector<32x784xf32>
    %4 = arith.truncf %3 : vector<32x784xf32> to vector<32x784xbf16>
    %5 = vector.extract_strided_slice %4 {offsets = [0, 0], sizes = [16, 784], strides = [1, 1]} : vector<32x784xbf16> to vector<16x784xbf16>
    %6 = vector.extract_strided_slice %4 {offsets = [16, 0], sizes = [16, 784], strides = [1, 1]} : vector<32x784xbf16> to vector<16x784xbf16>
    %c0_3 = arith.constant 0 : index
    %c0_4 = arith.constant 0 : index
    %7 = vector.load %arg3[%c0_3, %c0_4] : memref<144x784xbf16, #tpu.memory_space<vmem>>, vector<144x784xbf16>
    %8 = vector.extract_strided_slice %5 {offsets = [0, 780], sizes = [16, 4], strides = [1, 1]} : vector<16x784xbf16> to vector<16x4xbf16>
    %9 = vector.extract_strided_slice %5 {offsets = [0, 0], sizes = [16, 780], strides = [1, 1]} : vector<16x784xbf16> to vector<16x780xbf16>
    %10 = tpu.concatenate %8, %9 in 1 : vector<16x4xbf16>, vector<16x780xbf16> -> vector<16x784xbf16>
    %11 = vector.extract_strided_slice %5 {offsets = [0, 781], sizes = [16, 3], strides = [1, 1]} : vector<16x784xbf16> to vector<16x3xbf16>
    %12 = vector.extract_strided_slice %5 {offsets = [0, 0], sizes = [16, 781], strides = [1, 1]} : vector<16x784xbf16> to vector<16x781xbf16>
    %13 = tpu.concatenate %11, %12 in 1 : vector<16x3xbf16>, vector<16x781xbf16> -> vector<16x784xbf16>
    %14 = vector.extract_strided_slice %5 {offsets = [0, 782], sizes = [16, 2], strides = [1, 1]} : vector<16x784xbf16> to vector<16x2xbf16>
    %15 = vector.extract_strided_slice %5 {offsets = [0, 0], sizes = [16, 782], strides = [1, 1]} : vector<16x784xbf16> to vector<16x782xbf16>
    %16 = tpu.concatenate %14, %15 in 1 : vector<16x2xbf16>, vector<16x782xbf16> -> vector<16x784xbf16>
    %17 = vector.extract_strided_slice %5 {offsets = [0, 783], sizes = [16, 1], strides = [1, 1]} : vector<16x784xbf16> to vector<16x1xbf16>
    %18 = vector.extract_strided_slice %5 {offsets = [0, 0], sizes = [16, 783], strides = [1, 1]} : vector<16x784xbf16> to vector<16x783xbf16>
    %19 = tpu.concatenate %17, %18 in 1 : vector<16x1xbf16>, vector<16x783xbf16> -> vector<16x784xbf16>
    %20 = vector.extract_strided_slice %5 {offsets = [0, 1], sizes = [16, 783], strides = [1, 1]} : vector<16x784xbf16> to vector<16x783xbf16>
    %21 = vector.extract_strided_slice %5 {offsets = [0, 0], sizes = [16, 1], strides = [1, 1]} : vector<16x784xbf16> to vector<16x1xbf16>
    %22 = tpu.concatenate %20, %21 in 1 : vector<16x783xbf16>, vector<16x1xbf16> -> vector<16x784xbf16>
    %23 = vector.extract_strided_slice %5 {offsets = [0, 2], sizes = [16, 782], strides = [1, 1]} : vector<16x784xbf16> to vector<16x782xbf16>
    %24 = vector.extract_strided_slice %5 {offsets = [0, 0], sizes = [16, 2], strides = [1, 1]} : vector<16x784xbf16> to vector<16x2xbf16>
    %25 = tpu.concatenate %23, %24 in 1 : vector<16x782xbf16>, vector<16x2xbf16> -> vector<16x784xbf16>
    %26 = vector.extract_strided_slice %5 {offsets = [0, 3], sizes = [16, 781], strides = [1, 1]} : vector<16x784xbf16> to vector<16x781xbf16>
    %27 = vector.extract_strided_slice %5 {offsets = [0, 0], sizes = [16, 3], strides = [1, 1]} : vector<16x784xbf16> to vector<16x3xbf16>
    %28 = tpu.concatenate %26, %27 in 1 : vector<16x781xbf16>, vector<16x3xbf16> -> vector<16x784xbf16>
    %29 = vector.extract_strided_slice %5 {offsets = [0, 4], sizes = [16, 780], strides = [1, 1]} : vector<16x784xbf16> to vector<16x780xbf16>
    %30 = vector.extract_strided_slice %5 {offsets = [0, 0], sizes = [16, 4], strides = [1, 1]} : vector<16x784xbf16> to vector<16x4xbf16>
    %31 = tpu.concatenate %29, %30 in 1 : vector<16x780xbf16>, vector<16x4xbf16> -> vector<16x784xbf16>
    %32 = tpu.concatenate %10, %13, %16, %19, %5, %22, %25, %28, %31 in 0 : vector<16x784xbf16>, vector<16x784xbf16>, vector<16x784xbf16>, vector<16x784xbf16>, vector<16x784xbf16>, vector<16x784xbf16>, vector<16x784xbf16>, vector<16x784xbf16>, vector<16x784xbf16> -> vector<144x784xbf16>
    %33 = arith.mulf %32, %7 : vector<144x784xbf16>
    %34 = vector.extract_strided_slice %6 {offsets = [0, 780], sizes = [16, 4], strides = [1, 1]} : vector<16x784xbf16> to vector<16x4xbf16>
    %35 = vector.extract_strided_slice %6 {offsets = [0, 0], sizes = [16, 780], strides = [1, 1]} : vector<16x784xbf16> to vector<16x780xbf16>
    %36 = tpu.concatenate %34, %35 in 1 : vector<16x4xbf16>, vector<16x780xbf16> -> vector<16x784xbf16>
    %37 = vector.extract_strided_slice %6 {offsets = [0, 781], sizes = [16, 3], strides = [1, 1]} : vector<16x784xbf16> to vector<16x3xbf16>
    %38 = vector.extract_strided_slice %6 {offsets = [0, 0], sizes = [16, 781], strides = [1, 1]} : vector<16x784xbf16> to vector<16x781xbf16>
    %39 = tpu.concatenate %37, %38 in 1 : vector<16x3xbf16>, vector<16x781xbf16> -> vector<16x784xbf16>
    %40 = vector.extract_strided_slice %6 {offsets = [0, 782], sizes = [16, 2], strides = [1, 1]} : vector<16x784xbf16> to vector<16x2xbf16>
    %41 = vector.extract_strided_slice %6 {offsets = [0, 0], sizes = [16, 782], strides = [1, 1]} : vector<16x784xbf16> to vector<16x782xbf16>
    %42 = tpu.concatenate %40, %41 in 1 : vector<16x2xbf16>, vector<16x782xbf16> -> vector<16x784xbf16>
    %43 = vector.extract_strided_slice %6 {offsets = [0, 783], sizes = [16, 1], strides = [1, 1]} : vector<16x784xbf16> to vector<16x1xbf16>
    %44 = vector.extract_strided_slice %6 {offsets = [0, 0], sizes = [16, 783], strides = [1, 1]} : vector<16x784xbf16> to vector<16x783xbf16>
    %45 = tpu.concatenate %43, %44 in 1 : vector<16x1xbf16>, vector<16x783xbf16> -> vector<16x784xbf16>
    %46 = vector.extract_strided_slice %6 {offsets = [0, 1], sizes = [16, 783], strides = [1, 1]} : vector<16x784xbf16> to vector<16x783xbf16>
    %47 = vector.extract_strided_slice %6 {offsets = [0, 0], sizes = [16, 1], strides = [1, 1]} : vector<16x784xbf16> to vector<16x1xbf16>
    %48 = tpu.concatenate %46, %47 in 1 : vector<16x783xbf16>, vector<16x1xbf16> -> vector<16x784xbf16>
    %49 = vector.extract_strided_slice %6 {offsets = [0, 2], sizes = [16, 782], strides = [1, 1]} : vector<16x784xbf16> to vector<16x782xbf16>
    %50 = vector.extract_strided_slice %6 {offsets = [0, 0], sizes = [16, 2], strides = [1, 1]} : vector<16x784xbf16> to vector<16x2xbf16>
    %51 = tpu.concatenate %49, %50 in 1 : vector<16x782xbf16>, vector<16x2xbf16> -> vector<16x784xbf16>
    %52 = vector.extract_strided_slice %6 {offsets = [0, 3], sizes = [16, 781], strides = [1, 1]} : vector<16x784xbf16> to vector<16x781xbf16>
    %53 = vector.extract_strided_slice %6 {offsets = [0, 0], sizes = [16, 3], strides = [1, 1]} : vector<16x784xbf16> to vector<16x3xbf16>
    %54 = tpu.concatenate %52, %53 in 1 : vector<16x781xbf16>, vector<16x3xbf16> -> vector<16x784xbf16>
    %55 = vector.extract_strided_slice %6 {offsets = [0, 4], sizes = [16, 780], strides = [1, 1]} : vector<16x784xbf16> to vector<16x780xbf16>
    %56 = vector.extract_strided_slice %6 {offsets = [0, 0], sizes = [16, 4], strides = [1, 1]} : vector<16x784xbf16> to vector<16x4xbf16>
    %57 = tpu.concatenate %55, %56 in 1 : vector<16x780xbf16>, vector<16x4xbf16> -> vector<16x784xbf16>
    %58 = tpu.concatenate %36, %39, %42, %45, %6, %48, %51, %54, %57 in 0 : vector<16x784xbf16>, vector<16x784xbf16>, vector<16x784xbf16>, vector<16x784xbf16>, vector<16x784xbf16>, vector<16x784xbf16>, vector<16x784xbf16>, vector<16x784xbf16>, vector<16x784xbf16> -> vector<144x784xbf16>
    %59 = arith.mulf %58, %7 : vector<144x784xbf16>
    %c0_5 = arith.constant 0 : index
    %c0_6 = arith.constant 0 : index
    %60 = vector.load %arg4[%c0_5, %c0_6] : memref<1x784xi32, #tpu.memory_space<vmem>>, vector<1x784xi32>
    %61 = vector.shape_cast %60 : vector<1x784xi32> to vector<1x784xi32>
    %62 = vector.broadcast %61 : vector<1x784xi32> to vector<144x784xi32>
    %c0_i32 = arith.constant 0 : i32
    %63 = vector.broadcast %c0_i32 : i32 to vector<144x784xi32>
    %64 = arith.cmpi eq, %62, %63 : vector<144x784xi32>
    %65 = vector.extract_strided_slice %59 {offsets = [0, 27], sizes = [144, 757], strides = [1, 1]} : vector<144x784xbf16> to vector<144x757xbf16>
    %66 = vector.extract_strided_slice %59 {offsets = [0, 0], sizes = [144, 27], strides = [1, 1]} : vector<144x784xbf16> to vector<144x27xbf16>
    %67 = tpu.concatenate %65, %66 in 1 : vector<144x757xbf16>, vector<144x27xbf16> -> vector<144x784xbf16>
    %68 = vector.extract_strided_slice %59 {offsets = [0, 783], sizes = [144, 1], strides = [1, 1]} : vector<144x784xbf16> to vector<144x1xbf16>
    %69 = vector.extract_strided_slice %59 {offsets = [0, 0], sizes = [144, 783], strides = [1, 1]} : vector<144x784xbf16> to vector<144x783xbf16>
    %70 = tpu.concatenate %68, %69 in 1 : vector<144x1xbf16>, vector<144x783xbf16> -> vector<144x784xbf16>
    %71 = arith.select %64, %67, %70 : vector<144x784xi1>, vector<144x784xbf16>
    %72 = arith.addf %33, %71 : vector<144x784xbf16>
    %c0_7 = arith.constant 0 : index
    %c0_8 = arith.constant 0 : index
    %73 = vector.load %arg2[%c0_7, %c0_8] : memref<256x144xbf16, #tpu.memory_space<vmem>>, vector<256x144xbf16>
    %cst_9 = arith.constant dense<0.000000e+00> : vector<256x784xf32>
    %74 = tpu.matmul %73, %72, %cst_9 {dimension_numbers = #tpu.dot_dimension_numbers<[1], [0], [0], [1], [0, 0, 1, 1], [], []>} : vector<256x144xbf16>, vector<144x784xbf16>, vector<256x784xf32> -> vector<256x784xf32>
    %c0_10 = arith.constant 0 : index
    %c0_11 = arith.constant 0 : index
    %75 = vector.load %arg5[%c0_10, %c0_11] : memref<256x784xf32, #tpu.memory_space<vmem>>, vector<256x784xf32>
    tpu.vector_store %arg5[%c0_10, %c0_11], %74 {strides = array<i32>} : memref<256x784xf32, #tpu.memory_space<vmem>>, vector<256x784xf32>,
    return
  }
}

</mosaic_0001>

<bundles_post_ra>
// kernel: tile.10
= control target key start
LH: loop header
LB: loop body
LE: loop exit
PB: predicated region body
PF: predicated region fallthrough
CT: control target
= control target key end

     0   :  { %vm9_vm0 = vcmask 31744   ;;  %vm37_vm1 = vcmask 97280   ;;  %s344_s14 = smov 124   ;;  %vm23_vm2 = vcmask 64512   ;;  %s345_s19 = smov 116   ;;  %vm41_vm3 = vcmask 130048   ;;  %s516_s0 = inlined_call_operand.vmem [shape: s32[28,28], index: 0, kind: input, shape index: {}]   ;;  %s517_s1 = inlined_call_operand.vmem [shape: s32[1,784], index: 1, kind: output, shape index: {}]  }
   0x1   :  { %v278_v0 = vld [vmem:[%s516_s0 + $0x9] sm:$0x1]   ;;  %v282_v3 = vld [vmem:[%s516_s0 + $0x1b] sm:$0x1]   ;;  %v280_v6 = vld [vmem:[%s516_s0 + $0x12] sm:$0x1]  }
   0x2   :  { %v279_v1 = vld [vmem:[%s516_s0 + $0x9] sm:$0x1]   ;;  %v283_v4 = vld [vmem:[%s516_s0 + $0x1b] sm:$0x1]   ;;  %v281_v7 = vld [vmem:[%s516_s0 + $0x12] sm:$0x1]  }
   0x3   :  { %v10_v2 = vsel %vm9_vm0, %v279_v1, %v278_v0  ;;  %v38_v5 = vsel %vm37_vm1, %v283_v4, %v282_v3  ;;  %v24_v8 = vsel %vm23_vm2, %v281_v7, %v280_v6  ;;  %v284_v9 = vld [vmem:[%s516_s0 + $0x4] sm:$0x1]   ;;  %vm27_vm4 = vcmask 162816   ;;  %v286_v12 = vld [vmem:[%s516_s0 + $0xd] sm:$0x1]   ;;  %s346_s3 = smov 120  }
   0x4   :  { %11 = vrot.lane.b32.xlu0 %v10_v2, %s344_s14  ;;  %39 = vrot.lane.b32.xlu1 %v38_v5, %s345_s19  ;;  %v285_v10 = vld [vmem:[%s516_s0 + $0x4] sm:$0x1]   ;;  %v287_v13 = vld [vmem:[%s516_s0 + $0xd] sm:$0x1]   ;;  %vm13_vm5 = vcmask 195584   ;;  %s347_s4 = smov 112  }
   0x5   :  { %v52_v11 = vsel %vm41_vm3, %v285_v10, %v284_v9  ;;  %v288_v14 = vld [vmem:[%s516_s0 + $0x16] sm:$0x1]   ;;  %v65_v16 = vsel %vm27_vm4, %v287_v13, %v286_v12  ;;  %s348_s5 = smov 108   ;;  %s349_s6 = smov 104   ;;  %v290_v18 = vld [vmem:[%s516_s0 + $0x8] sm:$0x1]  }
   0x6   :  { %v289_v15 = vld [vmem:[%s516_s0 + $0x16] sm:$0x1]   ;;  %v291_v19 = vld [vmem:[%s516_s0 + $0x11] sm:$0x1]   ;;  %s350_s11 = smov 96   ;;  %s351_s12 = smov 92  }
   0x7   :  { %v79_v17 = vsel %vm13_vm5, %v289_v15, %v288_v14  ;;  %v292_v20 = vld [vmem:[%s516_s0 + $0x1a] sm:$0x1]   ;;  %v293_v21 = vld [vmem:[%s516_s0 + $0x3] sm:$0x1]   ;;  %v2_v22 = vld [vmem:[%s516_s0] sm:$0x1]  }
   0x8   :  { %25 = vrot.lane.b32.xlu0 %v24_v8, %s346_s3  ;;  %53 = vrot.lane.b32.xlu1 %v52_v11, %s347_s4  ;;  %vm3_vm6 = vcmask 228352   ;;  %s352_s19 = smov 88   ;;  %s353_s20 = smov 84   ;;  %v294_v23 = vld [vmem:[%s516_s0 + $0xc] sm:$0x1]   ;;  %vm16_vm7 = vcmask 1048544  }
   0x9   :  { %4 = vst.msk [vmem:[#allocation0] sm:$0x1] %vm3_vm6, %v2_v22   ;;  %v295_v24 = vld [vmem:[%s516_s0 + $0x15] sm:$0x1]   ;;  %s354_s25 = smov 80   ;;  %s355_s26 = smov 76  }
   0xa   :  { %v296_v25 = vld [vmem:[%s516_s0 + $0x7] sm:$0x1]   ;;  %v297_v26 = vld [vmem:[%s516_s0 + $0x10] sm:$0x1]   ;;  %s356_s2 = smov 68   ;;  %s357_s3 = smov 64  }
   0xb   :  { %v298_v27 = vld [vmem:[%s516_s0 + $0x19] sm:$0x1]   ;;  %v299_v28 = vld [vmem:[%s516_s0 + $0x2] sm:$0x1]   ;;  %s358_s8 = smov 60   ;;  %s359_s9 = smov 56  }
   0xc   :  { %66 = vrot.lane.b32.xlu0 %v65_v16, %s348_s5  ;;  %80 = vrot.lane.b32.xlu1 %v79_v17, %s349_s6  ;;  %v300_v29 = vld [vmem:[%s516_s0 + $0xb] sm:$0x1]   ;;  %v301_v30 = vld [vmem:[%s516_s0 + $0x14] sm:$0x1]   ;;  %s360_s14 = smov 52   ;;  %s361_s15 = smov 48  }
   0xd   :  { %v302_v31 = vld [vmem:[%s516_s0 + $0x6] sm:$0x1]   ;;  %v303_v32 = vld [vmem:[%s516_s0 + $0xf] sm:$0x1]   ;;  %s363_s21 = smov 36   ;;  %s365_s27 = smov 28  }
   0xe   :  { %v304_v33 = vld [vmem:[%s516_s0 + $0x18] sm:$0x1]   ;;  %v305_v34 = vld [vmem:[%s516_s0 + $0x1] sm:$0x1]   ;;  %v306_v35 = vld [vmem:[%s516_s0 + $0xa] sm:$0x1]  }
   0xf   :  { %v307_v36 = vld [vmem:[%s516_s0 + $0x13] sm:$0x1]   ;;  %s367_s4 = smov 20   ;;  %v308_v37 = vld [vmem:[%s516_s0 + $0x5] sm:$0x1]   ;;  %s369_s10 = smov 8  }
  0x10   :  { %90 = vrot.lane.b32.xlu0 %v290_v18, %s350_s11  ;;  %97 = vrot.lane.b32.xlu1 %v291_v19, %s351_s12  ;;  %v309_v38 = vld [vmem:[%s516_s0 + $0xe] sm:$0x1]   ;;  %v310_v39 = vld [vmem:[%s516_s0 + $0x17] sm:$0x1]   ;;  %s370_s0 = smov 4   ;;  %vm44_vm8 = vcmask 1048480  }
  0x11   :  { %vm30_vm9 = vcmask 1048512   ;;  %vm58_vm10 = vcmask 1048448   ;;  %vm71_vm11 = vcmask 1048416   ;;  %vm85_vm12 = vcmask 1048384  }
  0x12   :  { %vm92_vm13 = vcmask 1015552   ;;  %vm99_vm14 = vcmask 982752   ;;  %vm106_vm15 = vcmask 949952   ;;  %vm154_vm6 = vcmask 687552  }
  0x14   :  { %104 = vrot.lane.b32.xlu0 %v292_v20, %s352_s19  ;;  %111 = vrot.lane.b32.xlu1 %v293_v21, %s353_s20  ;;  %s362_s20 = smov 40  }
  0x18   :  { %117 = vrot.lane.b32.xlu0 %v294_v23, %s354_s25  ;;  %124 = vrot.lane.b32.xlu1 %v295_v24, %s355_s26  ;;  %s364_s26 = smov 32  }
  0x1c   :  { %131 = vrot.lane.b32.xlu0 %v296_v25, %s356_s2  ;;  %138 = vrot.lane.b32.xlu1 %v297_v26, %s357_s3  ;;  %s366_s3 = smov 24  }
  0x20   :  { %145 = vrot.lane.b32.xlu0 %v298_v27, %s358_s8  ;;  %152 = vrot.lane.b32.xlu1 %v299_v28, %s359_s9  ;;  %s368_s9 = smov 12  }
  0x24   :  { %158 = vrot.lane.b32.xlu0 %v300_v29, %s360_s14  ;;  %165 = vrot.lane.b32.xlu1 %v301_v30, %s361_s15 }
  0x28   :  { %172 = vrot.lane.b32.xlu0 %v302_v31, %s362_s20  ;;  %179 = vrot.lane.b32.xlu1 %v303_v32, %s363_s21 }
  0x2c   :  { %186 = vrot.lane.b32.xlu0 %v304_v33, %s364_s26  ;;  %193 = vrot.lane.b32.xlu1 %v305_v34, %s365_s27 }
  0x30   :  { %199 = vrot.lane.b32.xlu0 %v306_v35, %s366_s3  ;;  %206 = vrot.lane.b32.xlu1 %v307_v36, %s367_s4 }
  0x34   :  { %213 = vrot.lane.b32.xlu0 %v308_v37, %s368_s9  ;;  %220 = vrot.lane.b32.xlu1 %v309_v38, %s369_s10 }
  0x38   :  { %227 = vrot.lane.b32.xlu0 %v310_v39, %s370_s0 }
  0x76   :  { %v12_v40 = vpop.permute.xlu0 %11   ;;  %v40_v41 = vpop.permute.xlu1 %39  }
  0x77   :  { %15 = vst.msk [vmem:[#allocation0 + $0x10] sm:$0x1] %vm13_vm5, %v12_v40   ;;  %vm147_vm5 = vcmask 720352  }
  0x78   :  { %18 = vst.msk [vmem:[#allocation0 + $0x8] sm:$0x1] %vm16_vm7, %v12_v40   ;;  %vm160_vm7 = vcmask 654752  }
  0x79   :  { %43 = vst.msk [vmem:[#allocation0 + $0x30] sm:$0x1] %vm41_vm3, %v40_v41   ;;  %vm133_vm3 = vcmask 785952  }
  0x7a   :  { %46 = vst.msk [vmem:[#allocation0 + $0x28] sm:$0x1] %vm44_vm8, %v40_v41   ;;  %v26_v42 = vpop.permute.xlu0 %25   ;;  %v54_v43 = vpop.permute.xlu1 %53   ;;  %vm167_vm8 = vcmask 621952  }
  0x7b   :  { %29 = vst.msk [vmem:[#allocation0 + $0x20] sm:$0x1] %vm27_vm4, %v26_v42   ;;  %vm140_vm4 = vcmask 753152  }
  0x7c   :  { %32 = vst.msk [vmem:[#allocation0 + $0x18] sm:$0x1] %vm30_vm9, %v26_v42   ;;  %vm174_vm9 = vcmask 556352  }
  0x7d   :  { %57 = vst.msk [vmem:[#allocation0 + $0x8] sm:$0x1] %vm37_vm1, %v54_v43   ;;  %vm119_vm1 = vcmask 884352  }
  0x7e   :  { %59 = vst.msk [vmem:[#allocation0] sm:$0x1] %vm58_vm10, %v54_v43   ;;  %v67_v44 = vpop.permute.xlu0 %66   ;;  %v81_v46 = vpop.permute.xlu1 %80   ;;  %vm181_vm10 = vcmask 523552  }
  0x7f   :  { %70 = vst.msk [vmem:[#allocation0 + $0x18] sm:$0x1] %vm23_vm2, %v67_v44   ;;  %vm126_vm2 = vcmask 851552  }
  0x80   :  { %v268_v45 = vld [vmem:[#allocation0 + $0x30] sm:$0x1]  ;;  %73 = vst.msk [vmem:[#allocation0 + $0x10] sm:$0x1] %vm71_vm11, %v67_v44   ;;  %vm188_vm11 = vcmask 490752  }
  0x81   :  { %316 = vst [vmem:[%s517_s1 + $0x6] sm:$0x1] %v268_v45  ;;  %84 = vst.msk [vmem:[#allocation0 + $0x28] sm:$0x1] %vm9_vm0, %v81_v46   ;;  %vm113_vm0 = vcmask 917152  }
  0x82   :  { %87 = vst.msk [vmem:[#allocation0 + $0x20] sm:$0x1] %vm85_vm12, %v81_v46   ;;  %v91_v47 = vpop.permute.xlu0 %90   ;;  %v98_v48 = vpop.permute.xlu1 %97   ;;  %vm195_vm12 = vcmask 457952  }
  0x83   :  { %94 = vst.msk [vmem:[#allocation0 + $0x8] sm:$0x1] %vm92_vm13, %v91_v47   ;;  %vm201_vm13 = vcmask 425152  }
  0x84   :  { %101 = vst.msk [vmem:[#allocation0 + $0x18] sm:$0x1] %vm99_vm14, %v98_v48   ;;  %vm208_vm14 = vcmask 392352  }
  0x86   :  { %v105_v49 = vpop.permute.xlu0 %104   ;;  %v112_v50 = vpop.permute.xlu1 %111  }
  0x87   :  { %108 = vst.msk [vmem:[#allocation0 + $0x28] sm:$0x1] %vm106_vm15, %v105_v49   ;;  %vm215_vm15 = vcmask 326752  }
  0x88   :  { %114 = vst.msk [vmem:[#allocation0] sm:$0x1] %vm113_vm0, %v112_v50   ;;  %vm222_vm0 = vcmask 293952  }
  0x8a   :  { %v118_v51 = vpop.permute.xlu0 %117   ;;  %v125_v52 = vpop.permute.xlu1 %124  }
  0x8b   :  { %121 = vst.msk [vmem:[#allocation0 + $0x10] sm:$0x1] %vm119_vm1, %v118_v51   ;;  %vm229_vm1 = vcmask 261152  }
  0x8c   :  { %128 = vst.msk [vmem:[#allocation0 + $0x20] sm:$0x1] %vm126_vm2, %v125_v52  }
  0x8e   :  { %v132_v53 = vpop.permute.xlu0 %131   ;;  %v139_v54 = vpop.permute.xlu1 %138  }
  0x8f   :  { %135 = vst.msk [vmem:[#allocation0 + $0x8] sm:$0x1] %vm133_vm3, %v132_v53  }
  0x90   :  { %142 = vst.msk [vmem:[#allocation0 + $0x18] sm:$0x1] %vm140_vm4, %v139_v54  }
  0x92   :  { %v146_v55 = vpop.permute.xlu0 %145   ;;  %v153_v56 = vpop.permute.xlu1 %152  }
  0x93   :  { %149 = vst.msk [vmem:[#allocation0 + $0x28] sm:$0x1] %vm147_vm5, %v146_v55  }
  0x94   :  { %155 = vst.msk [vmem:[#allocation0] sm:$0x1] %vm154_vm6, %v153_v56  }
  0x96   :  { %v159_v57 = vpop.permute.xlu0 %158   ;;  %v166_v58 = vpop.permute.xlu1 %165  }
  0x97   :  { %162 = vst.msk [vmem:[#allocation0 + $0x10] sm:$0x1] %vm160_vm7, %v159_v57  }
  0x98   :  { %169 = vst.msk [vmem:[#allocation0 + $0x20] sm:$0x1] %vm167_vm8, %v166_v58  }
  0x9a   :  { %v173_v59 = vpop.permute.xlu0 %172   ;;  %v180_v60 = vpop.permute.xlu1 %179  }
  0x9b   :  { %176 = vst.msk [vmem:[#allocation0 + $0x8] sm:$0x1] %vm174_vm9, %v173_v59  }
  0x9c   :  { %183 = vst.msk [vmem:[#allocation0 + $0x18] sm:$0x1] %vm181_vm10, %v180_v60  }
  0x9e   :  { %v187_v61 = vpop.permute.xlu0 %186   ;;  %v194_v62 = vpop.permute.xlu1 %193  }
  0x9f   :  { %190 = vst.msk [vmem:[#allocation0 + $0x28] sm:$0x1] %vm188_vm11, %v187_v61  }
  0xa0   :  { %196 = vst.msk [vmem:[#allocation0] sm:$0x1] %vm195_vm12, %v194_v62  }
  0xa2   :  { %v200_v63 = vpop.permute.xlu0 %199   ;;  %v207_v0 = vpop.permute.xlu1 %206  }
  0xa3   :  { %203 = vst.msk [vmem:[#allocation0 + $0x10] sm:$0x1] %vm201_vm13, %v200_v63  }
  0xa4   :  { %210 = vst.msk [vmem:[#allocation0 + $0x20] sm:$0x1] %vm208_vm14, %v207_v0  }
  0xa6   :  { %v214_v1 = vpop.permute.xlu0 %213   ;;  %v221_v3 = vpop.permute.xlu1 %220  }
  0xa7   :  { %v235_v2 = vld [vmem:[#allocation0] sm:$0x1]  ;;  %217 = vst.msk [vmem:[#allocation0 + $0x8] sm:$0x1] %vm215_vm15, %v214_v1  }
  0xa8   :  { %237 = vst [vmem:[%s517_s1] sm:$0x1] %v235_v2  ;;  %224 = vst.msk [vmem:[#allocation0 + $0x18] sm:$0x1] %vm222_vm0, %v221_v3  }
  0xaa   :  { %v244_v4 = vld [vmem:[#allocation0 + $0x10] sm:$0x1]  ;;  %v228_v5 = vpop.permute.xlu0 %227  }
  0xab   :  { %312 = vst [vmem:[%s517_s1 + $0x2] sm:$0x1] %v244_v4  ;;  %v256_v6 = vld [vmem:[#allocation0 + $0x20] sm:$0x1]  ;;  %231 = vst.msk [vmem:[#allocation0 + $0x28] sm:$0x1] %vm229_vm1, %v228_v5  }
  0xac   :  { %314 = vst [vmem:[%s517_s1 + $0x4] sm:$0x1] %v256_v6 }
  0xae   :  { %v239_v7 = vld [vmem:[#allocation0 + $0x8] sm:$0x1] }
  0xaf   :  { %311 = vst [vmem:[%s517_s1 + $0x1] sm:$0x1] %v239_v7  ;;  %v250_v8 = vld [vmem:[#allocation0 + $0x18] sm:$0x1] }
  0xb0   :  { %313 = vst [vmem:[%s517_s1 + $0x3] sm:$0x1] %v250_v8 }
  0xb2   :  { %v262_v9 = vld [vmem:[#allocation0 + $0x28] sm:$0x1] }
  0xb3   :  { %315 = vst [vmem:[%s517_s1 + $0x5] sm:$0x1] %v262_v9 }

// kernel: forward.1
= control target key start
LH: loop header
LB: loop body
LE: loop exit
PB: predicated region body
PF: predicated region fallthrough
CT: control target
= control target key end

     0   :  { %v7445_v3 = vmov 0   ;;  %vm121_vm0 = vcmask 523264   ;;  %s3830_s13 = smov 4   ;;  %s3831_s14 = smov 3   ;;  %vm445_vm1 = vcmask 31744   ;;  %vm479_vm2 = vcmask 23552   ;;  %s7439_s0 = inlined_call_operand.vmem [shape: f32[64,784], index: 0, kind: input, shape index: {}]   ;;  %s7440_s1 = inlined_call_operand.vmem [shape: bf16[32,64], index: 1, kind: input, shape index: {}]   ;;  %s7441_s3 = inlined_call_operand.vmem [shape: bf16[144,784], index: 3, kind: input, shape index: {}]   ;;  %s7442_s2 = inlined_call_operand.vmem [shape: bf16[256,144], index: 2, kind: input, shape index: {}]   ;;  %s7443_s4 = inlined_call_operand.vmem [shape: s32[1,784], index: 4, kind: input, shape index: {}]   ;;  %s7444_s5 = inlined_call_operand.vmem [shape: f32[256,784], index: 5, kind: output, shape index: {}]  }
   0x1   :  { %v24_v0 = vld [vmem:[%s7439_s0 + $0x8] sm:$0xff]  ;;  %v31_v1 = vld [vmem:[%s7439_s0 + $0x40] sm:$0xff]  ;;  %v26_v2 = vld [vmem:[%s7439_s0 + $0x18] sm:$0xff]  ;;  %160 = vmatprep.mubr.bf16.mxu0 %v7445_v3  ;;  %213 = vmatprep.mubr.bf16.mxu1 %v7445_v3  ;;  %s3832_s15 = smov 2   ;;  %s3833_s16 = smov 1   ;;  %vm513_vm3 = vcmask 15360  }
   0x2   :  { %v80_v4 = vpack.c.bf16 %v31_v1, %v24_v0  ;;  %v33_v5 = vld [vmem:[%s7439_s0 + $0x50] sm:$0xff]  ;;  %v23_v6 = vld [vmem:[%s7439_s0] sm:$0xff]  ;;  %v30_v7 = vld [vmem:[%s7439_s0 + $0x38] sm:$0xff]  ;;  %s3834_s17 = smov 127   ;;  %s3835_s18 = smov 126   ;;  %vm547_vm4 = vcmask 7168  }
   0x3   :  { %v82_v8 = vpack.c.bf16 %v33_v5, %v26_v2  ;;  %v79_v9 = vpack.c.bf16 %v30_v7, %v23_v6  ;;  %v25_v10 = vld [vmem:[%s7439_s0 + $0x10] sm:$0xff]  ;;  %v32_v11 = vld [vmem:[%s7439_s0 + $0x48] sm:$0xff]  ;;  %v38_v12 = vld [vmem:[%s7439_s0 + $0x78] sm:$0xff]  ;;  %s3836_s19 = smov 125   ;;  %s3837_s20 = smov 124   ;;  %vm579_vm5 = vcmask 1039360  }
   0x4   :  { %128 = vmatprep.subr.bf16.mxu0 %v80_v4  ;;  %v81_v13 = vpack.c.bf16 %v32_v11, %v25_v10  ;;  %v45_v14 = vld [vmem:[%s7439_s0 + $0xb0] sm:$0xff]  ;;  %v40_v15 = vld [vmem:[%s7439_s0 + $0x88] sm:$0xff]  ;;  %v47_v16 = vld [vmem:[%s7439_s0 + $0xc0] sm:$0xff]  ;;  %s3838_s21 = smov 15   ;;  %s3839_s22 = smov 14   ;;  %vm7606_vm6 = vcmask 1031168  }
   0x5   :  { %181 = vmatprep.subr.bf16.mxu1 %v82_v8  ;;  %129 = vmatpush1.bf16.msra.mxu0 %v79_v9  ;;  %v87_v17 = vpack.c.bf16 %v45_v14, %v38_v12  ;;  %v89_v18 = vpack.c.bf16 %v47_v16, %v40_v15  ;;  %v37_v19 = vld [vmem:[%s7439_s0 + $0x70] sm:$0xff]  ;;  %v44_v20 = vld [vmem:[%s7439_s0 + $0xa8] sm:$0xff]  ;;  %v39_v21 = vld [vmem:[%s7439_s0 + $0x80] sm:$0xff]  ;;  %s3840_s23 = smov 13   ;;  %s3841_s24 = smov 12   ;;  %vm647_vm7 = vcmask 1022976  }
   0x6   :  { %182 = vmatpush1.bf16.msra.mxu1 %v81_v13  ;;  %v86_v22 = vpack.c.bf16 %v44_v20, %v37_v19  ;;  %v46_v23 = vld [vmem:[%s7439_s0 + $0xb8] sm:$0xff]  ;;  %v52_v24 = vld [vmem:[%s7439_s0 + $0xe8] sm:$0xff]  ;;  %v59_v25 = vld [vmem:[%s7439_s0 + $0x120] sm:$0xff]  ;;  %s3842_s26 = smov 101   ;;  %s3843_s27 = smov 116   ;;  %vm681_vm8 = vcmask 1014784  }
   0x7   :  { %130 = vmatprep.subr.bf16.mxu0 %v87_v17  ;;  %183 = vmatprep.subr.bf16.mxu1 %v89_v18  ;;  %v88_v26 = vpack.c.bf16 %v46_v23, %v39_v21  ;;  %v94_v27 = vpack.c.bf16 %v59_v25, %v52_v24  ;;  %v54_v28 = vld [vmem:[%s7439_s0 + $0xf8] sm:$0xff]  ;;  %v61_v29 = vld [vmem:[%s7439_s0 + $0x130] sm:$0xff]  ;;  %v51_v30 = vld [vmem:[%s7439_s0 + $0xe0] sm:$0xff]  ;;  %s3844_s28 = smov 115   ;;  %s3845_s29 = smov 114   ;;  %vm594_vm9 = vcmask 121856  }
   0x8   :  { %v96_v31 = vpack.c.bf16 %v61_v29, %v54_v28  ;;  %v58_v32 = vld [vmem:[%s7439_s0 + $0x118] sm:$0xff]  ;;  %v53_v33 = vld [vmem:[%s7439_s0 + $0xf0] sm:$0xff]  ;;  %v60_v34 = vld [vmem:[%s7439_s0 + $0x128] sm:$0xff]  ;;  %s3846_s30 = smov 113   ;;  %vm7571_vm10 = vcmask 105472   ;;  %vm7605_vm11 = vcmask 113664  }
   0x9   :  { %131 = vmatpush1.bf16.msra.mxu0 %v86_v22  ;;  %v93_v35 = vpack.c.bf16 %v58_v32, %v51_v30  ;;  %v66_v36 = vld [vmem:[%s7439_s0 + $0x158] sm:$0xff]  ;;  %v73_v37 = vld [vmem:[%s7439_s0 + $0x190] sm:$0xff]  ;;  %v68_v38 = vld [vmem:[%s7439_s0 + $0x168] sm:$0xff]  ;;  %v95_v39 = vpack.c.bf16 %v60_v34, %v53_v33  ;;  %vm7570_vm12 = vcmask 97280   ;;  %vm2436_vm13 = vcmask 130048  }
   0xa   :  { %184 = vmatpush1.bf16.msra.mxu1 %v88_v26  ;;  %132 = vmatprep.subr.bf16.mxu0 %v94_v27  ;;  %v101_v40 = vpack.c.bf16 %v73_v37, %v66_v36  ;;  %v75_v41 = vld [vmem:[%s7439_s0 + $0x1a0] sm:$0xff]  ;;  %v65_v42 = vld [vmem:[%s7439_s0 + $0x150] sm:$0xff]  ;;  %v72_v43 = vld [vmem:[%s7439_s0 + $0x188] sm:$0xff] }
   0xb   :  { %185 = vmatprep.subr.bf16.mxu1 %v96_v31  ;;  %v103_v44 = vpack.c.bf16 %v75_v41, %v68_v38  ;;  %v67_v45 = vld [vmem:[%s7439_s0 + $0x160] sm:$0xff]  ;;  %v74_v46 = vld [vmem:[%s7439_s0 + $0x198] sm:$0xff]  ;;  %v100_v47 = vpack.c.bf16 %v72_v43, %v65_v42  ;;  %v29_v48 = vld [vmem:[%s7439_s0 + $0x30] sm:$0xff] }
   0xc   :  { %v102_v49 = vpack.c.bf16 %v74_v46, %v67_v45  ;;  %v36_v50 = vld [vmem:[%s7439_s0 + $0x68] sm:$0xff]  ;;  %v3985_v51 = vld [vmem:[%s7440_s1] sm:$0xff]   ;;  %v50_v54 = vld [vmem:[%s7439_s0 + $0xd8] sm:$0xff] }
   0xd   :  { %133 = vmatpush1.bf16.msra.mxu0 %v93_v35  ;;  %v85_v52 = vpack.c.bf16 %v36_v50, %v29_v48  ;;  %v43_v53 = vld [vmem:[%s7439_s0 + $0xa0] sm:$0xff]  ;;  %v28_v55 = vld [vmem:[%s7439_s0 + $0x28] sm:$0xff]  ;;  %v34_v59 = vld [vmem:[%s7439_s0 + $0x58] sm:$0xff] }
   0xe   :  { %186 = vmatpush1.bf16.msra.mxu1 %v95_v39  ;;  %134 = vmatprep.subr.bf16.mxu0 %v101_v40  ;;  %v35_v56 = vld [vmem:[%s7439_s0 + $0x60] sm:$0xff]  ;;  %v42_v60 = vld [vmem:[%s7439_s0 + $0x98] sm:$0xff]  ;;  %v49_v61 = vld [vmem:[%s7439_s0 + $0xd0] sm:$0xff]  ;;  %v92_v62 = vpack.c.bf16 %v50_v54, %v43_v53 }
   0xf   :  { %187 = vmatprep.subr.bf16.mxu1 %v103_v44  ;;  %v84_v57 = vpack.c.bf16 %v35_v56, %v28_v55  ;;  %v27_v58 = vld [vmem:[%s7439_s0 + $0x20] sm:$0xff]  ;;  %v57_v63 = vld [vmem:[%s7439_s0 + $0x110] sm:$0xff]  ;;  %v64_v1 = vld [vmem:[%s7439_s0 + $0x148] sm:$0xff]  ;;  %v91_v2 = vpack.c.bf16 %v49_v61, %v42_v60 }
  0x10   :  { %v83_v0 = vpack.c.bf16 %v34_v59, %v27_v58  ;;  %v41_v4 = vld [vmem:[%s7439_s0 + $0x90] sm:$0xff]  ;;  %v48_v5 = vld [vmem:[%s7439_s0 + $0xc8] sm:$0xff]  ;;  %v63_v7 = vld [vmem:[%s7439_s0 + $0x140] sm:$0xff]  ;;  %v99_v9 = vpack.c.bf16 %v64_v1, %v57_v63 }
  0x11   :  { %135 = vmatpush1.bf16.msra.mxu0 %v100_v47  ;;  %v56_v6 = vld [vmem:[%s7439_s0 + $0x108] sm:$0xff]  ;;  %v71_v10 = vld [vmem:[%s7439_s0 + $0x180] sm:$0xff]  ;;  %v90_v11 = vpack.c.bf16 %v48_v5, %v41_v4  ;;  %v78_v12 = vld [vmem:[%s7439_s0 + $0x1b8] sm:$0xff] }
  0x12   :  { %188 = vmatpush1.bf16.msra.mxu1 %v102_v49  ;;  %234 = vmatprep.subr.bf16.mxu0 %v84_v57  ;;  %v3660_v8 = vld [vmem:[%s7440_s1 + $0x8] sm:$0xff]   ;;  %v98_v13 = vpack.c.bf16 %v63_v7, %v56_v6  ;;  %v55_v14 = vld [vmem:[%s7439_s0 + $0x100] sm:$0xff]  ;;  %v62_v15 = vld [vmem:[%s7439_s0 + $0x138] sm:$0xff]  ;;  %v106_v18 = vpack.c.bf16 %v78_v12, %v71_v10 }
  0x13   :  { %3628 = vmatprep.subr.bf16.mxu1 %v85_v52  ;;  %v70_v16 = vld [vmem:[%s7439_s0 + $0x178] sm:$0xff]  ;;  %v77_v17 = vld [vmem:[%s7439_s0 + $0x1b0] sm:$0xff]  ;;  %v97_v19 = vpack.c.bf16 %v62_v15, %v55_v14  ;;  %v76_v22 = vld [vmem:[%s7439_s0 + $0x1a8] sm:$0xff] }
  0x14   :  { %3455 = vmatmul.mubr.msk.bf16.vlgmr.msra.gmra.mrb[0].mxu0 %vm121_vm0, %v3985_v51  ;;  %v105_v20 = vpack.c.bf16 %v77_v17, %v70_v16  ;;  %v69_v21 = vld [vmem:[%s7439_s0 + $0x170] sm:$0xff]  ;;  %v4075_v29 = vld [vmem:[%s7441_s3 + $0xe8] ss:$28 sps:$4 sm:$0xff]   ;;  %v3661_v15 = vld [vmem:[%s7441_s3 + $0xe0] ss:$28 sps:$4 sm:$0xff]  }
  0x15   :  { %3457 = vmatmul.mubr.msk.bf16.vlgmr.msra.gmra.mrb[0].mxu1 %vm121_vm0, %v3985_v51  ;;  %170 = vmatprep.mubr.bf16.mxu0 %v7445_v3  ;;  %v104_v23 = vpack.c.bf16 %v76_v22, %v69_v21  ;;  %7607 = vst [vmem:[#allocation2_spill] sm:$0xff] %v4075_v29  ;;  %v4080_v30 = vld [vmem:[%s7441_s3 + $0xe4] ss:$28 sps:$4 sm:$0xff]   ;;  %v4087_v34 = vld [vmem:[%s7441_s3 + $0xec] ss:$28 sps:$4 sm:$0xff]  }
  0x16   :  { %223 = vmatprep.mubr.bf16.mxu1 %v7445_v3  ;;  %3629 = vmatpush3.bf16.msra.mxu1 %v85_v52  ;;  %7608 = vst [vmem:[#allocation3_spill] sm:$0xff] %v4080_v30  ;;  %7610 = vst [vmem:[#allocation5_spill] sm:$0xff] %v4087_v34 }
  0x17   :  { %3630 = vmatprep.subr.bf16.mxu1 %v92_v62  ;;  %235 = vmatpush1.bf16.msra.mxu0 %v83_v0 }
  0x18   :  { %236 = vmatprep.subr.bf16.mxu0 %v91_v2 }
  0x1a   :  { %3631 = vmatpush3.bf16.msra.mxu1 %v92_v62 }
  0x1b   :  { %3632 = vmatprep.subr.bf16.mxu1 %v99_v9  ;;  %237 = vmatpush1.bf16.msra.mxu0 %v90_v11 }
  0x1c   :  { %3456 = vmatmul.mubr.msk.bf16.gmra.mrb[4].mxu0 %vm121_vm0, %v3660_v8  ;;  %238 = vmatprep.subr.bf16.mxu0 %v98_v13 }
  0x1d   :  { %3458 = vmatmul.mubr.msk.bf16.gmra.mrb[4].mxu1 %vm121_vm0, %v3660_v8  ;;  %266 = vmatprep.mubr.bf16.mxu0 %v7445_v3 }
  0x1e   :  { %3633 = vmatpush3.bf16.msra.mxu1 %v99_v9  ;;  %3636 = vmatprep.mubr.msk.bf16.mxu1 %vm121_vm0, %v3985_v51 }
  0x1f   :  { %3634 = vmatprep.subr.bf16.mxu1 %v106_v18  ;;  %239 = vmatpush1.bf16.msra.mxu0 %v97_v19 }
  0x20   :  { %240 = vmatprep.subr.bf16.mxu0 %v105_v20 }
  0x22   :  { %3635 = vmatpush3.bf16.msra.mxu1 %v106_v18 }
  0x23   :  { %241 = vmatpush1.bf16.msra.mxu0 %v104_v23 }
  0x25   :  { %3637 = vmatmul.mubr.msk.bf16.vlgmr.msra.gmra.mrb[8].mxu1 %vm121_vm0, %v3660_v8 }
  0x26   :  { %3459 = vmatmul.mubr.msk.bf16.vlgmr.msra.gmra.mrb[8].mxu0 %vm121_vm0, %v3985_v51 }
  0x27   :  { %276 = vmatprep.mubr.bf16.mxu0 %v7445_v3 }
  0x2e   :  { %3460 = vmatmul.mubr.msk.bf16.gmra.mrb[12].mxu0 %vm121_vm0, %v3660_v8 }
  0xe7   :  { %v162_v24 = vpop.f32.mrb[0].mxu0 }
  0xe8   :  { %v215_v25 = vpop.f32.mrb[0].mxu1  ;;  %v164_v26 = vpop.f32.mrb[1].mxu0 }
  0xe9   :  { %v217_v27 = vpop.f32.mrb[1].mxu1  ;;  %v166_v28 = vpop.f32.mrb[2].mxu0 }
  0xea   :  { %v4082_v31 = vpack.c.bf16 %v166_v28, %v162_v24  ;;  %v219_v32 = vpop.f32.mrb[2].mxu1  ;;  %v168_v33 = vpop.f32.mrb[3].mxu0 }
  0xeb   :  { %v4089_v35 = vpack.c.bf16 %v219_v32, %v215_v25  ;;  %v4091_v36 = vpack.c.bf16 %v168_v33, %v164_v26  ;;  %v221_v37 = vpop.f32.mrb[3].mxu1 }
  0xec   :  { %7609 = vst [vmem:[#allocation4_spill] sm:$0xff] %v4082_v31  ;;  %v4093_v38 = vpack.c.bf16 %v221_v37, %v217_v27  ;;  %431 = vrot.lane.b32.xlu0 %v4082_v31, %s3830_s13 }
  0xed   :  { %7611 = vst [vmem:[#allocation6_spill] sm:$0xff] %v4089_v35  ;;  %7612 = vst [vmem:[#allocation7_spill] sm:$0xff] %v4091_v36  ;;  %435 = vrot.lane.b32.xlu1 %v4089_v35, %s3830_s13 }
  0xee   :  { %7613 = vst [vmem:[#allocation8_spill] sm:$0xff] %v4093_v38 }
  0xef   :  { %v172_v42 = vpop.f32.mrb[4].mxu0 }
  0xf0   :  { %469 = vrot.lane.b32.xlu0 %v4089_v35, %s3831_s14  ;;  %v174_v43 = vpop.f32.mrb[5].mxu0  ;;  %v225_v44 = vpop.f32.mrb[4].mxu1 }
  0xf1   :  { %465 = vrot.lane.b32.xlu1 %v4082_v31, %s3831_s14  ;;  %v176_v45 = vpop.f32.mrb[6].mxu0  ;;  %v227_v46 = vpop.f32.mrb[5].mxu1 }
  0xf2   :  { %v4109_v47 = vpack.c.bf16 %v176_v45, %v172_v42  ;;  %v178_v48 = vpop.f32.mrb[7].mxu0  ;;  %v229_v49 = vpop.f32.mrb[6].mxu1 }
  0xf3   :  { %v4111_v50 = vpack.c.bf16 %v178_v48, %v174_v43  ;;  %v4113_v51 = vpack.c.bf16 %v229_v49, %v225_v44  ;;  %v231_v52 = vpop.f32.mrb[7].mxu1 }
  0xf4   :  { %499 = vrot.lane.b32.xlu0 %v4082_v31, %s3832_s15  ;;  %v4117_v53 = vpack.c.bf16 %v231_v52, %v227_v46  ;;  %v4267_v17 = vmul.bf16 %v3661_v15, %v4109_v47 }
  0xf5   :  { %503 = vrot.lane.b32.xlu1 %v4089_v35, %s3832_s15  ;;  %v1381_v22 = vmul.bf16 %v4075_v29, %v4113_v51  ;;  %v1380_v25 = vmul.bf16 %v4080_v30, %v4111_v50  ;;  %v3708_v30 = vld [vmem:[%s7441_s3 + $0xf0] ss:$28 sps:$4 sm:$0xff]  }
  0xf6   :  { %7617 = vst [vmem:[#allocation12_spill] sm:$0xff] %v4267_v17  ;;  %v1382_v43 = vmul.bf16 %v4087_v34, %v4117_v53  ;;  %v4474_v34 = vld [vmem:[%s7441_s3 + $0x8] ss:$28 sps:$4 sm:$0xff]  }
  0xf7   :  { %7642 = vst [vmem:[#allocation37_spill] sm:$0xff] %v4474_v34 }
  0xf8   :  { %537 = vrot.lane.b32.xlu0 %v4089_v35, %s3833_s16  ;;  %v3638_v54 = vpop.f32.mrb[8].mxu1 }
  0xf9   :  { %533 = vrot.lane.b32.xlu1 %v4082_v31, %s3833_s16  ;;  %v321_v55 = vpop.f32.mrb[9].mxu1  ;;  %v268_v60 = vpop.f32.mrb[8].mxu0 }
  0xfa   :  { %v3639_v56 = vpop.f32.mrb[10].mxu1  ;;  %v270_v61 = vpop.f32.mrb[9].mxu0 }
  0xfb   :  { %v4125_v57 = vpack.c.bf16 %v3639_v56, %v3638_v54  ;;  %v324_v58 = vpop.f32.mrb[11].mxu1  ;;  %v272_v62 = vpop.f32.mrb[10].mxu0 }
  0xfc   :  { %565 = vrot.lane.b32.xlu0 %v4082_v31, %s3834_s17  ;;  %v4129_v59 = vpack.c.bf16 %v324_v58, %v321_v55  ;;  %v274_v63 = vpop.f32.mrb[11].mxu0  ;;  %v4161_v0 = vpack.c.bf16 %v272_v62, %v268_v60 }
  0xfd   :  { %569 = vrot.lane.b32.xlu1 %v4089_v35, %s3834_s17  ;;  %v4163_v1 = vpack.c.bf16 %v274_v63, %v270_v61 }
  0xfe   :  { %7614 = vst [vmem:[#allocation9_spill] sm:$0xff] %v4161_v0 }
 0x100   :  { %603 = vrot.lane.b32.xlu0 %v4089_v35, %s3835_s18 }
 0x101   :  { %599 = vrot.lane.b32.xlu1 %v4082_v31, %s3835_s18  ;;  %v278_v2 = vpop.f32.mrb[12].mxu0 }
 0x102   :  { %v280_v4 = vpop.f32.mrb[13].mxu0 }
 0x103   :  { %v282_v5 = vpop.f32.mrb[14].mxu0 }
 0x104   :  { %633 = vrot.lane.b32.xlu0 %v4082_v31, %s3836_s19  ;;  %v4179_v6 = vpack.c.bf16 %v282_v5, %v278_v2  ;;  %v284_v7 = vpop.f32.mrb[15].mxu0  ;;  %v3707_v2 = vld [vmem:[%s7441_s3 + $0xf8] ss:$28 sps:$4 sm:$0xff]  }
 0x105   :  { %637 = vrot.lane.b32.xlu1 %v4089_v35, %s3836_s19  ;;  %v4183_v8 = vpack.c.bf16 %v284_v7, %v280_v4  ;;  %v4403_v7 = vmul.bf16 %v3707_v2, %v4125_v57 }
 0x106   :  { %v4469_v29 = vmul.bf16 %v3708_v30, %v4179_v6  ;;  %v4485_v30 = vld [vmem:[%s7441_s3 + $0x4] ss:$28 sps:$4 sm:$0xff]  }
 0x107   :  { %7615 = vst [vmem:[#allocation10_spill] sm:$0xff] %v4183_v8  ;;  %7640 = vst [vmem:[#allocation35_spill] sm:$0xff] %v4403_v7 }
 0x108   :  { %671 = vrot.lane.b32.xlu0 %v4089_v35, %s3837_s20  ;;  %7641 = vst [vmem:[#allocation36_spill] sm:$0xff] %v4469_v29 }
 0x109   :  { %667 = vrot.lane.b32.xlu1 %v4082_v31, %s3837_s20 }
 0x10c   :  { %437 = vrot.lane.b32.xlu0 %v4093_v38, %s3830_s13 }
 0x10d   :  { %433 = vrot.lane.b32.xlu1 %v4091_v36, %s3830_s13 }
 0x110   :  { %467 = vrot.lane.b32.xlu0 %v4091_v36, %s3831_s14 }
 0x111   :  { %471 = vrot.lane.b32.xlu1 %v4093_v38, %s3831_s14 }
 0x114   :  { %505 = vrot.lane.b32.xlu0 %v4093_v38, %s3832_s15 }
 0x115   :  { %501 = vrot.lane.b32.xlu1 %v4091_v36, %s3832_s15 }
 0x118   :  { %535 = vrot.lane.b32.xlu0 %v4091_v36, %s3833_s16 }
 0x119   :  { %539 = vrot.lane.b32.xlu1 %v4093_v38, %s3833_s16 }
 0x11c   :  { %567 = vrot.lane.b32.xlu0 %v4091_v36, %s3834_s17 }
 0x11d   :  { %571 = vrot.lane.b32.xlu1 %v4093_v38, %s3834_s17 }
 0x120   :  { %605 = vrot.lane.b32.xlu0 %v4093_v38, %s3835_s18 }
 0x121   :  { %601 = vrot.lane.b32.xlu1 %v4091_v36, %s3835_s18 }
 0x124   :  { %635 = vrot.lane.b32.xlu0 %v4091_v36, %s3836_s19 }
 0x125   :  { %639 = vrot.lane.b32.xlu1 %v4093_v38, %s3836_s19 }
 0x128   :  { %673 = vrot.lane.b32.xlu0 %v4093_v38, %s3837_s20 }
 0x129   :  { %669 = vrot.lane.b32.xlu1 %v4091_v36, %s3837_s20 }
 0x12c   :  { %1097 = vrot.lane.b32.xlu0 %v4109_v47, %s3830_s13 }
 0x12d   :  { %1101 = vrot.lane.b32.xlu1 %v4113_v51, %s3830_s13 }
 0x130   :  { %1223 = vrot.lane.b32.xlu0 %v4109_v47, %s3834_s17 }
 0x131   :  { %1129 = vrot.lane.b32.xlu1 %v4109_v47, %s3831_s14 }
 0x134   :  { %1227 = vrot.lane.b32.xlu0 %v4113_v51, %s3834_s17 }
 0x135   :  { %1133 = vrot.lane.b32.xlu1 %v4113_v51, %s3831_s14 }
 0x138   :  { %1255 = vrot.lane.b32.xlu0 %v4109_v47, %s3835_s18 }
 0x139   :  { %1161 = vrot.lane.b32.xlu1 %v4109_v47, %s3832_s15 }
 0x13c   :  { %1259 = vrot.lane.b32.xlu0 %v4113_v51, %s3835_s18 }
 0x13d   :  { %1165 = vrot.lane.b32.xlu1 %v4113_v51, %s3832_s15 }
 0x140   :  { %1287 = vrot.lane.b32.xlu0 %v4109_v47, %s3836_s19 }
 0x141   :  { %1193 = vrot.lane.b32.xlu1 %v4109_v47, %s3833_s16 }
 0x144   :  { %1291 = vrot.lane.b32.xlu0 %v4113_v51, %s3836_s19 }
 0x145   :  { %1197 = vrot.lane.b32.xlu1 %v4113_v51, %s3833_s16 }
 0x148   :  { %1319 = vrot.lane.b32.xlu0 %v4109_v47, %s3837_s20 }
 0x149   :  { %1249 = vrot.lane.b32.xlu1 %v4109_v47, %s3838_s21 }
 0x14c   :  { %1323 = vrot.lane.b32.xlu0 %v4113_v51, %s3837_s20 }
 0x14d   :  { %1281 = vrot.lane.b32.xlu1 %v4109_v47, %s3839_s22 }
 0x150   :  { %1103 = vrot.lane.b32.xlu0 %v4117_v53, %s3830_s13 }
 0x151   :  { %1313 = vrot.lane.b32.xlu1 %v4109_v47, %s3840_s23 }
 0x154   :  { %1131 = vrot.lane.b32.xlu0 %v4111_v50, %s3831_s14 }
 0x155   :  { %1345 = vrot.lane.b32.xlu1 %v4109_v47, %s3841_s24 }
 0x158   :  { %1135 = vrot.lane.b32.xlu0 %v4117_v53, %s3831_s14 }
 0x159   :  { %1099 = vrot.lane.b32.xlu1 %v4111_v50, %s3830_s13 }
 0x15c   :  { %1163 = vrot.lane.b32.xlu0 %v4111_v50, %s3832_s15 }
 0x15d   :  { %1225 = vrot.lane.b32.xlu1 %v4111_v50, %s3834_s17 }
 0x15e   :  { %v4237_v9 = vpop.permute.xlu0 %431 }
 0x15f   :  { %v4239_v10 = vpop.permute.xlu1 %435 }
 0x160   :  { %1167 = vrot.lane.b32.xlu0 %v4117_v53, %s3832_s15 }
 0x161   :  { %1229 = vrot.lane.b32.xlu1 %v4117_v53, %s3834_s17 }
 0x162   :  { %v4245_v11 = vpop.permute.xlu0 %469 }
 0x163   :  { %v4247_v12 = vpop.permute.xlu1 %465 }
 0x164   :  { %1195 = vrot.lane.b32.xlu0 %v4111_v50, %s3833_s16 }
 0x165   :  { %1257 = vrot.lane.b32.xlu1 %v4111_v50, %s3835_s18 }
 0x166   :  { %v4253_v13 = vpop.permute.xlu0 %499 }
 0x167   :  { %v4255_v14 = vpop.permute.xlu1 %503 }
 0x168   :  { %1199 = vrot.lane.b32.xlu0 %v4117_v53, %s3833_s16 }
 0x169   :  { %1261 = vrot.lane.b32.xlu1 %v4117_v53, %s3835_s18 }
 0x16a   :  { %v4264_v16 = vpop.permute.xlu0 %537 }
 0x16b   :  { %7616 = vst [vmem:[#allocation11_spill] sm:$0xff] %v4264_v16  ;;  %v4269_v18 = vpop.permute.xlu1 %533 }
 0x16c   :  { %7618 = vst [vmem:[#allocation13_spill] sm:$0xff] %v4269_v18  ;;  %1877 = vrot.lane.b32.xlu0 %v4267_v17, %s3833_s16 }
 0x16d   :  { %1289 = vrot.lane.b32.xlu1 %v4111_v50, %s3836_s19 }
 0x16e   :  { %v4275_v19 = vpop.permute.xlu0 %565 }
 0x16f   :  { %7619 = vst [vmem:[#allocation14_spill] sm:$0xff] %v4275_v19  ;;  %v4277_v20 = vpop.permute.xlu1 %569  ;;  %v4513_v19 = vld [vmem:[%s7441_s3 + $0x40] ss:$28 sps:$4 sm:$0xff]  }
 0x170   :  { %7620 = vst [vmem:[#allocation15_spill] sm:$0xff] %v4277_v20  ;;  %1569 = vrot.lane.b32.xlu0 %v4267_v17, %s3842_s26  ;;  %7644 = vst [vmem:[#allocation39_spill] sm:$0xff] %v4513_v19 }
 0x171   :  { %1293 = vrot.lane.b32.xlu1 %v4117_v53, %s3836_s19 }
 0x172   :  { %v4283_v21 = vpop.permute.xlu0 %603 }
 0x173   :  { %7621 = vst [vmem:[#allocation16_spill] sm:$0xff] %v4283_v21  ;;  %v4287_v23 = vpop.permute.xlu1 %599 }
 0x174   :  { %7622 = vst [vmem:[#allocation17_spill] sm:$0xff] %v4287_v23  ;;  %1881 = vrot.lane.b32.xlu0 %v1381_v22, %s3833_s16 }
 0x175   :  { %1321 = vrot.lane.b32.xlu1 %v4111_v50, %s3837_s20 }
 0x176   :  { %v4292_v24 = vpop.permute.xlu0 %633 }
 0x177   :  { %7623 = vst [vmem:[#allocation18_spill] sm:$0xff] %v4292_v24  ;;  %v4296_v26 = vpop.permute.xlu1 %637  ;;  %v7779_v31 = vld [vmem:[#allocation15_spill] sm:$0xff] }
 0x178   :  { %7624 = vst [vmem:[#allocation19_spill] sm:$0xff] %v4296_v26  ;;  %1571 = vrot.lane.b32.xlu0 %v1380_v25, %s3842_s26 }
 0x179   :  { %1325 = vrot.lane.b32.xlu1 %v4117_v53, %s3837_s20 }
 0x17a   :  { %v4301_v27 = vpop.permute.xlu0 %671 }
 0x17b   :  { %7625 = vst [vmem:[#allocation20_spill] sm:$0xff] %v4301_v27  ;;  %v4303_v28 = vpop.permute.xlu1 %667 }
 0x17c   :  { %7626 = vst [vmem:[#allocation21_spill] sm:$0xff] %v4303_v28  ;;  %1089 = vrot.lane.b32.xlu0 %v4125_v57, %s3843_s27 }
 0x17d   :  { %1573 = vrot.lane.b32.xlu1 %v1381_v22, %s3842_s26 }
 0x17e   :  { %v4308_v32 = vpop.permute.xlu0 %437 }
 0x17f   :  { %7627 = vst [vmem:[#allocation22_spill] sm:$0xff] %v4308_v32  ;;  %v4310_v33 = vpop.permute.xlu1 %433 }
 0x180   :  { %1127 = vrot.lane.b32.xlu0 %v4125_v57, %s3844_s28 }
 0x181   :  { %1879 = vrot.lane.b32.xlu1 %v1380_v25, %s3833_s16 }
 0x182   :  { %v4315_v37 = vpop.permute.xlu0 %467 }
 0x183   :  { %v4317_v42 = vpop.permute.xlu1 %471 }
 0x184   :  { %7628 = vst [vmem:[#allocation23_spill] sm:$0xff] %v4317_v42  ;;  %1159 = vrot.lane.b32.xlu0 %v4125_v57, %s3845_s29 }
 0x185   :  { %1575 = vrot.lane.b32.xlu1 %v1382_v43, %s3842_s26 }
 0x186   :  { %v4324_v44 = vpop.permute.xlu0 %505 }
 0x187   :  { %7629 = vst [vmem:[#allocation24_spill] sm:$0xff] %v4324_v44  ;;  %v4326_v45 = vpop.permute.xlu1 %501 }
 0x188   :  { %1191 = vrot.lane.b32.xlu0 %v4125_v57, %s3846_s30 }
 0x189   :  { %1883 = vrot.lane.b32.xlu1 %v1382_v43, %s3833_s16 }
 0x18a   :  { %v4331_v46 = vpop.permute.xlu0 %535 }
 0x18b   :  { %7630 = vst [vmem:[#allocation25_spill] sm:$0xff] %v4331_v46  ;;  %v4333_v47 = vpop.permute.xlu1 %539 }
 0x18c   :  { %7631 = vst [vmem:[#allocation26_spill] sm:$0xff] %v4333_v47  ;;  %1235 = vrot.lane.b32.xlu0 %v4125_v57, %s3834_s17 }
 0x18d   :  { %1109 = vrot.lane.b32.xlu1 %v4125_v57, %s3830_s13 }
 0x18e   :  { %v4339_v48 = vpop.permute.xlu0 %567 }
 0x18f   :  { %7632 = vst [vmem:[#allocation27_spill] sm:$0xff] %v4339_v48  ;;  %v4341_v49 = vpop.permute.xlu1 %571 }
 0x190   :  { %7633 = vst [vmem:[#allocation28_spill] sm:$0xff] %v4341_v49  ;;  %1267 = vrot.lane.b32.xlu0 %v4125_v57, %s3835_s18 }
 0x191   :  { %1141 = vrot.lane.b32.xlu1 %v4125_v57, %s3831_s14 }
 0x192   :  { %v4347_v50 = vpop.permute.xlu0 %605 }
 0x193   :  { %7634 = vst [vmem:[#allocation29_spill] sm:$0xff] %v4347_v50  ;;  %v4349_v51 = vpop.permute.xlu1 %601 }
 0x194   :  { %7635 = vst [vmem:[#allocation30_spill] sm:$0xff] %v4349_v51  ;;  %1299 = vrot.lane.b32.xlu0 %v4125_v57, %s3836_s19 }
 0x195   :  { %1173 = vrot.lane.b32.xlu1 %v4125_v57, %s3832_s15 }
 0x196   :  { %v4355_v52 = vpop.permute.xlu0 %635 }
 0x197   :  { %7636 = vst [vmem:[#allocation31_spill] sm:$0xff] %v4355_v52  ;;  %v4357_v53 = vpop.permute.xlu1 %639 }
 0x198   :  { %7637 = vst [vmem:[#allocation32_spill] sm:$0xff] %v4357_v53  ;;  %1331 = vrot.lane.b32.xlu0 %v4125_v57, %s3837_s20 }
 0x199   :  { %1205 = vrot.lane.b32.xlu1 %v4125_v57, %s3833_s16 }
 0x19a   :  { %v4363_v54 = vpop.permute.xlu0 %673 }
 0x19b   :  { %7638 = vst [vmem:[#allocation33_spill] sm:$0xff] %v4363_v54  ;;  %v4365_v55 = vpop.permute.xlu1 %669 }
 0x19c   :  { %7639 = vst [vmem:[#allocation34_spill] sm:$0xff] %v4365_v55  ;;  %573 = vrot.lane.b32.xlu0 %v4161_v0, %s3834_s17 }
 0x19d   :  { %607 = vrot.lane.b32.xlu1 %v4161_v0, %s3835_s18 }
 0x19e   :  { %v4371_v56 = vpop.permute.xlu0 %1097 }
 0x19f   :  { %v4373_v58 = vpop.permute.xlu1 %1101 }
 0x1a0   :  { %641 = vrot.lane.b32.xlu0 %v4161_v0, %s3836_s19 }
 0x1a1   :  { %675 = vrot.lane.b32.xlu1 %v4161_v0, %s3837_s20 }
 0x1a2   :  { %v4379_v60 = vpop.permute.xlu0 %1223 }
 0x1a3   :  { %v4381_v61 = vpop.permute.xlu1 %1129 }
 0x1a4   :  { %423 = vrot.lane.b32.xlu0 %v4129_v59, %s3843_s27 }
 0x1a5   :  { %463 = vrot.lane.b32.xlu1 %v4129_v59, %s3844_s28 }
 0x1a6   :  { %v4387_v62 = vpop.permute.xlu0 %1227 }
 0x1a7   :  { %v4389_v63 = vpop.permute.xlu1 %1133 }
 0x1a8   :  { %497 = vrot.lane.b32.xlu0 %v4129_v59, %s3845_s29  ;;  %s3847_s29 = smov 117  }
 0x1a9   :  { %531 = vrot.lane.b32.xlu1 %v4129_v59, %s3846_s30 }
 0x1aa   :  { %v4398_v4 = vpop.permute.xlu0 %1255 }
 0x1ab   :  { %v4400_v5 = vpop.permute.xlu1 %1161 }
 0x1ac   :  { %1231 = vrot.lane.b32.xlu0 %v4179_v6, %s3834_s17 }
 0x1ad   :  { %1811 = vrot.lane.b32.xlu1 %v4403_v7, %s3846_s30 }
 0x1ae   :  { %v4409_v15 = vpop.permute.xlu0 %1259 }
 0x1af   :  { %v4411_v22 = vpop.permute.xlu1 %1165 }
 0x1b0   :  { %1263 = vrot.lane.b32.xlu0 %v4179_v6, %s3835_s18 }
 0x1b1   :  { %1105 = vrot.lane.b32.xlu1 %v4179_v6, %s3830_s13 }
 0x1b2   :  { %v4417_v25 = vpop.permute.xlu0 %1287 }
 0x1b3   :  { %v4419_v57 = vpop.permute.xlu1 %1193 }
 0x1b4   :  { %1295 = vrot.lane.b32.xlu0 %v4179_v6, %s3836_s19 }
 0x1b5   :  { %1137 = vrot.lane.b32.xlu1 %v4179_v6, %s3831_s14 }
 0x1b6   :  { %v4425_v43 = vpop.permute.xlu0 %1291 }
 0x1b7   :  { %v4427_v2 = vpop.permute.xlu1 %1197 }
 0x1b8   :  { %1327 = vrot.lane.b32.xlu0 %v4179_v6, %s3837_s20 }
 0x1b9   :  { %1169 = vrot.lane.b32.xlu1 %v4179_v6, %s3832_s15 }
 0x1ba   :  { %v4433_v40 = vpop.permute.xlu0 %1319 }
 0x1bb   :  { %v4435_v39 = vpop.permute.xlu1 %1249 }
 0x1bc   :  { %1107 = vrot.lane.b32.xlu0 %v4183_v8, %s3830_s13 }
 0x1bd   :  { %1201 = vrot.lane.b32.xlu1 %v4179_v6, %s3833_s16 }
 0x1be   :  { %v4441_v41 = vpop.permute.xlu0 %1323 }
 0x1bf   :  { %v4443_v3 = vpop.permute.xlu1 %1281 }
 0x1c0   :  { %1139 = vrot.lane.b32.xlu0 %v4183_v8, %s3831_s14 }
 0x1c1   :  { %1233 = vrot.lane.b32.xlu1 %v4183_v8, %s3834_s17 }
 0x1c2   :  { %v4449_v28 = vpop.permute.xlu0 %1103 }
 0x1c3   :  { %v4451_v55 = vpop.permute.xlu1 %1313  ;;  %v1113_v23 = vsel %vm445_vm1, %v4373_v58, %v4449_v28 }
 0x1c4   :  { %1171 = vrot.lane.b32.xlu0 %v4183_v8, %s3832_s15 }
 0x1c5   :  { %1265 = vrot.lane.b32.xlu1 %v4183_v8, %s3835_s18 }
 0x1c6   :  { %v1132_v24 = vpop.permute.xlu0 %1131 }
 0x1c7   :  { %v4457_v36 = vpop.permute.xlu1 %1345  ;;  %v1143_v17 = vsel %vm479_vm2, %v4381_v61, %v1132_v24 }
 0x1c8   :  { %1203 = vrot.lane.b32.xlu0 %v4183_v8, %s3833_s16 }
 0x1c9   :  { %1297 = vrot.lane.b32.xlu1 %v4183_v8, %s3836_s19 }
 0x1ca   :  { %v4466_v35 = vpop.permute.xlu0 %1135 }
 0x1cb   :  { %v1100_v38 = vpop.permute.xlu1 %1099 }
 0x1cc   :  { %v1111_v27 = vsel %vm445_vm1, %v4371_v56, %v1100_v38  ;;  %v1112_v54 = vsel %vm445_vm1, %v1100_v38, %v4373_v58  ;;  %1577 = vrot.lane.b32.xlu0 %v4469_v29, %s3842_s26 }
 0x1cd   :  { %1329 = vrot.lane.b32.xlu1 %v4183_v8, %s3837_s20  ;;  %v1353_v6 = vmul.bf16 %v4474_v34, %v1112_v54  ;;  %v1352_v52 = vmul.bf16 %v4485_v30, %v1111_v27  ;;  %v4505_v54 = vld [vmem:[%s7441_s3 + $0xc] ss:$28 sps:$4 sm:$0xff]   ;;  %v1144_v27 = vsel %vm479_vm2, %v1132_v24, %v4389_v63  ;;  %v4541_v24 = vld [vmem:[%s7441_s3 + $0x44] ss:$28 sps:$4 sm:$0xff]  }
 0x1ce   :  { %v1164_v53 = vpop.permute.xlu0 %1163  ;;  %7643 = vst [vmem:[#allocation38_spill] sm:$0xff] %v4505_v54  ;;  %v1354_v58 = vmul.bf16 %v4505_v54, %v1113_v23  ;;  %v1360_v21 = vmul.bf16 %v4513_v19, %v1144_v27  ;;  %v1145_v27 = vsel %vm479_vm2, %v4389_v63, %v4466_v35  ;;  %7646 = vst [vmem:[#allocation41_spill] sm:$0xff] %v4541_v24  ;;  %v3694_v19 = vld [vmem:[%s7441_s3 + $0x150] ss:$28 sps:$4 sm:$0xff]  }
 0x1cf   :  { %v4491_v26 = vpop.permute.xlu1 %1225  ;;  %v1361_v20 = vmul.bf16 %v4541_v24, %v1145_v27  ;;  %v1175_v27 = vsel %vm513_vm3, %v4400_v5, %v1164_v53 }
 0x1d0   :  { %1517 = vrot.lane.b32.xlu0 %v1353_v6, %s3842_s26 }
 0x1d1   :  { %1515 = vrot.lane.b32.xlu1 %v1352_v52, %s3842_s26 }
 0x1d2   :  { %v4495_v38 = vpop.permute.xlu0 %1167 }
 0x1d3   :  { %v4500_v51 = vpop.permute.xlu1 %1229 }
 0x1d4   :  { %1823 = vrot.lane.b32.xlu0 %v1352_v52, %s3833_s16  ;;  %v4526_v52 = vld [vmem:[%s7441_s3 + $0x3c] ss:$28 sps:$4 sm:$0xff]  }
 0x1d5   :  { %1825 = vrot.lane.b32.xlu1 %v1353_v6, %s3833_s16  ;;  %7645 = vst [vmem:[#allocation40_spill] sm:$0xff] %v4526_v52  ;;  %v1359_v23 = vmul.bf16 %v4526_v52, %v1143_v17 }
 0x1d6   :  { %v1196_v29 = vpop.permute.xlu0 %1195 }
 0x1d7   :  { %v4518_v50 = vpop.permute.xlu1 %1257 }
 0x1d8   :  { %1519 = vrot.lane.b32.xlu0 %v1354_v58, %s3842_s26 }
 0x1d9   :  { %1531 = vrot.lane.b32.xlu1 %v1360_v21, %s3842_s26 }
 0x1da   :  { %v4529_v6 = vpop.permute.xlu0 %1199 }
 0x1db   :  { %v4532_v49 = vpop.permute.xlu1 %1261 }
 0x1dc   :  { %1827 = vrot.lane.b32.xlu0 %v1354_v58, %s3833_s16  ;;  %v1176_v58 = vsel %vm513_vm3, %v1164_v53, %v4411_v22  ;;  %v1177_v53 = vsel %vm513_vm3, %v4411_v22, %v4495_v38 }
 0x1dd   :  { %1837 = vrot.lane.b32.xlu1 %v1359_v23, %s3833_s16 }
 0x1de   :  { %v4544_v48 = vpop.permute.xlu0 %1877 }
 0x1df   :  { %7647 = vst [vmem:[#allocation42_spill] sm:$0xff] %v4544_v48  ;;  %v4547_v17 = vpop.permute.xlu1 %1289  ;;  %v4560_v48 = vld [vmem:[%s7441_s3 + $0x78] ss:$28 sps:$4 sm:$0xff]  }
 0x1e0   :  { %1529 = vrot.lane.b32.xlu0 %v1359_v23, %s3842_s26  ;;  %7649 = vst [vmem:[#allocation44_spill] sm:$0xff] %v4560_v48  ;;  %v4568_v23 = vld [vmem:[%s7441_s3 + $0x74] ss:$28 sps:$4 sm:$0xff]  }
 0x1e1   :  { %1533 = vrot.lane.b32.xlu1 %v1361_v20, %s3842_s26  ;;  %7650 = vst [vmem:[#allocation45_spill] sm:$0xff] %v4568_v23  ;;  %v1366_v16 = vmul.bf16 %v4568_v23, %v1175_v27  ;;  %v1208_v27 = vsel %vm547_vm4, %v1196_v29, %v4427_v2  ;;  %v1207_v23 = vsel %vm547_vm4, %v4419_v57, %v1196_v29  ;;  %v4627_v29 = vld [vmem:[%s7441_s3 + $0xb4] ss:$28 sps:$4 sm:$0xff]  }
 0x1e2   :  { %v4551_v63 = vpop.permute.xlu0 %1569  ;;  %7658 = vst [vmem:[#allocation53_spill] sm:$0xff] %v4627_v29 }
 0x1e3   :  { %7648 = vst [vmem:[#allocation43_spill] sm:$0xff] %v4551_v63  ;;  %v4555_v47 = vpop.permute.xlu1 %1293  ;;  %v1367_v63 = vmul.bf16 %v4560_v48, %v1176_v58  ;;  %v4589_v58 = vld [vmem:[%s7441_s3 + $0x7c] ss:$28 sps:$4 sm:$0xff]  }
 0x1e4   :  { %1839 = vrot.lane.b32.xlu0 %v1360_v21, %s3833_s16  ;;  %7653 = vst [vmem:[#allocation48_spill] sm:$0xff] %v4589_v58  ;;  %v1368_v22 = vmul.bf16 %v4589_v58, %v1177_v53  ;;  %v1303_v52 = vsel %vm647_vm7, %v4425_v43, %v4555_v47 }
 0x1e5   :  { %1841 = vrot.lane.b32.xlu1 %v1361_v20, %s3833_s16 }
 0x1e6   :  { %v4572_v7 = vpop.permute.xlu0 %1881 }
 0x1e7   :  { %7651 = vst [vmem:[#allocation46_spill] sm:$0xff] %v4572_v7  ;;  %v4575_v18 = vpop.permute.xlu1 %1321 }
 0x1e8   :  { %1545 = vrot.lane.b32.xlu0 %v1367_v63, %s3842_s26 }
 0x1e9   :  { %1543 = vrot.lane.b32.xlu1 %v1366_v16, %s3842_s26 }
 0x1ea   :  { %v4579_v21 = vpop.permute.xlu0 %1571 }
 0x1eb   :  { %7652 = vst [vmem:[#allocation47_spill] sm:$0xff] %v4579_v21  ;;  %v4584_v20 = vpop.permute.xlu1 %1325  ;;  %v4597_v21 = vld [vmem:[%s7441_s3 + $0xb0] ss:$28 sps:$4 sm:$0xff]  }
 0x1ec   :  { %1851 = vrot.lane.b32.xlu0 %v1366_v16, %s3833_s16  ;;  %7654 = vst [vmem:[#allocation49_spill] sm:$0xff] %v4597_v21  ;;  %v1374_v48 = vmul.bf16 %v4597_v21, %v1208_v27  ;;  %v4612_v16 = vld [vmem:[%s7441_s3 + $0xac] ss:$28 sps:$4 sm:$0xff]   ;;  %v1209_v27 = vsel %vm547_vm4, %v4427_v2, %v4529_v6 }
 0x1ed   :  { %1853 = vrot.lane.b32.xlu1 %v1367_v63, %s3833_s16  ;;  %7656 = vst [vmem:[#allocation51_spill] sm:$0xff] %v4612_v16  ;;  %v1373_v53 = vmul.bf16 %v4612_v16, %v1207_v23  ;;  %v1375_v21 = vmul.bf16 %v4627_v29, %v1209_v27  ;;  %v4647_v16 = vld [vmem:[%s7441_s3 + $0x120] ss:$28 sps:$4 sm:$0xff]  }
 0x1ee   :  { %v4601_v7 = vpop.permute.xlu0 %1089  ;;  %7661 = vst [vmem:[#allocation56_spill] sm:$0xff] %v4647_v16  ;;  %v4656_v27 = vld [vmem:[%s7441_s3 + $0x11c] ss:$28 sps:$4 sm:$0xff]  }
 0x1ef   :  { %v4604_v46 = vpop.permute.xlu1 %1573  ;;  %7662 = vst [vmem:[#allocation57_spill] sm:$0xff] %v4656_v27 }
 0x1f0   :  { %7655 = vst [vmem:[#allocation50_spill] sm:$0xff] %v4604_v46  ;;  %1547 = vrot.lane.b32.xlu0 %v1368_v22, %s3842_s26 }
 0x1f1   :  { %1559 = vrot.lane.b32.xlu1 %v1374_v48, %s3842_s26 }
 0x1f2   :  { %v4615_v63 = vpop.permute.xlu0 %1127 }
 0x1f3   :  { %v4618_v58 = vpop.permute.xlu1 %1879 }
 0x1f4   :  { %7657 = vst [vmem:[#allocation52_spill] sm:$0xff] %v4618_v58  ;;  %1855 = vrot.lane.b32.xlu0 %v1368_v22, %s3833_s16  ;;  %v1239_v22 = vsel %vm579_vm5, %v4387_v62, %v4500_v51 }
 0x1f5   :  { %1865 = vrot.lane.b32.xlu1 %v1373_v53, %s3833_s16 }
 0x1f6   :  { %v4630_v46 = vpop.permute.xlu0 %1159 }
 0x1f7   :  { %v4633_v23 = vpop.permute.xlu1 %1575 }
 0x1f8   :  { %7659 = vst [vmem:[#allocation54_spill] sm:$0xff] %v4633_v23  ;;  %1557 = vrot.lane.b32.xlu0 %v1373_v53, %s3842_s26  ;;  %v1238_v53 = vsel %vm579_vm5, %v4491_v26, %v4387_v62  ;;  %v1237_v62 = vsel %vm579_vm5, %v4379_v60, %v4491_v26  ;;  %v3696_v26 = vld [vmem:[%s7441_s3 + $0x154] ss:$28 sps:$4 sm:$0xff]  }
 0x1f9   :  { %1561 = vrot.lane.b32.xlu1 %v1375_v21, %s3842_s26  ;;  %v1387_v29 = vmul.bf16 %v4656_v27, %v1238_v53  ;;  %v1270_v53 = vsel %vm7606_vm6, %v4518_v50, %v4409_v15 }
 0x1fa   :  { %v4637_v2 = vpop.permute.xlu0 %1191  ;;  %v1394_v60 = vmul.bf16 %v3696_v26, %v1270_v53 }
 0x1fb   :  { %v4642_v58 = vpop.permute.xlu1 %1883 }
 0x1fc   :  { %7660 = vst [vmem:[#allocation55_spill] sm:$0xff] %v4642_v58  ;;  %1867 = vrot.lane.b32.xlu0 %v1374_v48, %s3833_s16  ;;  %v1388_v58 = vmul.bf16 %v4647_v16, %v1239_v22  ;;  %v3687_v48 = vld [vmem:[%s7441_s3 + $0x118] ss:$28 sps:$4 sm:$0xff]  }
 0x1fd   :  { %1869 = vrot.lane.b32.xlu1 %v1375_v21, %s3833_s16  ;;  %v4675_v22 = vmul.bf16 %v3687_v48, %v1237_v62  ;;  %v1269_v62 = vsel %vm7606_vm6, %v4398_v4, %v4518_v50  ;;  %v1271_v50 = vsel %vm7606_vm6, %v4409_v15, %v4532_v49  ;;  %v4715_v4 = vld [vmem:[%s7441_s3 + $0x158] ss:$28 sps:$4 sm:$0xff]  }
 0x1fe   :  { %v4660_v23 = vpop.permute.xlu0 %1235  ;;  %7669 = vst [vmem:[#allocation64_spill] sm:$0xff] %v4715_v4 }
 0x1ff   :  { %7663 = vst [vmem:[#allocation58_spill] sm:$0xff] %v4660_v23  ;;  %v4663_v24 = vpop.permute.xlu1 %1109  ;;  %7665 = vst [vmem:[#allocation60_spill] sm:$0xff] %v4675_v22 }
 0x200   :  { %1587 = vrot.lane.b32.xlu0 %v1388_v58, %s3842_s26 }
 0x201   :  { %1585 = vrot.lane.b32.xlu1 %v1387_v29, %s3842_s26 }
 0x202   :  { %v4673_v21 = vpop.permute.xlu0 %1267 }
 0x203   :  { %7664 = vst [vmem:[#allocation59_spill] sm:$0xff] %v4673_v21  ;;  %v4680_v16 = vpop.permute.xlu1 %1141 }
 0x204   :  { %1893 = vrot.lane.b32.xlu0 %v1387_v29, %s3833_s16  ;;  %v4701_v29 = vmul.bf16 %v3694_v19, %v1269_v62  ;;  %v1395_v62 = vmul.bf16 %v4715_v4, %v1271_v50  ;;  %v1302_v50 = vsel %vm647_vm7, %v4547_v17, %v4425_v43  ;;  %v1301_v4 = vsel %vm647_vm7, %v4417_v25, %v4547_v17  ;;  %v3697_v43 = vld [vmem:[%s7441_s3 + $0x188] ss:$28 sps:$4 sm:$0xff]  }
 0x205   :  { %1891 = vrot.lane.b32.xlu1 %v4675_v22, %s3833_s16  ;;  %v3706_v25 = vld [vmem:[%s7441_s3 + $0x1c4] ss:$28 sps:$4 sm:$0xff]  }
 0x206   :  { %v4688_v27 = vpop.permute.xlu0 %1299  ;;  %7667 = vst [vmem:[#allocation62_spill] sm:$0xff] %v4701_v29 }
 0x207   :  { %7666 = vst [vmem:[#allocation61_spill] sm:$0xff] %v4688_v27  ;;  %v4693_v48 = vpop.permute.xlu1 %1173 }
 0x208   :  { %1599 = vrot.lane.b32.xlu0 %v1394_v60, %s3842_s26 }
 0x209   :  { %1583 = vrot.lane.b32.xlu1 %v4675_v22, %s3842_s26 }
 0x20a   :  { %v4703_v53 = vpop.permute.xlu0 %1331 }
 0x20b   :  { %7668 = vst [vmem:[#allocation63_spill] sm:$0xff] %v4703_v53  ;;  %v4705_v26 = vpop.permute.xlu1 %1205 }
 0x20c   :  { %1905 = vrot.lane.b32.xlu0 %v4701_v29, %s3833_s16 }
 0x20d   :  { %1895 = vrot.lane.b32.xlu1 %v1388_v58, %s3833_s16  ;;  %v4736_v58 = vld [vmem:[%s7441_s3 + $0x190] ss:$28 sps:$4 sm:$0xff]  }
 0x20e   :  { %v4718_v19 = vpop.permute.xlu0 %573  ;;  %7674 = vst [vmem:[#allocation69_spill] sm:$0xff] %v4736_v58 }
 0x20f   :  { %7670 = vst [vmem:[#allocation65_spill] sm:$0xff] %v4718_v19  ;;  %v4721_v22 = vpop.permute.xlu1 %607 }
 0x210   :  { %7671 = vst [vmem:[#allocation66_spill] sm:$0xff] %v4721_v22  ;;  %1597 = vrot.lane.b32.xlu0 %v4701_v29, %s3842_s26  ;;  %v3699_v29 = vld [vmem:[%s7441_s3 + $0x18c] ss:$28 sps:$4 sm:$0xff]  }
 0x211   :  { %1601 = vrot.lane.b32.xlu1 %v1395_v62, %s3842_s26  ;;  %v1401_v22 = vmul.bf16 %v3699_v29, %v1302_v50  ;;  %v1334_v29 = vsel %vm681_vm8, %v4575_v18, %v4441_v41 }
 0x212   :  { %v4726_v15 = vpop.permute.xlu0 %641  ;;  %v1408_v17 = vmul.bf16 %v3706_v25, %v1334_v29 }
 0x213   :  { %7672 = vst [vmem:[#allocation67_spill] sm:$0xff] %v4726_v15  ;;  %v4731_v34 = vpop.permute.xlu1 %675  ;;  %v1402_v15 = vmul.bf16 %v4736_v58, %v1303_v52  ;;  %v4761_v52 = vmul.bf16 %v3697_v43, %v1301_v4  ;;  %v1333_v4 = vsel %vm681_vm8, %v4433_v40, %v4575_v18  ;;  %v1335_v40 = vsel %vm681_vm8, %v4441_v41, %v4584_v20  ;;  %v4801_v18 = vld [vmem:[%s7441_s3 + $0x1c8] ss:$28 sps:$4 sm:$0xff]  }
 0x214   :  { %7673 = vst [vmem:[#allocation68_spill] sm:$0xff] %v4731_v34  ;;  %1909 = vrot.lane.b32.xlu0 %v1395_v62, %s3833_s16  ;;  %7682 = vst [vmem:[#allocation77_spill] sm:$0xff] %v4801_v18  ;;  %v1157_v41 = vsel %vm479_vm2, %v4615_v63, %v4381_v61  ;;  %v1125_v61 = vsel %vm445_vm1, %v4601_v7, %v4371_v56  ;;  %v4844_v63 = vld [vmem:[%s7441_s3 + $0xa8] ss:$28 sps:$4 sm:$0xff]  }
 0x215   :  { %1907 = vrot.lane.b32.xlu1 %v1394_v60, %s3833_s16  ;;  %7678 = vst [vmem:[#allocation73_spill] sm:$0xff] %v4761_v52  ;;  %7685 = vst [vmem:[#allocation80_spill] sm:$0xff] %v4844_v63 }
 0x216   :  { %v4747_v34 = vpop.permute.xlu0 %423 }
 0x217   :  { %7675 = vst [vmem:[#allocation70_spill] sm:$0xff] %v4747_v34  ;;  %v4749_v19 = vpop.permute.xlu1 %463 }
 0x218   :  { %7676 = vst [vmem:[#allocation71_spill] sm:$0xff] %v4749_v19  ;;  %1615 = vrot.lane.b32.xlu0 %v1402_v15, %s3842_s26 }
 0x219   :  { %1613 = vrot.lane.b32.xlu1 %v1401_v22, %s3842_s26 }
 0x21a   :  { %v4759_v60 = vpop.permute.xlu0 %497 }
 0x21b   :  { %7677 = vst [vmem:[#allocation72_spill] sm:$0xff] %v4759_v60  ;;  %v4766_v62 = vpop.permute.xlu1 %531  ;;  %v3704_v60 = vld [vmem:[%s7441_s3 + $0x1c0] ss:$28 sps:$4 sm:$0xff]  }
 0x21c   :  { %7679 = vst [vmem:[#allocation74_spill] sm:$0xff] %v4766_v62  ;;  %1921 = vrot.lane.b32.xlu0 %v1401_v22, %s3833_s16  ;;  %v4787_v22 = vmul.bf16 %v3704_v60, %v1333_v4  ;;  %v4807_v60 = vld [vmem:[%s7441_s3 + $0x38] ss:$28 sps:$4 sm:$0xff]  }
 0x21d   :  { %1919 = vrot.lane.b32.xlu1 %v4761_v52, %s3833_s16  ;;  %7683 = vst [vmem:[#allocation78_spill] sm:$0xff] %v4807_v60 }
 0x21e   :  { %v4774_v50 = vpop.permute.xlu0 %1231  ;;  %7681 = vst [vmem:[#allocation76_spill] sm:$0xff] %v4787_v22 }
 0x21f   :  { %v4779_v43 = vpop.permute.xlu1 %1811 }
 0x220   :  { %7680 = vst [vmem:[#allocation75_spill] sm:$0xff] %v4779_v43  ;;  %1627 = vrot.lane.b32.xlu0 %v1408_v17, %s3842_s26 }
 0x221   :  { %1611 = vrot.lane.b32.xlu1 %v4761_v52, %s3842_s26  ;;  %v4812_v52 = vmul.bf16 %v4801_v18, %v1335_v40  ;;  %v4831_v40 = vld [vmem:[%s7441_s3] ss:$28 sps:$4 sm:$0xff]   ;;  %v1317_v18 = vsel %vm7571_vm10, %v4688_v27, %v4451_v55 }
 0x222   :  { %v4789_v29 = vpop.permute.xlu0 %1263  ;;  %7684 = vst [vmem:[#allocation79_spill] sm:$0xff] %v4831_v40 }
 0x223   :  { %v4791_v25 = vpop.permute.xlu1 %1105 }
 0x224   :  { %1933 = vrot.lane.b32.xlu0 %v4787_v22, %s3833_s16 }
 0x225   :  { %1923 = vrot.lane.b32.xlu1 %v1402_v15, %s3833_s16  ;;  %v4824_v15 = vmul.bf16 %v4807_v60, %v1157_v41  ;;  %v1221_v60 = vsel %vm547_vm4, %v4637_v2, %v4419_v57  ;;  %v1189_v57 = vsel %vm513_vm3, %v4630_v46, %v4400_v5  ;;  %v3714_v2 = vld [vmem:[%s7441_s3 + $0x130] ss:$28 sps:$4 sm:$0xff]   ;;  %v1253_v46 = vsel %vm594_vm9, %v4660_v23, %v4435_v39  ;;  %v3715_v39 = vld [vmem:[%s7441_s3 + $0x168] ss:$28 sps:$4 sm:$0xff]  }
 0x226   :  { %v4809_v4 = vpop.permute.xlu0 %1295  ;;  %v4861_v7 = vmul.bf16 %v4844_v63, %v1221_v60  ;;  %v4896_v19 = vmul.bf16 %v3714_v2, %v1253_v46  ;;  %v1285_v2 = vsel %vm7605_vm11, %v4673_v21, %v4443_v3  ;;  %v3724_v23 = vld [vmem:[%s7441_s3 + $0x48] ss:$28 sps:$4 sm:$0xff]   ;;  %v3722_v3 = vld [vmem:[%s7441_s3 + $0x10] ss:$28 sps:$4 sm:$0xff]  }
 0x227   :  { %v4817_v43 = vpop.permute.xlu1 %1137  ;;  %v4925_v55 = vmul.bf16 %v3715_v39, %v1285_v2  ;;  %v3728_v39 = vld [vmem:[%s7441_s3 + $0xb8] ss:$28 sps:$4 sm:$0xff]  }
 0x228   :  { %1625 = vrot.lane.b32.xlu0 %v4787_v22, %s3842_s26  ;;  %v4849_v22 = vmul.bf16 %v4831_v40, %v1125_v61  ;;  %v4868_v61 = vld [vmem:[%s7441_s3 + $0x70] ss:$28 sps:$4 sm:$0xff]   ;;  %7688 = vst [vmem:[#allocation83_spill] sm:$0xff] %v4896_v19  ;;  %v1146_v27 = vsel %vm479_vm2, %v4466_v35, %v4817_v43 }
 0x229   :  { %1629 = vrot.lane.b32.xlu1 %v4812_v52, %s3842_s26  ;;  %7686 = vst [vmem:[#allocation81_spill] sm:$0xff] %v4868_v61  ;;  %v4885_v63 = vmul.bf16 %v4868_v61, %v1189_v57  ;;  %v3716_v57 = vld [vmem:[%s7441_s3 + $0x1a0] ss:$28 sps:$4 sm:$0xff]   ;;  %7692 = vst [vmem:[#allocation87_spill] sm:$0xff] %v4925_v55 }
 0x22a   :  { %v4826_v62 = vpop.permute.xlu0 %1327  ;;  %v4918_v46 = vmul.bf16 %v3716_v57, %v1317_v18  ;;  %v1114_v18 = vsel %vm445_vm1, %v4449_v28, %v4791_v25  ;;  %v4942_v57 = vmul.bf16 %v3724_v23, %v1146_v27  ;;  %v3726_v28 = vld [vmem:[%s7441_s3 + $0x80] ss:$28 sps:$4 sm:$0xff]  }
 0x22b   :  { %v4833_v34 = vpop.permute.xlu1 %1169  ;;  %v4949_v35 = vmul.bf16 %v3722_v3, %v1114_v18 }
 0x22c   :  { %1835 = vrot.lane.b32.xlu0 %v4824_v15, %s3833_s16  ;;  %7690 = vst [vmem:[#allocation85_spill] sm:$0xff] %v4918_v46  ;;  %v1178_v23 = vsel %vm513_vm3, %v4495_v38, %v4833_v34  ;;  %v4980_v38 = vld [vmem:[%s7441_s3 + $0x124] ss:$28 sps:$4 sm:$0xff]  }
 0x22d   :  { %1935 = vrot.lane.b32.xlu1 %v1408_v17, %s3833_s16  ;;  %v4973_v18 = vmul.bf16 %v3726_v28, %v1178_v23  ;;  %7695 = vst [vmem:[#allocation90_spill] sm:$0xff] %v4980_v38 }
 0x22e   :  { %v4846_v41 = vpop.permute.xlu0 %1107 }
 0x22f   :  { %v4854_v56 = vpop.permute.xlu1 %1201 }
 0x230   :  { %1527 = vrot.lane.b32.xlu0 %v4824_v15, %s3842_s26 }
 0x231   :  { %1821 = vrot.lane.b32.xlu1 %v4849_v22, %s3833_s16 }
 0x232   :  { %v4863_v17 = vpop.permute.xlu0 %1139 }
 0x233   :  { %v4870_v40 = vpop.permute.xlu1 %1233 }
 0x234   :  { %7687 = vst [vmem:[#allocation82_spill] sm:$0xff] %v4870_v40  ;;  %1863 = vrot.lane.b32.xlu0 %v4861_v7, %s3833_s16 }
 0x235   :  { %1513 = vrot.lane.b32.xlu1 %v4849_v22, %s3842_s26 }
 0x236   :  { %v4882_v60 = vpop.permute.xlu0 %1171 }
 0x237   :  { %v4890_v5 = vpop.permute.xlu1 %1265 }
 0x238   :  { %1555 = vrot.lane.b32.xlu0 %v4861_v7, %s3842_s26 }
 0x239   :  { %1849 = vrot.lane.b32.xlu1 %v4885_v63, %s3833_s16 }
 0x23a   :  { %v4901_v61 = vpop.permute.xlu0 %1203 }
 0x23b   :  { %v4909_v58 = vpop.permute.xlu1 %1297 }
 0x23c   :  { %7689 = vst [vmem:[#allocation84_spill] sm:$0xff] %v4909_v58  ;;  %1813 = vrot.lane.b32.xlu0 %v4896_v19, %s3846_s30 }
 0x23d   :  { %1541 = vrot.lane.b32.xlu1 %v4885_v63, %s3842_s26 }
 0x23e   :  { %v4923_v8 = vpop.permute.xlu0 %1577 }
 0x23f   :  { %7691 = vst [vmem:[#allocation86_spill] sm:$0xff] %v4923_v8  ;;  %v4933_v21 = vpop.permute.xlu1 %1329 }
 0x240   :  { %7693 = vst [vmem:[#allocation88_spill] sm:$0xff] %v4933_v21  ;;  %1817 = vrot.lane.b32.xlu0 %v4918_v46, %s3846_s30  ;;  %v1210_v46 = vsel %vm547_vm4, %v4529_v6, %v4854_v56  ;;  %v1240_v6 = vsel %vm579_vm5, %v4500_v51, %v4774_v50  ;;  %v4990_v51 = vld [vmem:[%s7441_s3 + $0x15c] ss:$28 sps:$4 sm:$0xff]  }
 0x241   :  { %1815 = vrot.lane.b32.xlu1 %v4925_v55, %s3846_s30  ;;  %v4966_v27 = vmul.bf16 %v3728_v39, %v1210_v46  ;;  %v1272_v46 = vsel %vm7606_vm6, %v4532_v49, %v4789_v29  ;;  %7696 = vst [vmem:[#allocation91_spill] sm:$0xff] %v4990_v51  ;;  %v1389_v39 = vmul.bf16 %v4980_v38, %v1240_v6  ;;  %v5012_v6 = vld [vmem:[%s7441_s3 + $0x194] ss:$28 sps:$4 sm:$0xff]  }
 0x242   :  { %v4947_v2 = vpop.permute.xlu0 %1517  ;;  %v1396_v23 = vmul.bf16 %v4990_v51, %v1272_v46  ;;  %7700 = vst [vmem:[#allocation95_spill] sm:$0xff] %v5012_v6  ;;  %v1336_v46 = vsel %vm681_vm8, %v4584_v20, %v4826_v62  ;;  %v5021_v51 = vld [vmem:[%s7441_s3 + $0x1cc] ss:$28 sps:$4 sm:$0xff]  }
 0x243   :  { %v4957_v19 = vpop.permute.xlu1 %1515  ;;  %7701 = vst [vmem:[#allocation96_spill] sm:$0xff] %v5021_v51 }
 0x244   :  { %1535 = vrot.lane.b32.xlu0 %v4942_v57, %s3842_s26 }
 0x245   :  { %1521 = vrot.lane.b32.xlu1 %v4949_v35, %s3842_s26 }
 0x246   :  { %v4968_v3 = vpop.permute.xlu0 %1823 }
 0x247   :  { %v4975_v55 = vpop.permute.xlu1 %1825 }
 0x248   :  { %7694 = vst [vmem:[#allocation89_spill] sm:$0xff] %v4975_v55  ;;  %1563 = vrot.lane.b32.xlu0 %v4966_v27, %s3842_s26  ;;  %v1304_v55 = vsel %vm647_vm7, %v4555_v47, %v4809_v4 }
 0x249   :  { %1549 = vrot.lane.b32.xlu1 %v4973_v18, %s3842_s26  ;;  %v1403_v47 = vmul.bf16 %v5012_v6, %v1304_v55  ;;  %v3731_v55 = vld [vmem:[%s7441_s3 + $0x18] ss:$28 sps:$4 sm:$0xff]   ;;  %v1212_v6 = vsel %vm547_vm4, %v4901_v61, %v4705_v26  ;;  %v1180_v26 = vsel %vm513_vm3, %v4882_v60, %v4693_v48 }
 0x24a   :  { %v4995_v28 = vpop.permute.xlu0 %1519 }
 0x24b   :  { %v4998_v8 = vpop.permute.xlu1 %1531 }
 0x24c   :  { %7697 = vst [vmem:[#allocation92_spill] sm:$0xff] %v4998_v8  ;;  %1589 = vrot.lane.b32.xlu0 %v1389_v39, %s3842_s26  ;;  %v1410_v8 = vmul.bf16 %v5021_v51, %v1336_v46  ;;  %v1116_v46 = vsel %vm445_vm1, %v4846_v41, %v4663_v24 }
 0x24d   :  { %1603 = vrot.lane.b32.xlu1 %v1396_v23, %s3842_s26 }
 0x24e   :  { %v5002_v49 = vpop.permute.xlu0 %1827 }
 0x24f   :  { %7698 = vst [vmem:[#allocation93_spill] sm:$0xff] %v5002_v49  ;;  %v5007_v54 = vpop.permute.xlu1 %1837 }
 0x250   :  { %7699 = vst [vmem:[#allocation94_spill] sm:$0xff] %v5007_v54  ;;  %1897 = vrot.lane.b32.xlu0 %v1389_v39, %s3833_s16  ;;  %v3736_v54 = vld [vmem:[%s7441_s3 + $0x50] ss:$28 sps:$4 sm:$0xff]   ;;  %v1148_v39 = vsel %vm479_vm2, %v4863_v17, %v4680_v16  ;;  %v3746_v16 = vld [vmem:[%s7441_s3 + $0xc0] ss:$28 sps:$4 sm:$0xff]  }
 0x251   :  { %1911 = vrot.lane.b32.xlu1 %v1396_v23, %s3833_s16  ;;  %v5046_v51 = vmul.bf16 %v3736_v54, %v1148_v39  ;;  %v3741_v54 = vld [vmem:[%s7441_s3 + $0x88] ss:$28 sps:$4 sm:$0xff]  }
 0x252   :  { %v5025_v38 = vpop.permute.xlu0 %1529  ;;  %v3732_v39 = vld [vmem:[%s7441_s3 + $0x128] ss:$28 sps:$4 sm:$0xff]  }
 0x253   :  { %7702 = vst [vmem:[#allocation97_spill] sm:$0xff] %v5025_v38  ;;  %v5031_v20 = vpop.permute.xlu1 %1533 }
 0x254   :  { %1617 = vrot.lane.b32.xlu0 %v1403_v47, %s3842_s26 }
 0x255   :  { %1631 = vrot.lane.b32.xlu1 %v1410_v8, %s3842_s26 }
 0x256   :  { %v5041_v23 = vpop.permute.xlu0 %1839 }
 0x257   :  { %7703 = vst [vmem:[#allocation98_spill] sm:$0xff] %v5041_v23  ;;  %v5051_v38 = vpop.permute.xlu1 %1841  ;;  %v5059_v23 = vmul.bf16 %v3731_v55, %v1116_v46  ;;  %v1241_v55 = vsel %vm579_vm5, %v4774_v50, %v4870_v40  ;;  %v3737_v46 = vld [vmem:[%s7441_s3 + $0x160] ss:$28 sps:$4 sm:$0xff]   ;;  %v1273_v50 = vsel %vm7606_vm6, %v4789_v29, %v4890_v5  ;;  %v1305_v40 = vsel %vm647_vm7, %v4809_v4, %v4909_v58  ;;  %v3747_v29 = vld [vmem:[%s7441_s3 + $0x1d0] ss:$28 sps:$4 sm:$0xff]  }
 0x258   :  { %7704 = vst [vmem:[#allocation99_spill] sm:$0xff] %v5051_v38  ;;  %1925 = vrot.lane.b32.xlu0 %v1403_v47, %s3833_s16  ;;  %v5072_v47 = vmul.bf16 %v3746_v16, %v1212_v6  ;;  %v5090_v6 = vmul.bf16 %v3732_v39, %v1241_v55  ;;  %v3742_v16 = vld [vmem:[%s7441_s3 + $0x198] ss:$28 sps:$4 sm:$0xff]   ;;  %v1337_v55 = vsel %vm681_vm8, %v4826_v62, %v4933_v21 }
 0x259   :  { %1805 = vrot.lane.b32.xlu1 %v5046_v51, %s3846_s30  ;;  %v5117_v4 = vmul.bf16 %v3742_v16, %v1305_v40 }
 0x25a   :  { %v5064_v24 = vpop.permute.xlu0 %1545  ;;  %7707 = vst [vmem:[#allocation102_spill] sm:$0xff] %v5090_v6 }
 0x25b   :  { %7705 = vst [vmem:[#allocation100_spill] sm:$0xff] %v5064_v24  ;;  %v5074_v38 = vpop.permute.xlu1 %1543  ;;  %v5086_v24 = vmul.bf16 %v3741_v54, %v1180_v26  ;;  %v5107_v54 = vmul.bf16 %v3737_v46, %v1273_v50  ;;  %v3717_v26 = vld [vmem:[%s7441_s3 + $0x1d8] ss:$28 sps:$4 sm:$0xff]   ;;  %7709 = vst [vmem:[#allocation104_spill] sm:$0xff] %v5117_v4  ;;  %v1349_v46 = vsel %vm7570_vm12, %v4703_v53, %v4457_v36  ;;  %v5195_v53 = vld [vmem:[%s7441_s3 + $0x4c] ss:$28 sps:$4 sm:$0xff]  }
 0x25c   :  { %7706 = vst [vmem:[#allocation101_spill] sm:$0xff] %v5074_v38  ;;  %1803 = vrot.lane.b32.xlu0 %v5059_v23, %s3846_s30  ;;  %v5131_v50 = vmul.bf16 %v3747_v29, %v1337_v55  ;;  %v5135_v16 = vmul.bf16 %v3717_v26, %v1349_v46  ;;  %v5153_v29 = vld [vmem:[%s7441_s3 + $0x14] ss:$28 sps:$4 sm:$0xff]   ;;  %v1115_v55 = vsel %vm445_vm1, %v4791_v25, %v4846_v41  ;;  %7719 = vst [vmem:[#allocation114_spill] sm:$0xff] %v5195_v53 }
 0x25d   :  { %1809 = vrot.lane.b32.xlu1 %v5072_v47, %s3846_s30  ;;  %7708 = vst [vmem:[#allocation103_spill] sm:$0xff] %v5107_v54  ;;  %7713 = vst [vmem:[#allocation108_spill] sm:$0xff] %v5153_v29 }
 0x25e   :  { %v5088_v48 = vpop.permute.xlu0 %1851  ;;  %7710 = vst [vmem:[#allocation105_spill] sm:$0xff] %v5131_v50  ;;  %7712 = vst [vmem:[#allocation107_spill] sm:$0xff] %v5135_v16 }
 0x25f   :  { %v5098_v38 = vpop.permute.xlu1 %1853 }
 0x260   :  { %1807 = vrot.lane.b32.xlu0 %v5086_v24, %s3846_s30 }
 0x261   :  { %1591 = vrot.lane.b32.xlu1 %v5090_v6, %s3842_s26 }
 0x262   :  { %v5112_v39 = vpop.permute.xlu0 %1547 }
 0x263   :  { %v5122_v58 = vpop.permute.xlu1 %1559 }
 0x264   :  { %1605 = vrot.lane.b32.xlu0 %v5107_v54, %s3842_s26  ;;  %v1415_v54 = vlaneseq }
 0x265   :  { %1619 = vrot.lane.b32.xlu1 %v5117_v4, %s3842_s26 }
 0x266   :  { %v5133_v40 = vpop.permute.xlu0 %1855 }
 0x267   :  { %7711 = vst [vmem:[#allocation106_spill] sm:$0xff] %v5133_v40  ;;  %v5137_v6 = vpop.permute.xlu1 %1865 }
 0x268   :  { %1633 = vrot.lane.b32.xlu0 %v5131_v50, %s3842_s26 }
 0x269   :  { %1819 = vrot.lane.b32.xlu1 %v5135_v16, %s3846_s30  ;;  %v3753_v16 = vld [vmem:[%s7442_s2 + $0x4] ss:$8 sps:$4 sm:$0xff]  }
 0x26a   :  { %v5143_v36 = vpop.permute.xlu0 %1557  ;;  %3558 = vmatprep.mubr.msk.bf16.mxu0 %vm2436_vm13, %v3753_v16  ;;  %3574 = vmatprep.mubr.msk.bf16.mxu1 %vm2436_vm13, %v3753_v16  ;;  %v1147_v16 = vsel %vm479_vm2, %v4817_v43, %v4863_v17  ;;  %v5226_v17 = vshrl.u32 %v1415_v54, 7 }
 0x26b   :  { %v5145_v62 = vpop.permute.xlu1 %1561  ;;  %v1363_v4 = vmul.bf16 %v5195_v53, %v1147_v16 }
 0x26c   :  { %1937 = vrot.lane.b32.xlu0 %v4812_v52, %s3833_s16  ;;  %7725 = vst [vmem:[#allocation120_spill] sm:$0xff] %v5226_v17  ;;  %v5236_v53 = vsub.s32 0, %v5226_v17 }
 0x26d   :  { %1939 = vrot.lane.b32.xlu1 %v1410_v8, %s3833_s16  ;;  %v1356_v8 = vmul.bf16 %v5153_v29, %v1115_v55 }
 0x26e   :  { %v5155_v26 = vpop.permute.xlu0 %1867  ;;  %7728 = vst [vmem:[#allocation123_spill] sm:$0xff] %v5236_v53 }
 0x26f   :  { %v5160_v46 = vpop.permute.xlu1 %1869 }
 0x270   :  { %7714 = vst [vmem:[#allocation109_spill] sm:$0xff] %v5160_v46  ;;  %439 = vrot.lane.b32.xlu0 %v4161_v0, %s3830_s13 }
 0x271   :  { %441 = vrot.lane.b32.xlu1 %v4163_v1, %s3830_s13 }
 0x272   :  { %v5167_v52 = vpop.permute.xlu0 %1587 }
 0x273   :  { %v5169_v50 = vpop.permute.xlu1 %1585 }
 0x274   :  { %7715 = vst [vmem:[#allocation110_spill] sm:$0xff] %v5169_v50  ;;  %1523 = vrot.lane.b32.xlu0 %v1356_v8, %s3842_s26 }
 0x275   :  { %1525 = vrot.lane.b32.xlu1 %v5059_v23, %s3842_s26 }
 0x276   :  { %v5174_v25 = vpop.permute.xlu0 %1893 }
 0x277   :  { %v5176_v41 = vpop.permute.xlu1 %1891 }
 0x278   :  { %7716 = vst [vmem:[#allocation111_spill] sm:$0xff] %v5176_v41  ;;  %1739 = vrot.lane.b32.xlu0 %v4849_v22, %s3847_s29 }
 0x279   :  { %1829 = vrot.lane.b32.xlu1 %v4949_v35, %s3833_s16 }
 0x27a   :  { %v5186_v55 = vpop.permute.xlu0 %1599 }
 0x27b   :  { %7717 = vst [vmem:[#allocation112_spill] sm:$0xff] %v5186_v55  ;;  %v5189_v21 = vpop.permute.xlu1 %1583 }
 0x27c   :  { %7718 = vst [vmem:[#allocation113_spill] sm:$0xff] %v5189_v21  ;;  %1831 = vrot.lane.b32.xlu0 %v1356_v8, %s3833_s16 }
 0x27d   :  { %443 = vrot.lane.b32.xlu1 %v4129_v59, %s3830_s13 }
 0x27e   :  { %v5199_v22 = vpop.permute.xlu0 %1905 }
 0x27f   :  { %7720 = vst [vmem:[#allocation115_spill] sm:$0xff] %v5199_v22  ;;  %v5201_v35 = vpop.permute.xlu1 %1895 }
 0x280   :  { %1833 = vrot.lane.b32.xlu0 %v5059_v23, %s3833_s16 }
 0x281   :  { %473 = vrot.lane.b32.xlu1 %v4161_v0, %s3831_s14 }
 0x282   :  { %v5210_v8 = vpop.permute.xlu0 %1597 }
 0x283   :  { %7721 = vst [vmem:[#allocation116_spill] sm:$0xff] %v5210_v8  ;;  %v5213_v29 = vpop.permute.xlu1 %1601  ;;  %v1421_v8 = vsub.s32 1, %v5226_v17 }
 0x284   :  { %7722 = vst [vmem:[#allocation117_spill] sm:$0xff] %v5213_v29  ;;  %475 = vrot.lane.b32.xlu0 %v4163_v1, %s3831_s14 }
 0x285   :  { %1537 = vrot.lane.b32.xlu1 %v1363_v4, %s3842_s26 }
 0x286   :  { %v5218_v55 = vpop.permute.xlu0 %1909 }
 0x287   :  { %7723 = vst [vmem:[#allocation118_spill] sm:$0xff] %v5218_v55  ;;  %v5220_v43 = vpop.permute.xlu1 %1907 }
 0x288   :  { %7724 = vst [vmem:[#allocation119_spill] sm:$0xff] %v5220_v43  ;;  %1539 = vrot.lane.b32.xlu0 %v5046_v51, %s3842_s26 }
 0x289   :  { %1741 = vrot.lane.b32.xlu1 %v4824_v15, %s3847_s29  ;;  %v5244_v15 = vld [vmem:[%s7443_s4] sm:$0x7f] }
 0x28a   :  { %v5228_v23 = vpop.permute.xlu0 %1615 }
 0x28b   :  { %7726 = vst [vmem:[#allocation121_spill] sm:$0xff] %v5228_v23  ;;  %v5230_v16 = vpop.permute.xlu1 %1613 }
 0x28c   :  { %7727 = vst [vmem:[#allocation122_spill] sm:$0xff] %v5230_v16  ;;  %1843 = vrot.lane.b32.xlu0 %v4942_v57, %s3833_s16  ;;  %v1418_v57 = vrot.slane %v5244_v15, %v5236_v53  ;;  %v3740_v16 = vld [vmem:[%s7441_s3 + $0x84] ss:$28 sps:$4 sm:$0xff]  }
 0x28d   :  { %1845 = vrot.lane.b32.xlu1 %v1363_v4, %s3833_s16  ;;  %v1422_v4 = vrot.slane %v5244_v15, %v1421_v8 }
 0x28e   :  { %v5239_v21 = vpop.permute.xlu0 %1921  ;;  %vm1443_vm14 = vcmp.eq.s32.totalorder %v1418_v57, 0  ;;  %v7738_v57 = vmov 0  }
 0x28f   :  { %7729 = vst [vmem:[#allocation124_spill] sm:$0xff] %v5239_v21  ;;  %v5246_v54 = vpop.permute.xlu1 %1919  ;;  %vm1444_vm15 = vcmp.eq.s32.totalorder %v1422_v4, 0 }
 0x290   :  { %7730 = vst [vmem:[#allocation125_spill] sm:$0xff] %v5246_v54  ;;  %477 = vrot.lane.b32.xlu0 %v4129_v59, %s3831_s14  ;;  %v1179_v54 = vsel %vm513_vm3, %v4833_v34, %v4882_v60  ;;  %vm2091_vm0 = vmpackc.low %vm1444_vm15, %vm1443_vm14  ;;  %vm1639_vm14 = vcmask 826368  }
 0x291   :  { %1847 = vrot.lane.b32.xlu1 %v5046_v51, %s3833_s16  ;;  %v1370_v51 = vmul.bf16 %v3740_v16, %v1179_v54  ;;  %v5284_v4 = vsel %vm2091_vm0, 65537, %v7738_v57  ;;  %v1425_v54 = vsub.s32 2, %v5226_v17 }
 0x292   :  { %v5258_v22 = vpop.permute.xlu0 %1627 }
 0x293   :  { %7731 = vst [vmem:[#allocation126_spill] sm:$0xff] %v5258_v22  ;;  %v5263_v50 = vpop.permute.xlu1 %1611  ;;  %v5281_v22 = vsub.s32 4, %v5226_v17 }
 0x294   :  { %7732 = vst [vmem:[#allocation127_spill] sm:$0xff] %v5263_v50  ;;  %507 = vrot.lane.b32.xlu0 %v4161_v0, %s3832_s15 }
 0x295   :  { %509 = vrot.lane.b32.xlu1 %v4163_v1, %s3832_s15  ;;  %7737 = vst [vmem:[#allocation132_spill] sm:$0xff] %v5281_v22 }
 0x296   :  { %v5269_v8 = vpop.permute.xlu0 %1933 }
 0x297   :  { %7733 = vst [vmem:[#allocation128_spill] sm:$0xff] %v5269_v8  ;;  %v5271_v21 = vpop.permute.xlu1 %1923  ;;  %v2106_v8 = vrot.slane %v5284_v4, %v5281_v22 }
 0x298   :  { %7734 = vst [vmem:[#allocation129_spill] sm:$0xff] %v5271_v21  ;;  %1551 = vrot.lane.b32.xlu0 %v1370_v51, %s3842_s26 }
 0x299   :  { %1553 = vrot.lane.b32.xlu1 %v5086_v24, %s3842_s26  ;;  %vm5313_vm15 = vcmp.ne.s16.totalorder %v2106_v8, 0 }
 0x29a   :  { %v5276_v34 = vpop.permute.xlu0 %1625 }
 0x29b   :  { %7735 = vst [vmem:[#allocation130_spill] sm:$0xff] %v5276_v34  ;;  %v5278_v60 = vpop.permute.xlu1 %1629  ;;  %v1429_v34 = vsub.s32 3, %v5226_v17  ;;  %v1211_v17 = vsel %vm547_vm4, %v4854_v56, %v4901_v61 }
 0x29c   :  { %7736 = vst [vmem:[#allocation131_spill] sm:$0xff] %v5278_v60  ;;  %1743 = vrot.lane.b32.xlu0 %v4885_v63, %s3847_s29  ;;  %v446_v63 = vsel %vm445_vm1, %v4237_v9, %v4310_v33  ;;  %v1426_v60 = vrot.slane %v5244_v15, %v1425_v54 }
 0x29d   :  { %1857 = vrot.lane.b32.xlu1 %v4973_v18, %s3833_s16  ;;  %v1430_v41 = vrot.slane %v5244_v15, %v1429_v34  ;;  %v1026_v23 = vmul.bf16 %v4485_v30, %v446_v63  ;;  %v1641_v34 = vsel %vm1639_vm14, %v4957_v19, %v4947_v2 }
 0x29e   :  { %v5290_v16 = vpop.permute.xlu0 %1835  ;;  %vm1445_vm0 = vcmp.eq.s32.totalorder %v1426_v60, 0  ;;  %v448_v60 = vsel %vm445_vm1, %v4239_v10, %v4308_v32  ;;  %v7751_v32 = vld [vmem:[#allocation38_spill] sm:$0xff] }
 0x29f   :  { %v5294_v50 = vpop.permute.xlu1 %1935  ;;  %vm1446_vm12 = vcmp.eq.s32.totalorder %v1430_v41, 0 }
 0x2a0   :  { %7739 = vst [vmem:[#allocation133_spill] sm:$0xff] %v5294_v50  ;;  %1859 = vrot.lane.b32.xlu0 %v1370_v51, %s3833_s16  ;;  %v3745_v50 = vld [vmem:[%s7441_s3 + $0xbc] ss:$28 sps:$4 sm:$0xff]   ;;  %vm2092_vm10 = vmpackc.low %vm1446_vm12, %vm1445_vm0 }
 0x2a1   :  { %511 = vrot.lane.b32.xlu1 %v4129_v59, %s3832_s15  ;;  %v1377_v61 = vmul.bf16 %v3745_v50, %v1211_v17 }
 0x2a2   :  { %v5304_v18 = vpop.permute.xlu0 %1527  ;;  %v7943_v51 = vld [vmem:[#allocation130_spill] sm:$0xff] }
 0x2a3   :  { %7740 = vst [vmem:[#allocation134_spill] sm:$0xff] %v5304_v18  ;;  %v5311_v21 = vpop.permute.xlu1 %1821  ;;  %v7780_v18 = vld [vmem:[#allocation27_spill] sm:$0xff] }
 0x2a4   :  { %v1947_v54 = vsel %vm547_vm4, %v5311_v21, %v4968_v3  ;;  %1861 = vrot.lane.b32.xlu0 %v5086_v24, %s3833_s16 }
 0x2a5   :  { %541 = vrot.lane.b32.xlu1 %v4161_v0, %s3833_s16  ;;  %v2135_v30 = vsel %vm5313_vm15, %v1641_v34, %v1947_v54  ;;  %v447_v34 = vsel %vm445_vm1, %v4310_v33, %v4239_v10  ;;  %v5371_v54 = vsel %vm479_vm2, %v4315_v37, %v4245_v11  ;;  %v3750_v10 = vld [vmem:[%s7441_s3 + $0xf4] ss:$28 sps:$4 sm:$0xff]   ;;  %v5384_v33 = vsel %vm513_vm3, %v4255_v14, %v4324_v44 }
 0x2a6   :  { %v5333_v8 = vpop.permute.xlu0 %1863  ;;  %v2198_v56 = vadd.bf16 %v2135_v30, %v1026_v23  ;;  %v2096_v23 = vsel %vm2092_vm10, 65537, %v7738_v57  ;;  %v1028_v44 = vmul.bf16 %v7751_v32, %v448_v60  ;;  %v1642_v57 = vsel %vm1639_vm14, %v4947_v2, %v4995_v28  ;;  %v7757_v32 = vld [vmem:[#allocation39_spill] sm:$0xff]  ;;  %v7758_v60 = vld [vmem:[#allocation41_spill] sm:$0xff]  ;;  %v7759_v2 = vld [vmem:[#allocation48_spill] sm:$0xff] }
 0x2a7   :  { %v5335_v63 = vpop.permute.xlu1 %1513  ;;  %v2110_v17 = vrot.slane %v2096_v23, %v5236_v53  ;;  %v1042_v29 = vmul.bf16 %v7759_v2, %v5384_v33 }
 0x2a8   :  { %2485 = vmatprep.subr.bf16.mxu0 %v2198_v56  ;;  %543 = vrot.lane.b32.xlu0 %v4163_v1, %s3833_s16  ;;  %v7755_v56 = vld [vmem:[#allocation37_spill] sm:$0xff] }
 0x2a9   :  { %1565 = vrot.lane.b32.xlu1 %v1377_v61, %s3842_s26  ;;  %vm5402_vm10 = vcmp.ne.s16.totalorder %v2110_v17, 0  ;;  %v1034_v17 = vmul.bf16 %v7757_v32, %v5371_v54 }
 0x2aa   :  { %v5340_v24 = vpop.permute.xlu0 %1555 }
 0x2ab   :  { %7743 = vst [vmem:[#allocation135_spill] sm:$0xff] %v5340_v24  ;;  %v5342_v0 = vpop.permute.xlu1 %1849 }
 0x2ac   :  { %1567 = vrot.lane.b32.xlu0 %v5072_v47, %s3842_s26 }
 0x2ad   :  { %1745 = vrot.lane.b32.xlu1 %v4861_v7, %s3847_s29  ;;  %v5366_v7 = vsel %vm479_vm2, %v4247_v12, %v4315_v37  ;;  %v5389_v37 = vsel %vm513_vm3, %v4253_v13, %v4326_v45 }
 0x2ae   :  { %v5349_v50 = vpop.permute.xlu0 %1813  ;;  %7746 = vst [vmem:[#allocation138_spill] sm:$0xff] %v5366_v7  ;;  %7748 = vst [vmem:[#allocation140_spill] sm:$0xff] %v5389_v37  ;;  %v7773_v7 = vld [vmem:[#allocation11_spill] sm:$0xff] }
 0x2af   :  { %7744 = vst [vmem:[#allocation136_spill] sm:$0xff] %v5349_v50  ;;  %v5351_v41 = vpop.permute.xlu1 %1541  ;;  %v7754_v50 = vld [vmem:[#allocation10_spill] sm:$0xff] }
 0x2b0   :  { %7745 = vst [vmem:[#allocation137_spill] sm:$0xff] %v5351_v41  ;;  %1871 = vrot.lane.b32.xlu0 %v4966_v27, %s3833_s16  ;;  %v482_v27 = vsel %vm479_vm2, %v4245_v11, %v4317_v42  ;;  %v5394_v11 = vld [vmem:[%s7441_s3 + $0xe0] ss:$28 sps:$4 sm:$0xff]   ;;  %v2114_v42 = vrot.slane %v2096_v23, %v5281_v22  ;;  %v1384_v41 = vmul.bf16 %v3750_v10, %v7754_v50 }
 0x2b1   :  { %1873 = vrot.lane.b32.xlu1 %v1377_v61, %s3833_s16  ;;  %7749 = vst [vmem:[#allocation141_spill] sm:$0xff] %v5394_v11  ;;  %v1027_v11 = vmul.bf16 %v7755_v56, %v447_v34  ;;  %v1035_v24 = vmul.bf16 %v7758_v60, %v482_v27  ;;  %v5425_v50 = vsel %vm513_vm3, %v4326_v45, %v4255_v14  ;;  %v7761_v56 = vld [vmem:[#allocation89_spill] sm:$0xff]  ;;  %v7769_v10 = vld [vmem:[#allocation98_spill] sm:$0xff]  ;;  %v7771_v34 = vld [vmem:[#allocation99_spill] sm:$0xff] }
 0x2b2   :  { %v5376_v30 = vpop.permute.xlu0 %1817  ;;  %v1948_v54 = vsel %vm547_vm4, %v4968_v3, %v7761_v56  ;;  %v7763_v27 = vld [vmem:[#allocation25_spill] sm:$0xff]  ;;  %vm5446_vm12 = vcmp.ne.s16.totalorder %v2114_v42, 0  ;;  %v1949_v3 = vsel %vm547_vm4, %v7761_v56, %v5002_v49  ;;  %v7770_v23 = vld [vmem:[#allocation94_spill] sm:$0xff]  ;;  %v7772_v42 = vld [vmem:[#allocation44_spill] sm:$0xff] }
 0x2b3   :  { %7747 = vst [vmem:[#allocation139_spill] sm:$0xff] %v5376_v30  ;;  %v5398_v61 = vpop.permute.xlu1 %1815  ;;  %v7764_v60 = vld [vmem:[#allocation13_spill] sm:$0xff]  ;;  %v2136_v33 = vsel %vm5402_vm10, %v1642_v57, %v1948_v54  ;;  %v1954_v37 = vsel %vm547_vm4, %v7770_v23, %v7769_v10  ;;  %v1955_v57 = vsel %vm547_vm4, %v7769_v10, %v7771_v34  ;;  %v5468_v56 = vsel %vm547_vm4, %v7763_v27, %v7773_v7  ;;  %v7774_v49 = vld [vmem:[#allocation35_spill] sm:$0xff] }
 0x2b4   :  { %7750 = vst [vmem:[#allocation142_spill] sm:$0xff] %v5398_v61  ;;  %545 = vrot.lane.b32.xlu0 %v4129_v59, %s3833_s16  ;;  %v7776_v61 = vld [vmem:[#allocation26_spill] sm:$0xff] }
 0x2b5   :  { %1875 = vrot.lane.b32.xlu1 %v5072_v47, %s3833_s16  ;;  %v5437_v47 = vsel %vm547_vm4, %v7764_v60, %v7763_v27 }
 0x2b6   :  { %v5432_v32 = vpop.permute.xlu0 %1535  ;;  %7765 = vst [vmem:[#allocation10_spill] sm:$0xff] %v5437_v47  ;;  %v7789_v47 = vld [vmem:[#allocation36_spill] sm:$0xff] }
 0x2b7   :  { %7762 = vst [vmem:[#allocation38_spill] sm:$0xff] %v5432_v32  ;;  %v5441_v2 = vpop.permute.xlu1 %1521  ;;  %v1649_v14 = vsel %vm1639_vm14, %v5031_v20, %v5432_v32  ;;  %v1041_v32 = vmul.bf16 %v7772_v42, %v5425_v50  ;;  %v550_v50 = vsel %vm547_vm4, %v7773_v7, %v7776_v61  ;;  %v7777_v42 = vld [vmem:[#allocation92_spill] sm:$0xff]  ;;  %v7785_v61 = vld [vmem:[#allocation29_spill] sm:$0xff] }
 0x2b8   :  { %7766 = vst [vmem:[#allocation37_spill] sm:$0xff] %v5441_v2  ;;  %v1643_v54 = vsel %vm1639_vm14, %v4995_v28, %v5441_v2  ;;  %1579 = vrot.lane.b32.xlu0 %v1384_v41, %s3842_s26  ;;  %v2144_v34 = vsel %vm5446_vm12, %v1649_v14, %v1955_v57  ;;  %v1648_v27 = vsel %vm1639_vm14, %v7777_v42, %v5031_v20  ;;  %v7782_v14 = vld [vmem:[#allocation28_spill] sm:$0xff] }
 0x2b9   :  { %1581 = vrot.lane.b32.xlu1 %v7774_v49, %s3842_s26  ;;  %v2137_v10 = vsel %vm5446_vm12, %v1643_v54, %v1949_v3  ;;  %v5489_v3 = vsel %vm579_vm5, %v7780_v18, %v7779_v31  ;;  %v5494_v57 = vsel %vm579_vm5, %v7779_v31, %v7782_v14  ;;  %v2199_v54 = vadd.bf16 %v2136_v33, %v1027_v11  ;;  %v7786_v11 = vld [vmem:[#allocation16_spill] sm:$0xff] }
 0x2ba   :  { %v5484_v43 = vpop.permute.xlu0 %1563  ;;  %v2200_v55 = vadd.bf16 %v2137_v10, %v1028_v44  ;;  %7781 = vst [vmem:[#allocation41_spill] sm:$0xff] %v5489_v3  ;;  %v2143_v7 = vsel %vm5402_vm10, %v1648_v27, %v1954_v37  ;;  %v1961_v44 = vsel %vm547_vm4, %v5098_v38, %v5133_v40  ;;  %v7784_v10 = vld [vmem:[#allocation12_spill] sm:$0xff]  ;;  %v2207_v31 = vadd.bf16 %v2144_v34, %v1035_v24  ;;  %v7791_v24 = vld [vmem:[#allocation53_spill] sm:$0xff]  ;;  %v7815_v3 = vld [vmem:[#allocation55_spill] sm:$0xff] }
 0x2bb   :  { %7778 = vst [vmem:[#allocation39_spill] sm:$0xff] %v5484_v43  ;;  %v5498_v2 = vpop.permute.xlu1 %1549  ;;  %v5511_v33 = vsel %vm7606_vm6, %v7786_v11, %v7785_v61  ;;  %v7788_v37 = vld [vmem:[#allocation100_spill] sm:$0xff]  ;;  %v1049_v34 = vmul.bf16 %v7791_v24, %v550_v50  ;;  %v1960_v50 = vsel %vm547_vm4, %v5088_v48, %v5098_v38  ;;  %v1966_v38 = vsel %vm547_vm4, %v5137_v6, %v5155_v26 }
 0x2bc   :  { %7783 = vst [vmem:[#allocation48_spill] sm:$0xff] %v5498_v2  ;;  %v1655_v20 = vsel %vm1639_vm14, %v5112_v39, %v5498_v2  ;;  %2678 = vmatprep.subr.bf16.mxu1 %v2200_v55  ;;  %1747 = vrot.lane.b32.xlu0 %v7784_v10, %s3847_s29  ;;  %7787 = vst [vmem:[#allocation89_spill] sm:$0xff] %v5511_v33  ;;  %v1654_v27 = vsel %vm1639_vm14, %v7788_v37, %v5112_v39  ;;  %v7790_v55 = vld [vmem:[#allocation49_spill] sm:$0xff]  ;;  %v7792_v2 = vld [vmem:[#allocation14_spill] sm:$0xff] }
 0x2bd   :  { %v2151_v40 = vsel %vm5446_vm12, %v1655_v20, %v1961_v44  ;;  %1885 = vrot.lane.b32.xlu1 %v7789_v47, %s3833_s16  ;;  %2679 = vmatpush1.bf16.msra.mxu1 %v2199_v54  ;;  %v1048_v10 = vmul.bf16 %v7790_v55, %v5468_v56  ;;  %v5526_v28 = vsel %vm579_vm5, %v7792_v2, %v7780_v18  ;;  %v7795_v20 = vld [vmem:[#allocation56_spill] sm:$0xff]  ;;  %v7816_v47 = vld [vmem:[#allocation46_spill] sm:$0xff] }
 0x2be   :  { %7793 = vst [vmem:[#allocation25_spill] sm:$0xff] %v5526_v28  ;;  %v1661_v39 = vsel %vm1639_vm14, %v5145_v62, %v5484_v43  ;;  %2680 = vmatprep.subr.bf16.mxu1 %v2207_v31  ;;  %v5531_v44 = vpop.permute.xlu0 %1589  ;;  %v2206_v55 = vadd.bf16 %v2143_v7, %v1034_v17  ;;  %v2150_v31 = vsel %vm5402_vm10, %v1654_v27, %v1960_v50  ;;  %v7797_v17 = vld [vmem:[#allocation30_spill] sm:$0xff]  ;;  %v7798_v7 = vld [vmem:[#allocation17_spill] sm:$0xff]  ;;  %v7804_v50 = vld [vmem:[#allocation32_spill] sm:$0xff] }
 0x2bf   :  { %v5540_v18 = vpop.permute.xlu1 %1603  ;;  %v1967_v54 = vsel %vm547_vm4, %v5155_v26, %v5160_v46  ;;  %v2214_v56 = vadd.bf16 %v2151_v40, %v1042_v29  ;;  %v5553_v43 = vsel %vm7606_vm6, %v7798_v7, %v7797_v17  ;;  %v5565_v40 = vsel %vm7606_vm6, %v7797_v17, %v7786_v11  ;;  %v7801_v29 = vld [vmem:[#allocation19_spill] sm:$0xff]  ;;  %v7809_v17 = vld [vmem:[#allocation33_spill] sm:$0xff]  ;;  %v7810_v7 = vld [vmem:[#allocation20_spill] sm:$0xff] }
 0x2c0   :  { %1887 = vrot.lane.b32.xlu0 %v1384_v41, %s3833_s16  ;;  %7799 = vst [vmem:[#allocation13_spill] sm:$0xff] %v5553_v43  ;;  %v2158_v24 = vsel %vm5446_vm12, %v1661_v39, %v1967_v54  ;;  %7800 = vst [vmem:[#allocation98_spill] sm:$0xff] %v5565_v40  ;;  %v7802_v41 = vld [vmem:[#allocation31_spill] sm:$0xff]  ;;  %v5575_v26 = vsel %vm647_vm7, %v7801_v29, %v7804_v50  ;;  %v7807_v39 = vld [vmem:[#allocation86_spill] sm:$0xff]  ;;  %v5590_v46 = vsel %vm681_vm8, %v7810_v7, %v7809_v17 }
 0x2c1   :  { %1889 = vrot.lane.b32.xlu1 %v7774_v49, %s3833_s16  ;;  %2681 = vmatpush1.bf16.msra.mxu1 %v2206_v55  ;;  %v5570_v27 = vsel %vm647_vm7, %v7802_v41, %v7801_v29  ;;  %7805 = vst [vmem:[#allocation44_spill] sm:$0xff] %v5575_v26  ;;  %v5580_v49 = vld [vmem:[%s7441_s3 + $0x12c] ss:$28 sps:$4 sm:$0xff]   ;;  %v7808_v54 = vld [vmem:[#allocation54_spill] sm:$0xff]  ;;  %7811 = vst [vmem:[#allocation35_spill] sm:$0xff] %v5590_v46  ;;  %v2213_v40 = vadd.bf16 %v2150_v31, %v1041_v32 }
 0x2c2   :  { %7803 = vst [vmem:[#allocation94_spill] sm:$0xff] %v5570_v27  ;;  %7806 = vst [vmem:[#allocation11_spill] sm:$0xff] %v5580_v49  ;;  %v1667_v11 = vsel %vm1639_vm14, %v7808_v54, %v7807_v39  ;;  %2682 = vmatprep.subr.bf16.mxu1 %v2214_v56  ;;  %v5585_v55 = vpop.permute.xlu0 %1897  ;;  %v7812_v27 = vld [vmem:[#allocation58_spill] sm:$0xff]  ;;  %v1660_v43 = vsel %vm1639_vm14, %v5122_v58, %v5145_v62  ;;  %v1973_v7 = vsel %vm547_vm4, %v7816_v47, %v7815_v3  ;;  %v7817_v31 = vld [vmem:[#allocation52_spill] sm:$0xff] }
 0x2c3   :  { %v7813_v29 = vld [vmem:[#allocation82_spill] sm:$0xff]  ;;  %v5598_v28 = vpop.permute.xlu1 %1911  ;;  %v2157_v33 = vsel %vm5402_vm10, %v1660_v43, %v1966_v38  ;;  %v2221_v32 = vadd.bf16 %v2158_v24, %v1049_v34  ;;  %v1972_v3 = vsel %vm547_vm4, %v7817_v31, %v7816_v47  ;;  %v7849_v26 = vld [vmem:[#allocation79_spill] sm:$0xff] }
 0x2c4   :  { %v1242_v41 = vsel %vm579_vm5, %v7813_v29, %v7812_v27  ;;  %v7814_v56 = vld [vmem:[#allocation50_spill] sm:$0xff]  ;;  %575 = vrot.lane.b32.xlu0 %v4163_v1, %s3834_s17  ;;  %v2102_v29 = vrot.slane %v5284_v4, %v5236_v53  ;;  %v2220_v38 = vadd.bf16 %v2157_v33, %v1048_v10  ;;  %v7830_v10 = vld [vmem:[#allocation67_spill] sm:$0xff] }
 0x2c5   :  { %v1666_v39 = vsel %vm1639_vm14, %v7814_v56, %v7808_v54  ;;  %v7818_v27 = vld [vmem:[#allocation42_spill] sm:$0xff]  ;;  %577 = vrot.lane.b32.xlu1 %v4129_v59, %s3834_s17  ;;  %2683 = vmatpush1.bf16.msra.mxu1 %v2213_v40  ;;  %v2165_v54 = vsel %vm5446_vm12, %v1667_v11, %v1973_v7  ;;  %v1391_v2 = vmul.bf16 %v5580_v49, %v1242_v41  ;;  %v7822_v40 = vld [vmem:[#allocation47_spill] sm:$0xff]  ;;  %v7823_v7 = vld [vmem:[#allocation65_spill] sm:$0xff] }
 0x2c6   :  { %v5613_v62 = vsel %vm547_vm4, %v7818_v27, %v7817_v31  ;;  %2684 = vmatprep.subr.bf16.mxu1 %v2221_v32  ;;  %v5629_v4 = vpop.permute.xlu0 %1617  ;;  %v5634_v53 = vsel %vm1639_vm14, %v7822_v40, %v7814_v56  ;;  %v2164_v11 = vsel %vm5402_vm10, %v1666_v39, %v1972_v3  ;;  %v5641_v24 = vsel %vm579_vm5, %v7782_v14, %v7823_v7  ;;  %v7825_v41 = vld [vmem:[#allocation43_spill] sm:$0xff]  ;;  %v7826_v31 = vld [vmem:[#allocation66_spill] sm:$0xff]  ;;  %v7827_v3 = vld [vmem:[#allocation5_spill] sm:$0xff] }
 0x2c7   :  { %7819 = vst [vmem:[#allocation92_spill] sm:$0xff] %v5613_v62  ;;  %v5643_v47 = vpop.permute.xlu1 %1631  ;;  %v5648_v32 = vsel %vm1639_vm14, %v7825_v41, %v7822_v40  ;;  %v5653_v56 = vsel %vm7606_vm6, %v7785_v61, %v7826_v31  ;;  %v7828_v39 = vld [vmem:[#allocation8_spill] sm:$0xff]  ;;  %v5666_v40 = vsel %vm647_vm7, %v7804_v50, %v7830_v10  ;;  %v7831_v41 = vld [vmem:[#allocation71_spill] sm:$0xff]  ;;  %v7832_v31 = vld [vmem:[#allocation70_spill] sm:$0xff]  ;;  %vm5676_vm0 = vcmp.ne.s16.totalorder %v2102_v29, 0 }
 0x2c8   :  { %7824 = vst [vmem:[#allocation15_spill] sm:$0xff] %v5643_v47  ;;  %1593 = vrot.lane.b32.xlu0 %v1391_v2, %s3842_s26  ;;  %v7829_v49 = vmul.bf16 %v7827_v3, %v7828_v39  ;;  %v5671_v61 = vsel %vm479_vm2, %v7831_v41, %v4247_v12  ;;  %v461_v3 = vsel %vm445_vm1, %v7832_v31, %v4237_v9  ;;  %v7836_v39 = vld [vmem:[#allocation2_spill] sm:$0xff]  ;;  %v7841_v9 = vld [vmem:[#allocation72_spill] sm:$0xff]  ;;  %v7843_v31 = vld [vmem:[#allocation91_spill] sm:$0xff] }
 0x2c9   :  { %2685 = vmatpush1.bf16.msra.mxu1 %v2220_v38  ;;  %v7837_v50 = vld [vmem:[#allocation6_spill] sm:$0xff]  ;;  %v5695_v29 = vsel %vm513_vm3, %v7841_v9, %v4253_v13  ;;  %v1025_v43 = vmul.bf16 %v7849_v26, %v461_v3  ;;  %v7852_v47 = vld [vmem:[#allocation81_spill] sm:$0xff] }
 0x2ca   :  { %v2228_v14 = vadd.bf16 %v2165_v54, %v7829_v49  ;;  %v7835_v54 = vld [vmem:[#allocation83_spill] sm:$0xff]  ;;  %v7838_v33 = vmul.bf16 %v7836_v39, %v7837_v50  ;;  %v7839_v7 = vld [vmem:[#allocation90_spill] sm:$0xff]  ;;  %v1039_v62 = vmul.bf16 %v7852_v47, %v5695_v29  ;;  %v7855_v3 = vld [vmem:[#allocation101_spill] sm:$0xff] }
 0x2cb   :  { %1595 = vrot.lane.b32.xlu1 %v7835_v54, %s3842_s26  ;;  %v7840_v41 = vld [vmem:[#allocation74_spill] sm:$0xff]  ;;  %v7844_v39 = vld [vmem:[#allocation75_spill] sm:$0xff]  ;;  %v1806_v9 = vpop.permute.xlu1 %1805  ;;  %v1653_v47 = vsel %vm1639_vm14, %v7855_v3, %v7788_v37  ;;  %v1965_v37 = vsel %vm547_vm4, %v5333_v8, %v5137_v6  ;;  %v1978_v6 = vsel %vm547_vm4, %v5174_v25, %v5201_v35 }
 0x2cc   :  { %v2227_v10 = vadd.bf16 %v2164_v11, %v7838_v33  ;;  %v5690_v46 = vsel %vm547_vm4, %v7840_v41, %v7764_v60  ;;  %v5700_v38 = vld [vmem:[%s7441_s3 + $0x164] ss:$28 sps:$4 sm:$0xff]   ;;  %2686 = vmatprep.subr.bf16.mxu1 %v2228_v14  ;;  %v5702_v11 = vpop.permute.xlu0 %1925  ;;  %v5709_v60 = vsel %vm547_vm4, %v7844_v39, %v7818_v27  ;;  %v7845_v50 = vld [vmem:[#allocation59_spill] sm:$0xff]  ;;  %v1953_v41 = vsel %vm547_vm4, %v5290_v16, %v7770_v23  ;;  %v7846_v14 = vld [vmem:[#allocation68_spill] sm:$0xff] }
 0x2cd   :  { %7842 = vst [vmem:[#allocation27_spill] sm:$0xff] %v5700_v38  ;;  %v1274_v13 = vsel %vm7606_vm6, %v4890_v5, %v7845_v50  ;;  %v5720_v12 = vsel %vm681_vm8, %v7809_v17, %v7846_v14  ;;  %v7847_v33 = vld [vmem:[#allocation95_spill] sm:$0xff]  ;;  %v7848_v27 = vld [vmem:[#allocation78_spill] sm:$0xff]  ;;  %v7850_v5 = vld [vmem:[#allocation60_spill] sm:$0xff] }
 0x2ce   :  { %v1032_v39 = vmul.bf16 %v7848_v27, %v5671_v61  ;;  %1749 = vrot.lane.b32.xlu0 %v7850_v5, %s3847_s29  ;;  %v7851_v50 = vld [vmem:[#allocation80_spill] sm:$0xff]  ;;  %v7853_v17 = vld [vmem:[#allocation97_spill] sm:$0xff]  ;;  %v7854_v34 = vld [vmem:[#allocation102_spill] sm:$0xff]  ;;  %2687 = vmatpush1.bf16.msra.mxu1 %v2227_v10  ;;  %v5743_v61 = vmul.bf16 %v5700_v38, %v1274_v13  ;;  %v1959_v10 = vsel %vm547_vm4, %v5342_v0, %v5088_v48 }
 0x2cf   :  { %v1647_v14 = vsel %vm1639_vm14, %v7853_v17, %v7777_v42  ;;  %1899 = vrot.lane.b32.xlu1 %v7854_v34, %s3833_s16  ;;  %v1640_v34 = vsel %vm1639_vm14, %v5335_v63, %v4957_v19  ;;  %v2061_v13 = vsel %vm547_vm4, %v1806_v9, %v5290_v16  ;;  %v1810_v27 = vpop.permute.xlu1 %1809  ;;  %v7856_v16 = vld [vmem:[#allocation134_spill] sm:$0xff]  ;;  %v7860_v48 = vld [vmem:[#allocation40_spill] sm:$0xff]  ;;  %v2149_v22 = vsel %vm5313_vm15, %v1653_v47, %v1959_v10 }
 0x2d0   :  { %v1804_v29 = vpop.permute.xlu0 %1803  ;;  %v2142_v42 = vsel %vm5313_vm15, %v1647_v14, %v1953_v41  ;;  %v1672_v41 = vsel %vm1639_vm14, %v5167_v52, %v5531_v44  ;;  %v1646_v63 = vsel %vm1639_vm14, %v7856_v16, %v7853_v17  ;;  %v7857_v14 = vld [vmem:[#allocation4_spill] sm:$0xff]  ;;  %v7861_v23 = vld [vmem:[#allocation138_spill] sm:$0xff] }
 0x2d1   :  { %v2057_v5 = vsel %vm547_vm4, %v1804_v29, %v5311_v21  ;;  %v1659_v21 = vsel %vm1639_vm14, %v5143_v36, %v5122_v58  ;;  %v7859_v29 = vld [vmem:[#allocation119_spill] sm:$0xff]  ;;  %v7862_v26 = vmul.bf16 %v7860_v48, %v7861_v23 }
 0x2d2   :  { %v2134_v19 = vsel %vm5676_vm0, %v1640_v34, %v2057_v5  ;;  %1901 = vrot.lane.b32.xlu0 %v1391_v2, %s3833_s16  ;;  %v7858_v2 = vld [vmem:[#allocation118_spill] sm:$0xff]  ;;  %v2141_v5 = vsel %vm5676_vm0, %v1646_v63, %v2061_v13  ;;  %v2156_v23 = vsel %vm5313_vm15, %v1659_v21, %v1965_v37  ;;  %v7866_v37 = vld [vmem:[#allocation137_spill] sm:$0xff]  ;;  %v7870_v63 = vmul.bf16 %v7795_v20, %v5494_v57 }
 0x2d3   :  { %v2197_v9 = vadd.bf16 %v2134_v19, %v1025_v43  ;;  %592 = vrot.lane.b32.xlu1 %v7857_v14, %s3838_s21  ;;  %v1984_v34 = vsel %vm547_vm4, %v7859_v29, %v7858_v2  ;;  %v2205_v38 = vadd.bf16 %v2142_v42, %v7862_v26  ;;  %v7863_v43 = vld [vmem:[#allocation117_spill] sm:$0xff]  ;;  %v2171_v19 = vsel %vm5402_vm10, %v1672_v41, %v1978_v6  ;;  %v5797_v16 = vpop.permute.xlu1 %1591  ;;  %v7864_v26 = vld [vmem:[#allocation135_spill] sm:$0xff]  ;;  %v7868_v6 = vld [vmem:[#allocation140_spill] sm:$0xff] }
 0x2d4   :  { %v1808_v58 = vpop.permute.xlu0 %1807  ;;  %v1678_v17 = vsel %vm1639_vm14, %v7863_v43, %v5540_v18  ;;  %v1658_v47 = vsel %vm1639_vm14, %v7864_v26, %v5143_v36  ;;  %v1979_v42 = vsel %vm547_vm4, %v5201_v35, %v5585_v55  ;;  %v1673_v10 = vsel %vm1639_vm14, %v5531_v44, %v5797_v16  ;;  %v7867_v35 = vld [vmem:[#allocation45_spill] sm:$0xff] }
 0x2d5   :  { %v2065_v13 = vsel %vm547_vm4, %v1808_v58, %v5342_v0  ;;  %2486 = vmatpush1.bf16.msra.mxu0 %v2197_v9  ;;  %v7865_v0 = vld [vmem:[#allocation120_spill] sm:$0xff]  ;;  %v1652_v48 = vsel %vm1639_vm14, %v7866_v37, %v7855_v3  ;;  %v2204_v21 = vadd.bf16 %v2141_v5, %v1032_v39  ;;  %v2172_v36 = vsel %vm5446_vm12, %v1673_v10, %v1979_v42  ;;  %v7872_v26 = vld [vmem:[#allocation121_spill] sm:$0xff]  ;;  %v7876_v10 = vld [vmem:[#allocation10_spill] sm:$0xff] }
 0x2d6   :  { %2487 = vmatprep.subr.bf16.mxu0 %v2205_v38  ;;  %1903 = vrot.lane.b32.xlu0 %v7835_v54, %s3833_s16  ;;  %v1437_v41 = vsub.s32 5, %v7865_v0  ;;  %v7869_v44 = vmul.bf16 %v7867_v35, %v7868_v6  ;;  %v2178_v54 = vsel %vm5402_vm10, %v1678_v17, %v1984_v34  ;;  %v2234_v9 = vadd.bf16 %v2171_v19, %v7870_v63  ;;  %v7878_v35 = vld [vmem:[#allocation111_spill] sm:$0xff]  ;;  %v7880_v6 = vld [vmem:[#allocation64_spill] sm:$0xff] }
 0x2d7   :  { %609 = vrot.lane.b32.xlu1 %v4163_v1, %s3835_s18  ;;  %v2148_v39 = vsel %vm5676_vm0, %v1652_v48, %v2065_v13  ;;  %v7871_v5 = vmul.bf16 %v7839_v7, %v5641_v24  ;;  %v1684_v34 = vsel %vm1639_vm14, %v7872_v26, %v5629_v4  ;;  %v2069_v57 = vsel %vm547_vm4, %v1810_v27, %v5333_v8  ;;  %v5845_v20 = vpop.permute.xlu1 %1619  ;;  %v7873_v24 = vld [vmem:[#allocation129_spill] sm:$0xff] }
 0x2d8   :  { %v2212_v38 = vadd.bf16 %v2149_v22, %v7869_v44  ;;  %v5832_v3 = vpop.permute.xlu0 %1605  ;;  %v1985_v22 = vsel %vm547_vm4, %v7858_v2, %v5598_v28  ;;  %v1991_v7 = vsel %vm547_vm4, %v7873_v24, %v5702_v11  ;;  %v1685_v2 = vsel %vm1639_vm14, %v5629_v4, %v5845_v20  ;;  %v7881_v44 = vld [vmem:[#allocation89_spill] sm:$0xff] }
 0x2d9   :  { %v2235_v58 = vadd.bf16 %v2172_v36, %v7871_v5  ;;  %v1679_v17 = vsel %vm1639_vm14, %v5540_v18, %v5832_v3  ;;  %2488 = vmatpush1.bf16.msra.mxu0 %v2204_v21  ;;  %v2211_v8 = vadd.bf16 %v2148_v39, %v1039_v62  ;;  %v2186_v27 = vsel %vm5446_vm12, %v1685_v2, %v1991_v7  ;;  %v7875_v62 = vld [vmem:[#allocation51_spill] sm:$0xff] }
 0x2da   :  { %v2179_v19 = vsel %vm5446_vm12, %v1679_v17, %v1985_v22  ;;  %2489 = vmatprep.subr.bf16.mxu0 %v2212_v38  ;;  %v7874_v18 = vmul.bf16 %v7843_v31, %v5653_v56  ;;  %v2155_v4 = vsel %vm5676_vm0, %v1658_v47, %v2069_v57  ;;  %611 = vrot.lane.b32.xlu0 %v4129_v59, %s3835_s18  ;;  %v1441_v36 = vsub.s32 6, %v7865_v0  ;;  %v7879_v31 = vld [vmem:[#allocation124_spill] sm:$0xff]  ;;  %v7885_v5 = vld [vmem:[#allocation3_spill] sm:$0xff] }
 0x2db   :  { %2688 = vmatprep.subr.bf16.mxu1 %v2235_v58  ;;  %1607 = vrot.lane.b32.xlu1 %v5743_v61, %s3842_s26  ;;  %v7877_v37 = vmul.bf16 %v7875_v62, %v7876_v10  ;;  %v1438_v21 = vrot.slane %v5244_v15, %v1437_v41  ;;  %v1977_v56 = vsel %vm547_vm4, %v7878_v35, %v5174_v25  ;;  %v7886_v58 = vld [vmem:[#allocation7_spill] sm:$0xff] }
 0x2dc   :  { %2689 = vmatpush1.bf16.msra.mxu1 %v2234_v9  ;;  %v2242_v13 = vadd.bf16 %v2179_v19, %v7874_v18  ;;  %v5869_v42 = vpop.permute.xlu0 %1633  ;;  %v1990_v47 = vsel %vm547_vm4, %v7879_v31, %v7873_v24  ;;  %v7882_v38 = vmul.bf16 %v7880_v6, %v7881_v44  ;;  %v5885_v9 = vpop.permute.xlu1 %1819  ;;  %v7884_v25 = vmul.bf16 %v7847_v33, %v5666_v40  ;;  %v7890_v24 = vld [vmem:[#allocation141_spill] sm:$0xff]  ;;  %v7893_v40 = vld [vmem:[#allocation110_spill] sm:$0xff]  ;;  %v7903_v62 = vld [vmem:[#allocation131_spill] sm:$0xff] }
 0x2dd   :  { %v2219_v48 = vadd.bf16 %v2156_v23, %v7877_v37  ;;  %2490 = vmatpush1.bf16.msra.mxu0 %v2211_v8  ;;  %v7883_v23 = vld [vmem:[#allocation96_spill] sm:$0xff]  ;;  %v2185_v0 = vsel %vm5402_vm10, %v1684_v34, %v1990_v47  ;;  %v7887_v22 = vmul.bf16 %v7885_v5, %v7886_v58  ;;  %v7892_v34 = vsel %vm5676_vm0, %v5648_v32, %v5709_v60  ;;  %v7896_v8 = vld [vmem:[#allocation87_spill] sm:$0xff]  ;;  %v7904_v37 = vld [vmem:[#allocation69_spill] sm:$0xff] }
 0x2de   :  { %v2241_v63 = vadd.bf16 %v2178_v54, %v7882_v38  ;;  %2690 = vmatprep.subr.bf16.mxu1 %v2242_v13  ;;  %v1084_v41 = vmul.bf16 %v7883_v23, %v5720_v12  ;;  %v2249_v39 = vadd.bf16 %v2186_v27, %v7884_v25  ;;  %v7888_v54 = vld [vmem:[#allocation92_spill] sm:$0xff]  ;;  %v7891_v12 = vmul.bf16 %v7890_v24, %v7857_v14  ;;  %v7907_v44 = vld [vmem:[#allocation133_spill] sm:$0xff] }
 0x2df   :  { %2491 = vmatprep.subr.bf16.mxu0 %v2219_v48  ;;  %v7889_v57 = vsel %vm5313_vm15, %v5634_v53, %v7888_v54  ;;  %v1671_v33 = vsel %vm1639_vm14, %v7893_v40, %v5167_v52  ;;  %v7894_v2 = vmul.bf16 %v7851_v50, %v5690_v46  ;;  %v7895_v53 = vld [vmem:[#allocation62_spill] sm:$0xff]  ;;  %1609 = vrot.lane.b32.xlu0 %v7896_v8, %s3842_s26  ;;  %v7897_v60 = vld [vmem:[#allocation132_spill] sm:$0xff]  ;;  %vm1448_vm6 = vcmp.eq.s32.totalorder %v1438_v21, 0  ;;  %v7910_v5 = vld [vmem:[#allocation77_spill] sm:$0xff] }
 0x2e0   :  { %v2226_v17 = vadd.bf16 %v7889_v57, %v7887_v22  ;;  %v2225_v7 = vadd.bf16 %v7892_v34, %v7891_v12  ;;  %1751 = vrot.lane.b32.xlu1 %v7895_v53, %s3847_s29  ;;  %2691 = vmatpush1.bf16.msra.mxu1 %v2241_v63  ;;  %v1938_v27 = vpop.permute.xlu0 %1937  ;;  %v2170_v32 = vsel %vm5313_vm15, %v1671_v33, %v1977_v56  ;;  %v7901_v50 = vld [vmem:[#allocation136_spill] sm:$0xff]  ;;  %v5939_v6 = vpop.permute.xlu1 %1939  ;;  %v7915_v12 = vld [vmem:[#allocation57_spill] sm:$0xff] }
 0x2e1   :  { %v2218_v19 = vadd.bf16 %v2155_v4, %v7894_v2  ;;  %2692 = vmatprep.subr.bf16.mxu1 %v2249_v39  ;;  %v7898_v18 = vrot.slane %v5244_v15, %v7897_v60  ;;  %v1442_v46 = vrot.slane %v5244_v15, %v1441_v36  ;;  %v2077_v13 = vsel %vm547_vm4, %v7901_v50, %v7878_v35  ;;  %v7902_v4 = vld [vmem:[#allocation15_spill] sm:$0xff]  ;;  %v7905_v48 = vld [vmem:[#allocation44_spill] sm:$0xff]  ;;  %v7916_v34 = vld [vmem:[#allocation41_spill] sm:$0xff] }
 0x2e2   :  { %v1690_v10 = vsel %vm1639_vm14, %v7903_v62, %v7902_v4  ;;  %v7906_v56 = vmul.bf16 %v7904_v37, %v7905_v48  ;;  %v1996_v38 = vsel %vm547_vm4, %v7907_v44, %v1938_v27  ;;  %v7908_v15 = vld [vmem:[#allocation115_spill] sm:$0xff]  ;;  %v1691_v35 = vsel %vm1639_vm14, %v7902_v4, %v5869_v42  ;;  %v7913_v54 = vld [vmem:[#allocation112_spill] sm:$0xff]  ;;  %v7920_v2 = vld [vmem:[#allocation25_spill] sm:$0xff] }
 0x2e3   :  { %vm5925_vm11 = vcmp.eq.s32.totalorder %v7898_v18, 0  ;;  %2492 = vmatpush1.bf16.msra.mxu0 %v2218_v19  ;;  %v1983_v36 = vsel %vm547_vm4, %v7908_v15, %v7859_v29  ;;  %v1997_v63 = vsel %vm547_vm4, %v1938_v27, %v5939_v6  ;;  %v2192_v23 = vsel %vm5402_vm10, %v1690_v10, %v1996_v38  ;;  %v7911_v29 = vld [vmem:[#allocation35_spill] sm:$0xff]  ;;  %v7921_v53 = vld [vmem:[#allocation13_spill] sm:$0xff]  ;;  %v3802_v50 = vld [vmem:[%s7441_s3 + $0x154] ss:$28 sps:$4 sm:$0xff]  }
 0x2e4   :  { %v2248_v47 = vadd.bf16 %v2185_v0, %v7906_v56  ;;  %2493 = vmatprep.subr.bf16.mxu0 %v2226_v17  ;;  %v7909_v0 = vld [vmem:[#allocation113_spill] sm:$0xff]  ;;  %v2193_v39 = vsel %vm5446_vm12, %v1691_v35, %v1997_v63  ;;  %v7912_v58 = vmul.bf16 %v7910_v5, %v7911_v29  ;;  %1915 = vrot.lane.b32.xlu1 %v5743_v61, %s3833_s16  ;;  %v7914_v17 = vld [vmem:[#allocation103_spill] sm:$0xff]  ;;  %v5970_v45 = vpop.permute.xlu0 %439  ;;  %vm5978_vm10 = vmpackc.low %vm1448_vm6, %vm5925_vm11  ;;  %v5993_v18 = vpop.permute.xlu1 %441  ;;  %vm1449_vm6 = vcmp.eq.s32.totalorder %v1442_v46, 0 }
 0x2e5   :  { %v1670_v25 = vsel %vm1639_vm14, %v7909_v0, %v7893_v40  ;;  %v1677_v30 = vsel %vm1639_vm14, %v7913_v54, %v7863_v43  ;;  %1913 = vrot.lane.b32.xlu0 %v7914_v17, %s3833_s16  ;;  %v2256_v24 = vadd.bf16 %v2193_v39, %v1084_v41  ;;  %v7917_v40 = vmul.bf16 %v7915_v12, %v7916_v34  ;;  %v3800_v43 = vld [vmem:[%s7441_s3 + $0x118] ss:$28 sps:$4 sm:$0xff]   ;;  %v3801_v41 = vld [vmem:[%s7441_s3 + $0x150] ss:$28 sps:$4 sm:$0xff]   ;;  %v7925_v37 = vld [vmem:[#allocation18_spill] sm:$0xff] }
 0x2e6   :  { %v2255_v22 = vadd.bf16 %v2192_v23, %v7912_v58  ;;  %2693 = vmatpush1.bf16.msra.mxu1 %v2248_v47  ;;  %v2169_v57 = vsel %vm5676_vm0, %v1670_v25, %v2077_v13  ;;  %v1060_v19 = vmul.bf16 %v3800_v43, %v7920_v2  ;;  %v1067_v27 = vmul.bf16 %v3801_v41, %v7921_v53  ;;  %v7923_v13 = vld [vmem:[#allocation98_spill] sm:$0xff]  ;;  %v7924_v10 = vld [vmem:[#allocation31_spill] sm:$0xff]  ;;  %v7926_v56 = vld [vmem:[#allocation125_spill] sm:$0xff] }
 0x2e7   :  { %v2233_v33 = vadd.bf16 %v2170_v32, %v7917_v40  ;;  %v7922_v32 = vld [vmem:[#allocation142_spill] sm:$0xff]  ;;  %2494 = vmatpush1.bf16.msra.mxu0 %v2225_v7  ;;  %v2177_v52 = vsel %vm5313_vm15, %v1677_v30, %v1983_v36  ;;  %v1068_v4 = vmul.bf16 %v3802_v50, %v7923_v13  ;;  %v648_v48 = vsel %vm647_vm7, %v7925_v37, %v7924_v10  ;;  %v3803_v38 = vld [vmem:[%s7441_s3 + $0x18c] ss:$28 sps:$4 sm:$0xff]   ;;  %v7928_v35 = vld [vmem:[#allocation116_spill] sm:$0xff] }
 0x2e8   :  { %v2081_v21 = vsel %vm547_vm4, %v7922_v32, %v7908_v15  ;;  %v1989_v47 = vsel %vm547_vm4, %v7926_v56, %v7879_v31  ;;  %2694 = vmatprep.subr.bf16.mxu1 %v2256_v24  ;;  %v6010_v7 = vld [vmem:[%s7442_s2] ss:$8 sps:$4 sm:$0xff]   ;;  %v1676_v63 = vsel %vm1639_vm14, %v7928_v35, %v7913_v54  ;;  %v2232_v23 = vadd.bf16 %v2169_v57, %v1060_v19  ;;  %v6027_v25 = vld [vmem:[%s7442_s2 + $0x14] ss:$8 sps:$4 sm:$0xff]   ;;  %v1526_v12 = vpop.permute.xlu1 %1525  ;;  %vm6054_vm11 = vmpackc.low %vm1449_vm6, %vm1449_vm6 }
 0x2e9   :  { %2495 = vmatprep.subr.bf16.mxu0 %v2233_v33  ;;  %v7927_v15 = vld [vmem:[#allocation94_spill] sm:$0xff]  ;;  %1917 = vrot.lane.b32.xlu1 %v7896_v8, %s3833_s16  ;;  %v7929_v31 = vmov 0   ;;  %v2176_v29 = vsel %vm5676_vm0, %v1676_v63, %v2081_v21  ;;  %v6036_v8 = vpop.permute.xlu0 %1523  ;;  %v2240_v58 = vadd.bf16 %v2177_v52, %v1068_v4  ;;  %v7932_v54 = vld [vmem:[#allocation21_spill] sm:$0xff]  ;;  %v7933_v57 = vld [vmem:[#allocation20_spill] sm:$0xff]  ;;  %vm1766_vm12 = vcmask 957440  }
 0x2ea   :  { %v1075_v36 = vmul.bf16 %v3803_v38, %v7927_v15  ;;  %2695 = vmatpush1.bf16.msra.mxu1 %v2255_v22  ;;  %v2097_v0 = vsel %vm5978_vm10, 65537, %v7929_v31  ;;  %v7930_v39 = vld [vmem:[#allocation122_spill] sm:$0xff]  ;;  %626 = vrot.lane.b32.xlu0 %v7857_v14, %s3839_s22  ;;  %v7934_v17 = vld [vmem:[#allocation139_spill] sm:$0xff]  ;;  %v6061_v33 = vld [vmem:[%s7441_s3 + $0x19c] ss:$28 sps:$4 sm:$0xff]   ;;  %v2239_v52 = vadd.bf16 %v2176_v29, %v1067_v27  ;;  %v2098_v37 = vsel %vm6054_vm11, 65537, %v7929_v31 }
 0x2eb   :  { %v1683_v5 = vsel %vm1639_vm14, %v7930_v39, %v7872_v26  ;;  %3064 = vmatprep.subr.bf16.mxu1 %v7929_v31  ;;  %v7931_v22 = vld [vmem:[#allocation34_spill] sm:$0xff]  ;;  %v2085_v24 = vsel %vm547_vm4, %v7934_v17, %v7926_v56  ;;  %2496 = vmatpush1.bf16.msra.mxu0 %v2232_v23  ;;  %v7937_v61 = vld [vmem:[#allocation61_spill] sm:$0xff]  ;;  %v7938_v43 = vld [vmem:[#allocation84_spill] sm:$0xff]  ;;  %v2122_v50 = vrot.slane %v2097_v0, %v7897_v60 }
 0x2ec   :  { %v6042_v30 = vsel %vm681_vm8, %v7932_v54, %v7931_v22  ;;  %v683_v26 = vsel %vm681_vm8, %v7931_v22, %v7933_v57  ;;  %v2184_v34 = vsel %vm5313_vm15, %v1683_v5, %v1989_v47  ;;  %v1306_v2 = vsel %vm647_vm7, %v7938_v43, %v7937_v61  ;;  %v7939_v19 = vld [vmem:[#allocation128_spill] sm:$0xff]  ;;  %2497 = vmatprep.subr.bf16.mxu0 %v2240_v58  ;;  %v7940_v46 = vld [vmem:[#allocation123_spill] sm:$0xff]  ;;  %v1830_v15 = vpop.permute.xlu1 %1829  ;;  %v3806_v35 = vld [vmem:[%s7441_s3 + $0x1c4] ss:$28 sps:$4 sm:$0xff]  }
 0x2ed   :  { %v1995_v41 = vsel %vm547_vm4, %v7939_v19, %v7907_v44  ;;  %v2118_v53 = vrot.slane %v2097_v0, %v7940_v46  ;;  %2711 = vmatmul.mubr.bf16.vlgmr.msra.gmra.mrb[12].mxu1 %v6010_v7  ;;  %v7941_v32 = vld [vmem:[#allocation127_spill] sm:$0xff]  ;;  %645 = vrot.lane.b32.xlu1 %v4129_v59, %s3836_s19  ;;  %v7942_v44 = vld [vmem:[#allocation126_spill] sm:$0xff]  ;;  %v1740_v10 = vpop.permute.xlu0 %1739  ;;  %v2247_v27 = vadd.bf16 %v2184_v34, %v1075_v36  ;;  %v7944_v5 = vld [vmem:[#allocation85_spill] sm:$0xff] }
 0x2ee   :  { %v1682_v21 = vsel %vm1639_vm14, %v7941_v32, %v7930_v39  ;;  %3575 = vmatprep.mubr.msk.bf16.mxu1 %vm2436_vm13, %v6027_v25  ;;  %v1689_v13 = vsel %vm1639_vm14, %v7942_v44, %v7903_v62  ;;  %643 = vrot.lane.b32.xlu0 %v4163_v1, %s3836_s19  ;;  %v3804_v60 = vld [vmem:[%s7441_s3 + $0x188] ss:$28 sps:$4 sm:$0xff]   ;;  %v3805_v62 = vld [vmem:[%s7441_s3 + $0x1c0] ss:$28 sps:$4 sm:$0xff]   ;;  %v2089_v38 = vsel %vm547_vm4, %v5885_v9, %v7939_v19  ;;  %v6111_v9 = vld [vmem:[%s7442_s2 + $0x10] ss:$8 sps:$4 sm:$0xff]  }
 0x2ef   :  { %v2183_v4 = vsel %vm5676_vm0, %v1682_v21, %v2085_v24  ;;  %v1074_v56 = vmul.bf16 %v3804_v60, %v648_v48  ;;  %v1081_v47 = vmul.bf16 %v3805_v62, %v6042_v30  ;;  %2498 = vmatpush1.bf16.msra.mxu0 %v2239_v52  ;;  %v2191_v36 = vsel %vm5313_vm15, %v1689_v13, %v1995_v41  ;;  %v6126_v22 = vld [vmem:[%s7442_s2 + $0x24] ss:$8 sps:$4 sm:$0xff]   ;;  %v7949_v24 = vld [vmem:[#allocation108_spill] sm:$0xff]  ;;  %v7950_v40 = vld [vmem:[#allocation93_spill] sm:$0xff] }
 0x2f0   :  { %v1082_v48 = vmul.bf16 %v3806_v35, %v683_v26  ;;  %v1405_v63 = vmul.bf16 %v6061_v33, %v1306_v2  ;;  %v450_v23 = vsel %vm445_vm1, %v5970_v45, %v5993_v18  ;;  %2499 = vmatprep.subr.bf16.mxu0 %v2247_v27  ;;  %v1688_v0 = vsel %vm1639_vm14, %v7943_v51, %v7942_v44  ;;  %v444_v49 = vpop.permute.xlu1 %443  ;;  %v7952_v32 = vld [vmem:[#allocation37_spill] sm:$0xff]  ;;  %v7953_v52 = vld [vmem:[#allocation104_spill] sm:$0xff] }
 0x2f1   :  { %v2246_v39 = vadd.bf16 %v2183_v4, %v1074_v56  ;;  %1623 = vrot.lane.b32.xlu1 %v7944_v5, %s3842_s26  ;;  %vm6118_vm15 = vcmp.ne.s16.totalorder %v2122_v50, 0  ;;  %v2126_v58 = vrot.slane %v2098_v37, %v7940_v46  ;;  %v2190_v54 = vsel %vm5676_vm0, %v1688_v0, %v2089_v38  ;;  %v1832_v26 = vpop.permute.xlu0 %1831  ;;  %v7956_v44 = vld [vmem:[#allocation73_spill] sm:$0xff]  ;;  %v6191_v35 = vld [vmem:[%s7441_s3 + $0x1d4] ss:$28 sps:$4 sm:$0xff]  }
 0x2f2   :  { %v1645_v30 = vsel %vm1639_vm14, %v6036_v8, %v1526_v12  ;;  %vm6132_vm10 = vcmp.ne.s16.totalorder %v2118_v53, 0  ;;  %1621 = vrot.lane.b32.xlu0 %v1405_v63, %s3842_s26  ;;  %v2254_v17 = vadd.bf16 %v2191_v36, %v1082_v48  ;;  %v1030_v34 = vmul.bf16 %v7949_v24, %v450_v23  ;;  %v7951_v12 = vld [vmem:[#allocation22_spill] sm:$0xff]  ;;  %v3808_v27 = vld [vmem:[%s7441_s3 + $0x18] ss:$28 sps:$4 sm:$0xff]   ;;  %v7957_v23 = vld [vmem:[#allocation63_spill] sm:$0xff] }
 0x2f3   :  { %v1950_v61 = vsel %vm547_vm4, %v7950_v40, %v1830_v15  ;;  %v1769_v43 = vsel %vm1766_vm12, %v1645_v30, %v1740_v10  ;;  %v1951_v2 = vsel %vm547_vm4, %v1830_v15, %v1832_v26  ;;  %2500 = vmatpush1.bf16.msra.mxu0 %v2246_v39  ;;  %v449_v19 = vsel %vm445_vm1, %v7951_v12, %v5970_v45  ;;  %v6179_v15 = vld [vmem:[%s7442_s2 + $0x20] ss:$8 sps:$4 sm:$0xff]   ;;  %v7958_v51 = vld [vmem:[#allocation88_spill] sm:$0xff] }
 0x2f4   :  { %v451_v41 = vsel %vm445_vm1, %v5993_v18, %v444_v49  ;;  %v2139_v46 = vsel %vm6118_vm15, %v1769_v43, %v1951_v2  ;;  %2501 = vmatprep.subr.bf16.mxu0 %v2254_v17  ;;  %v2253_v53 = vadd.bf16 %v2190_v54, %v1081_v47  ;;  %v1644_v21 = vsel %vm1639_vm14, %v7952_v32, %v6036_v8  ;;  %v3807_v8 = vld [vmem:[%s7441_s3 + $0x10] ss:$28 sps:$4 sm:$0xff]   ;;  %v474_v60 = vpop.permute.xlu1 %473  ;;  %v3809_v40 = vld [vmem:[%s7441_s3 + $0x48] ss:$28 sps:$4 sm:$0xff]  }
 0x2f5   :  { %2721 = vmatmul.mubr.bf16.gmra.mrb[16].mxu1 %v6111_v9  ;;  %1927 = vrot.lane.b32.xlu1 %v7953_v52, %s3833_s16  ;;  %vm6155_vm0 = vcmp.ne.s16.totalorder %v2126_v58, 0  ;;  %v2202_v45 = vadd.bf16 %v2139_v46, %v1030_v34  ;;  %v2138_v18 = vsel %vm6132_vm10, %v1644_v21, %v1950_v61  ;;  %v1834_v13 = vpop.permute.xlu0 %1833  ;;  %v1029_v4 = vmul.bf16 %v3807_v8, %v449_v19  ;;  %v7959_v54 = vld [vmem:[#allocation23_spill] sm:$0xff]  ;;  %v7960_v43 = vld [vmem:[#allocation38_spill] sm:$0xff] }
 0x2f6   :  { %3576 = vmatprep.mubr.msk.bf16.mxu1 %vm2436_vm13, %v6126_v22  ;;  %1753 = vrot.lane.b32.xlu0 %v7956_v44, %s3847_s29  ;;  %v1031_v37 = vmul.bf16 %v3808_v27, %v451_v41  ;;  %v1952_v56 = vsel %vm547_vm4, %v1832_v26, %v1834_v13  ;;  %v483_v30 = vsel %vm479_vm2, %v7959_v54, %v474_v60  ;;  %v6223_v34 = vld [vmem:[%s7442_s2 + $0x44] ss:$8 sps:$4 sm:$0xff]   ;;  %vm7978_vm1 = vcmask 1031168  }
 0x2f7   :  { %2502 = vmatpush1.bf16.msra.mxu0 %v2253_v53  ;;  %v2140_v62 = vsel %vm6155_vm0, %v1740_v10, %v1952_v56  ;;  %v2201_v47 = vadd.bf16 %v2138_v18, %v1029_v4  ;;  %v6186_v10 = vld [vmem:[%s7442_s2 + $0x34] ss:$8 sps:$4 sm:$0xff]   ;;  %v1036_v61 = vmul.bf16 %v3809_v40, %v483_v30  ;;  %v7961_v12 = vld [vmem:[#allocation99_spill] sm:$0xff]  ;;  %v7962_v41 = vld [vmem:[#allocation114_spill] sm:$0xff] }
 0x2f8   :  { %2871 = vmatprep.subr.bf16.mxu0 %v2202_v45  ;;  %v2203_v38 = vadd.bf16 %v2140_v62, %v1031_v37  ;;  %v1538_v48 = vpop.permute.xlu1 %1537  ;;  %v7963_v18 = vld [vmem:[#allocation76_spill] sm:$0xff]  ;;  %v7964_v44 = vld [vmem:[#allocation107_spill] sm:$0xff] }
 0x2f9   :  { %660 = vrot.lane.b32.xlu1 %v7857_v14, %s3840_s23  ;;  %v476_v36 = vpop.permute.xlu0 %475  ;;  %v1650_v49 = vsel %vm1639_vm14, %v7960_v43, %v1538_v48 }
 0x2fa   :  { %1929 = vrot.lane.b32.xlu0 %v1405_v63, %s3833_s16  ;;  %2518 = vmatmul.mubr.bf16.vlgmr.msra.gmra.mrb[16].mxu0 %v6010_v7  ;;  %v1338_v63 = vsel %vm681_vm8, %v7958_v51, %v7957_v23  ;;  %v484_v26 = vsel %vm479_vm2, %v474_v60, %v476_v36  ;;  %v3810_v60 = vld [vmem:[%s7441_s3 + $0x50] ss:$28 sps:$4 sm:$0xff]   ;;  %v6269_v51 = vld [vmem:[%s7442_s2 + $0x54] ss:$8 sps:$4 sm:$0xff]  }
 0x2fb   :  { %2872 = vmatpush1.bf16.msra.mxu0 %v2201_v47  ;;  %3065 = vmatpush1.bf16.msra.mxu1 %v2203_v38  ;;  %v1412_v39 = vmul.bf16 %v6191_v35, %v1338_v63  ;;  %v1037_v46 = vmul.bf16 %v7962_v41, %v484_v26  ;;  %v7965_v38 = vld [vmem:[#allocation105_spill] sm:$0xff]  ;;  %v7966_v26 = vld [vmem:[#allocation106_spill] sm:$0xff] }
 0x2fc   :  { %3066 = vmatprep.subr.bf16.mxu1 %v7929_v31  ;;  %3559 = vmatprep.mubr.msk.bf16.mxu0 %vm2436_vm13, %v6027_v25  ;;  %v1742_v58 = vpop.permute.xlu1 %1741 }
 0x2fd   :  { %677 = vrot.lane.b32.xlu1 %v4163_v1, %s3837_s20  ;;  %2731 = vmatmul.mubr.bf16.gmra.mrb[20].mxu1 %v6179_v15  ;;  %v1540_v0 = vpop.permute.xlu0 %1539 }
 0x2fe   :  { %1931 = vrot.lane.b32.xlu0 %v7944_v5, %s3833_s16  ;;  %3577 = vmatprep.mubr.msk.bf16.mxu1 %vm2436_vm13, %v6186_v10  ;;  %v1651_v17 = vsel %vm1639_vm14, %v1538_v48, %v1540_v0  ;;  %v6215_v5 = vld [vmem:[%s7442_s2 + $0x30] ss:$8 sps:$4 sm:$0xff]  }
 0x2ff   :  { %v1773_v53 = vsel %vm1766_vm12, %v1651_v17, %v1742_v58 }
 0x300   :  { %v1846_v2 = vpop.permute.xlu1 %1845 }
 0x301   :  { %1635 = vrot.lane.b32.xlu1 %v1412_v39, %s3842_s26  ;;  %v1844_v24 = vpop.permute.xlu0 %1843 }
 0x302   :  { %679 = vrot.lane.b32.xlu0 %v4129_v59, %s3837_s20  ;;  %2528 = vmatmul.mubr.bf16.gmra.mrb[20].mxu0 %v6111_v9  ;;  %v1956_v19 = vsel %vm547_vm4, %v7961_v12, %v1844_v24  ;;  %v1957_v32 = vsel %vm547_vm4, %v1844_v24, %v1846_v2  ;;  %v7967_v24 = vld [vmem:[#allocation24_spill] sm:$0xff]  ;;  %v3811_v12 = vld [vmem:[%s7441_s3 + $0x84] ss:$28 sps:$4 sm:$0xff]  }
 0x303   :  { %3560 = vmatprep.mubr.msk.bf16.mxu0 %vm2436_vm13, %v6126_v22  ;;  %v2145_v21 = vsel %vm6132_vm10, %v1650_v49, %v1956_v19  ;;  %v2146_v52 = vsel %vm6118_vm15, %v1773_v53, %v1957_v32 }
 0x304   :  { %v2208_v45 = vadd.bf16 %v2145_v21, %v1036_v61  ;;  %v2209_v8 = vadd.bf16 %v2146_v52, %v1037_v46  ;;  %v1848_v4 = vpop.permute.xlu1 %1847  ;;  %v7968_v61 = vld [vmem:[#allocation48_spill] sm:$0xff]  ;;  %v3812_v21 = vld [vmem:[%s7441_s3 + $0x80] ss:$28 sps:$4 sm:$0xff]  }
 0x305   :  { %1755 = vrot.lane.b32.xlu1 %v7963_v18, %s3847_s29  ;;  %2741 = vmatmul.mubr.bf16.gmra.mrb[24].mxu1 %v6215_v5  ;;  %v478_v13 = vpop.permute.xlu0 %477  ;;  %v1958_v37 = vsel %vm547_vm4, %v1846_v2, %v1848_v4  ;;  %v6320_v4 = vld [vmem:[%s7442_s2 + $0x60] ss:$8 sps:$4 sm:$0xff]  }
 0x306   :  { %1637 = vrot.lane.b32.xlu0 %v7964_v44, %s3842_s26  ;;  %3578 = vmatprep.mubr.msk.bf16.mxu1 %vm2436_vm13, %v6223_v34  ;;  %v485_v27 = vsel %vm479_vm2, %v476_v36, %v478_v13  ;;  %v2147_v62 = vsel %vm6155_vm0, %v1742_v58, %v1958_v37  ;;  %v6262_v36 = vld [vmem:[%s7442_s2 + $0x40] ss:$8 sps:$4 sm:$0xff]   ;;  %v6283_v58 = vld [vmem:[%s7442_s2 + $0x50] ss:$8 sps:$4 sm:$0xff]   ;;  %vm7979_vm2 = vmmov %vm7978_vm1 }
 0x307   :  { %v1038_v56 = vmul.bf16 %v3810_v60, %v485_v27  ;;  %2873 = vmatprep.subr.bf16.mxu0 %v2209_v8  ;;  %v3813_v27 = vld [vmem:[%s7441_s3 + $0x88] ss:$28 sps:$4 sm:$0xff]  }
 0x308   :  { %2874 = vmatpush1.bf16.msra.mxu0 %v2208_v45  ;;  %v510_v23 = vpop.permute.xlu1 %509 }
 0x309   :  { %1943 = vrot.lane.b32.xlu1 %v1412_v39, %s3833_s16  ;;  %v2210_v47 = vadd.bf16 %v2147_v62, %v1038_v56  ;;  %v508_v48 = vpop.permute.xlu0 %507  ;;  %v6331_v62 = vld [vmem:[%s7442_s2 + $0x74] ss:$8 sps:$4 sm:$0xff]  }
 0x30a   :  { %1941 = vrot.lane.b32.xlu0 %v7965_v38, %s3833_s16  ;;  %2538 = vmatmul.mubr.bf16.gmra.mrb[24].mxu0 %v6179_v15  ;;  %v518_v30 = vsel %vm513_vm3, %v508_v48, %v510_v23  ;;  %v517_v40 = vsel %vm513_vm3, %v7967_v24, %v508_v48 }
 0x30b   :  { %3561 = vmatprep.mubr.msk.bf16.mxu0 %vm2436_vm13, %v6186_v10  ;;  %3067 = vmatpush1.bf16.msra.mxu1 %v2210_v47  ;;  %v1044_v19 = vmul.bf16 %v3811_v12, %v518_v30  ;;  %v1043_v52 = vmul.bf16 %v3812_v21, %v517_v40  ;;  %v7969_v30 = vld [vmem:[#allocation26_spill] sm:$0xff] }
 0x30c   :  { %3068 = vmatprep.subr.bf16.mxu1 %v7929_v31  ;;  %v1554_v0 = vpop.permute.xlu1 %1553 }
 0x30d   :  { %1945 = vrot.lane.b32.xlu1 %v7964_v44, %s3833_s16  ;;  %v1552_v63 = vpop.permute.xlu0 %1551  ;;  %2751 = vmatmul.mubr.bf16.gmra.mrb[28].mxu1 %v6262_v36 }
 0x30e   :  { %694 = vrot.lane.b32.xlu0 %v7857_v14, %s3841_s24  ;;  %3579 = vmatprep.mubr.msk.bf16.mxu1 %vm2436_vm13, %v6269_v51  ;;  %v6290_v14 = vld [vmem:[%s7442_s2 + $0x64] ss:$8 sps:$4 sm:$0xff]   ;;  %v1656_v43 = vsel %vm1639_vm14, %v7968_v61, %v1552_v63  ;;  %v1657_v49 = vsel %vm1639_vm14, %v1552_v63, %v1554_v0  ;;  %v6343_v0 = vld [vmem:[%s7442_s2 + $0x70] ss:$8 sps:$4 sm:$0xff]  }
 0x30f   :  { %v3814_v61 = vld [vmem:[%s7441_s3 + $0xb8] ss:$28 sps:$4 sm:$0xff]  }
 0x310   :  { %v1858_v54 = vpop.permute.xlu1 %1857 }
 0x311   :  { %v1744_v39 = vpop.permute.xlu0 %1743  ;;  %v1962_v17 = vsel %vm547_vm4, %v7966_v26, %v1858_v54 }
 0x312   :  { %2548 = vmatmul.mubr.bf16.gmra.mrb[28].mxu0 %v6215_v5  ;;  %v2152_v41 = vsel %vm6132_vm10, %v1656_v43, %v1962_v17  ;;  %v1777_v46 = vsel %vm1766_vm12, %v1657_v49, %v1744_v39  ;;  %v7970_v49 = vld [vmem:[#allocation39_spill] sm:$0xff] }
 0x313   :  { %3562 = vmatprep.mubr.msk.bf16.mxu0 %vm2436_vm13, %v6223_v34  ;;  %v2215_v13 = vadd.bf16 %v2152_v41, %v1043_v52 }
 0x314   :  { %v512_v53 = vpop.permute.xlu1 %511 }
 0x315   :  { %v1860_v2 = vpop.permute.xlu0 %1859  ;;  %2761 = vmatmul.mubr.bf16.gmra.mrb[32].mxu1 %v6283_v58  ;;  %v519_v45 = vsel %vm513_vm3, %v510_v23, %v512_v53  ;;  %vm7981_vm3 = vcmask 113664  }
 0x316   :  { %v1963_v32 = vsel %vm547_vm4, %v1858_v54, %v1860_v2  ;;  %3580 = vmatprep.mubr.msk.bf16.mxu1 %vm2436_vm13, %v6290_v14  ;;  %v1045_v37 = vmul.bf16 %v3813_v27, %v519_v45  ;;  %v6350_v54 = vld [vmem:[%s7442_s2 + $0x84] ss:$8 sps:$4 sm:$0xff]  }
 0x317   :  { %v2153_v18 = vsel %vm6118_vm15, %v1777_v46, %v1963_v32  ;;  %v3815_v46 = vld [vmem:[%s7441_s3 + $0xbc] ss:$28 sps:$4 sm:$0xff]  }
 0x318   :  { %v2216_v44 = vadd.bf16 %v2153_v18, %v1044_v19  ;;  %v542_v60 = vpop.permute.xlu1 %541  ;;  %v7971_v19 = vld [vmem:[#allocation109_spill] sm:$0xff] }
 0x319   :  { %v1862_v8 = vpop.permute.xlu0 %1861  ;;  %v551_v26 = vsel %vm547_vm4, %v7969_v30, %v542_v60 }
 0x31a   :  { %2558 = vmatmul.mubr.bf16.gmra.mrb[32].mxu0 %v6262_v36  ;;  %v1964_v56 = vsel %vm547_vm4, %v1860_v2, %v1862_v8  ;;  %2875 = vmatprep.subr.bf16.mxu0 %v2216_v44  ;;  %v1050_v43 = vmul.bf16 %v3814_v61, %v551_v26  ;;  %v6379_v8 = vld [vmem:[%s7442_s2 + $0x80] ss:$8 sps:$4 sm:$0xff]  }
 0x31b   :  { %3563 = vmatprep.mubr.msk.bf16.mxu0 %vm2436_vm13, %v6269_v51  ;;  %v2154_v47 = vsel %vm6155_vm0, %v1744_v39, %v1964_v56  ;;  %2876 = vmatpush1.bf16.msra.mxu0 %v2215_v13 }
 0x31c   :  { %v2217_v38 = vadd.bf16 %v2154_v47, %v1045_v37  ;;  %v1566_v23 = vpop.permute.xlu1 %1565  ;;  %v3816_v47 = vld [vmem:[%s7441_s3 + $0xc0] ss:$28 sps:$4 sm:$0xff]  }
 0x31d   :  { %v544_v48 = vpop.permute.xlu0 %543  ;;  %2771 = vmatmul.mubr.bf16.gmra.mrb[36].mxu1 %v6320_v4  ;;  %v1662_v2 = vsel %vm1639_vm14, %v7970_v49, %v1566_v23 }
 0x31e   :  { %3069 = vmatpush1.bf16.msra.mxu1 %v2217_v38  ;;  %3581 = vmatprep.mubr.msk.bf16.mxu1 %vm2436_vm13, %v6331_v62  ;;  %v552_v17 = vsel %vm547_vm4, %v542_v60, %v544_v48  ;;  %v6387_v60 = vld [vmem:[%s7442_s2 + $0x94] ss:$8 sps:$4 sm:$0xff]  }
 0x31f   :  { %3070 = vmatprep.subr.bf16.mxu1 %v7929_v31  ;;  %v1051_v53 = vmul.bf16 %v3815_v46, %v552_v17  ;;  %v6403_v17 = vld [vmem:[%s7442_s2 + $0x90] ss:$8 sps:$4 sm:$0xff]  }
 0x320   :  { %v1746_v39 = vpop.permute.xlu1 %1745 }
 0x321   :  { %v1568_v63 = vpop.permute.xlu0 %1567 }
 0x322   :  { %2568 = vmatmul.mubr.bf16.gmra.mrb[36].mxu0 %v6283_v58  ;;  %v1663_v24 = vsel %vm1639_vm14, %v1566_v23, %v1568_v63 }
 0x323   :  { %3564 = vmatprep.mubr.msk.bf16.mxu0 %vm2436_vm13, %v6290_v14  ;;  %v1781_v32 = vsel %vm1766_vm12, %v1663_v24, %v1746_v39  ;;  %v6410_v24 = vld [vmem:[%s7442_s2 + $0xa4] ss:$8 sps:$4 sm:$0xff]  }
 0x324   :  { %v1874_v12 = vpop.permute.xlu1 %1873 }
 0x325   :  { %v1872_v40 = vpop.permute.xlu0 %1871  ;;  %2781 = vmatmul.mubr.bf16.gmra.mrb[40].mxu1 %v6343_v0 }
 0x326   :  { %v1968_v41 = vsel %vm547_vm4, %v7971_v19, %v1872_v40  ;;  %3582 = vmatprep.mubr.msk.bf16.mxu1 %vm2436_vm13, %v6350_v54  ;;  %v1969_v21 = vsel %vm547_vm4, %v1872_v40, %v1874_v12  ;;  %v7972_v40 = vld [vmem:[#allocation55_spill] sm:$0xff] }
 0x327   :  { %v2159_v52 = vsel %vm6132_vm10, %v1662_v2, %v1968_v41  ;;  %v2160_v45 = vsel %vm6118_vm15, %v1781_v32, %v1969_v21  ;;  %v3817_v32 = vld [vmem:[%s7441_s3 + $0xf4] ss:$28 sps:$4 sm:$0xff]  }
 0x328   :  { %v2222_v18 = vadd.bf16 %v2159_v52, %v1050_v43  ;;  %v2223_v13 = vadd.bf16 %v2160_v45, %v1051_v53  ;;  %v1876_v27 = vpop.permute.xlu1 %1875  ;;  %v7973_v43 = vld [vmem:[#allocation86_spill] sm:$0xff]  ;;  %v1058_v21 = vmul.bf16 %v3817_v32, %v4163_v1  ;;  %v3818_v52 = vld [vmem:[%s7441_s3 + $0xf0] ss:$28 sps:$4 sm:$0xff]   ;;  %v7974_v45 = vld [vmem:[#allocation9_spill] sm:$0xff] }
 0x329   :  { %v546_v44 = vpop.permute.xlu0 %545  ;;  %v1970_v56 = vsel %vm547_vm4, %v1874_v12, %v1876_v27  ;;  %v7976_v32 = vld [vmem:[#allocation11_spill] sm:$0xff] }
 0x32a   :  { %2578 = vmatmul.mubr.bf16.gmra.mrb[40].mxu0 %v6320_v4  ;;  %v553_v37 = vsel %vm547_vm4, %v544_v48, %v546_v44  ;;  %2877 = vmatprep.subr.bf16.mxu0 %v2223_v13  ;;  %v2161_v23 = vsel %vm6155_vm0, %v1746_v39, %v1970_v56  ;;  %v3819_v44 = vld [vmem:[%s7441_s3 + $0xf8] ss:$28 sps:$4 sm:$0xff]  }
 0x32b   :  { %3565 = vmatprep.mubr.msk.bf16.mxu0 %vm2436_vm13, %v6331_v62  ;;  %v1052_v38 = vmul.bf16 %v3816_v47, %v553_v37  ;;  %2878 = vmatpush1.bf16.msra.mxu0 %v2222_v18  ;;  %v1057_v18 = vmul.bf16 %v3818_v52, %v7974_v45  ;;  %v1059_v13 = vmul.bf16 %v3819_v44, %v4129_v59 }
 0x32c   :  { %v1582_v30 = vpop.permute.xlu1 %1581 }
 0x32d   :  { %v2224_v48 = vadd.bf16 %v2161_v23, %v1052_v38  ;;  %v1580_v63 = vpop.permute.xlu0 %1579  ;;  %2791 = vmatmul.mubr.bf16.gmra.mrb[44].mxu1 %v6379_v8 }
 0x32e   :  { %3583 = vmatprep.mubr.msk.bf16.mxu1 %vm2436_vm13, %v6387_v60  ;;  %v1668_v49 = vsel %vm1639_vm14, %v7973_v43, %v1580_v63  ;;  %v1669_v2 = vsel %vm1639_vm14, %v1580_v63, %v1582_v30  ;;  %v6452_v63 = vld [vmem:[%s7442_s2 + $0xb4] ss:$8 sps:$4 sm:$0xff]   ;;  %v6469_v43 = vld [vmem:[%s7442_s2 + $0xc4] ss:$8 sps:$4 sm:$0xff]  }
 0x32f   :  { %3071 = vmatpush1.bf16.msra.mxu1 %v2224_v48  ;;  %v6445_v48 = vld [vmem:[%s7442_s2 + $0xa0] ss:$8 sps:$4 sm:$0xff]  }
 0x330   :  { %3072 = vmatprep.subr.bf16.mxu1 %v7929_v31  ;;  %v1886_v39 = vpop.permute.xlu1 %1885 }
 0x331   :  { %v1748_v26 = vpop.permute.xlu0 %1747  ;;  %v1974_v61 = vsel %vm547_vm4, %v7972_v40, %v1886_v39  ;;  %v6462_v40 = vld [vmem:[%s7442_s2 + $0xb0] ss:$8 sps:$4 sm:$0xff]  }
 0x332   :  { %2588 = vmatmul.mubr.bf16.gmra.mrb[44].mxu0 %v6343_v0  ;;  %v2166_v19 = vsel %vm6132_vm10, %v1668_v49, %v1974_v61  ;;  %v1785_v41 = vsel %vm1766_vm12, %v1669_v2, %v1748_v26 }
 0x333   :  { %3566 = vmatprep.mubr.msk.bf16.mxu0 %vm2436_vm13, %v6350_v54  ;;  %v2229_v47 = vadd.bf16 %v2166_v19, %v1057_v18 }
 0x334   :  { %v1890_v46 = vpop.permute.xlu1 %1889 }
 0x335   :  { %v1888_v12 = vpop.permute.xlu0 %1887  ;;  %2801 = vmatmul.mubr.bf16.gmra.mrb[48].mxu1 %v6403_v17 }
 0x336   :  { %v1975_v53 = vsel %vm547_vm4, %v1886_v39, %v1888_v12  ;;  %3584 = vmatprep.mubr.msk.bf16.mxu1 %vm2436_vm13, %v6410_v24  ;;  %v1976_v27 = vsel %vm547_vm4, %v1888_v12, %v1890_v46  ;;  %v7975_v12 = vld [vmem:[#allocation65_spill] sm:$0xff] }
 0x337   :  { %v2167_v1 = vsel %vm6118_vm15, %v1785_v41, %v1975_v53  ;;  %v2168_v37 = vsel %vm6155_vm0, %v1748_v26, %v1976_v27 }
 0x338   :  { %v2230_v56 = vadd.bf16 %v2167_v1, %v1058_v21  ;;  %v2231_v38 = vadd.bf16 %v2168_v37, %v1059_v13  ;;  %v578_v59 = vpop.permute.xlu1 %577 }
 0x339   :  { %v576_v23 = vpop.permute.xlu0 %575 }
 0x33a   :  { %2598 = vmatmul.mubr.bf16.gmra.mrb[48].mxu0 %v6379_v8  ;;  %2879 = vmatprep.subr.bf16.mxu0 %v2230_v56  ;;  %v585_v49 = vsel %vm579_vm5, %v576_v23, %v578_v59  ;;  %v584_v19 = vsel %vm579_vm5, %v7975_v12, %v576_v23  ;;  %vm7983_vm5 = vcmask 105472  }
 0x33b   :  { %3567 = vmatprep.mubr.msk.bf16.mxu0 %vm2436_vm13, %v6387_v60  ;;  %3073 = vmatpush1.bf16.msra.mxu1 %v2231_v38  ;;  %v1065_v21 = vmul.bf16 %v7976_v32, %v585_v49  ;;  %v3821_v38 = vld [vmem:[%s7441_s3 + $0x130] ss:$28 sps:$4 sm:$0xff]  }
 0x33c   :  { %2880 = vmatpush1.bf16.msra.mxu0 %v2229_v47  ;;  %3074 = vmatprep.subr.bf16.mxu1 %v7929_v31  ;;  %v6497_v47 = vld [vmem:[%s7442_s2 + $0xc0] ss:$8 sps:$4 sm:$0xff]  }
 0x33d   :  { %v1594_v30 = vpop.permute.xlu0 %1593  ;;  %2811 = vmatmul.mubr.bf16.gmra.mrb[52].mxu1 %v6445_v48  ;;  %v1596_v26 = vpop.permute.xlu1 %1595 }
 0x33e   :  { %3585 = vmatprep.mubr.msk.bf16.mxu1 %vm2436_vm13, %v6452_v63  ;;  %v1674_v41 = vsel %vm1639_vm14, %v5797_v16, %v1594_v30  ;;  %v1675_v46 = vsel %vm1639_vm14, %v1594_v30, %v1596_v26  ;;  %v3820_v16 = vld [vmem:[%s7441_s3 + $0x128] ss:$28 sps:$4 sm:$0xff]   ;;  %v6508_v26 = vld [vmem:[%s7442_s2 + $0xd4] ss:$8 sps:$4 sm:$0xff]  }
 0x33f   :  { %v1064_v44 = vmul.bf16 %v3820_v16, %v584_v19  ;;  %v6520_v19 = vld [vmem:[%s7442_s2 + $0xd0] ss:$8 sps:$4 sm:$0xff]  }
 0x341   :  { %v1750_v39 = vpop.permute.xlu0 %1749  ;;  %v1900_v61 = vpop.permute.xlu1 %1899 }
 0x342   :  { %2608 = vmatmul.mubr.bf16.gmra.mrb[52].mxu0 %v6403_v17  ;;  %v1980_v2 = vsel %vm547_vm4, %v5585_v55, %v1900_v61  ;;  %v1789_v45 = vsel %vm1766_vm12, %v1675_v46, %v1750_v39 }
 0x343   :  { %3568 = vmatprep.mubr.msk.bf16.mxu0 %vm2436_vm13, %v6410_v24  ;;  %v2173_v52 = vsel %vm6132_vm10, %v1674_v41, %v1980_v2  ;;  %v6527_v41 = vld [vmem:[%s7442_s2 + $0xe4] ss:$8 sps:$4 sm:$0xff]  }
 0x344   :  { %v2236_v37 = vadd.bf16 %v2173_v52, %v1064_v44 }
 0x345   :  { %v1902_v53 = vpop.permute.xlu0 %1901  ;;  %2821 = vmatmul.mubr.bf16.gmra.mrb[56].mxu1 %v6462_v40  ;;  %v593_v18 = vpop.permute.xlu1 %592 }
 0x346   :  { %v1981_v55 = vsel %vm547_vm4, %v1900_v61, %v1902_v53  ;;  %3586 = vmatprep.mubr.msk.bf16.mxu1 %vm2436_vm13, %v6469_v43  ;;  %v597_v13 = vsel %vm594_vm9, %v578_v59, %v593_v18  ;;  %v3822_v18 = vld [vmem:[%s7441_s3 + $0x160] ss:$28 sps:$4 sm:$0xff]  }
 0x347   :  { %v2174_v27 = vsel %vm6118_vm15, %v1789_v45, %v1981_v55  ;;  %v1066_v23 = vmul.bf16 %v3821_v38, %v597_v13  ;;  %v7980_v13 = vld [vmem:[#allocation27_spill] sm:$0xff] }
 0x348   :  { %v2237_v1 = vadd.bf16 %v2174_v27, %v1065_v21 }
 0x349   :  { %v1904_v56 = vpop.permute.xlu0 %1903  ;;  %v610_v30 = vpop.permute.xlu1 %609 }
 0x34a   :  { %2618 = vmatmul.mubr.bf16.gmra.mrb[56].mxu0 %v6445_v48  ;;  %v1982_v59 = vsel %vm547_vm4, %v1902_v53, %v1904_v56  ;;  %2881 = vmatprep.subr.bf16.mxu0 %v2237_v1  ;;  %v7977_v53 = vld [vmem:[#allocation66_spill] sm:$0xff] }
 0x34b   :  { %3569 = vmatprep.mubr.msk.bf16.mxu0 %vm2436_vm13, %v6452_v63  ;;  %v2175_v61 = vsel %vm6155_vm0, %v1750_v39, %v1982_v59  ;;  %2882 = vmatpush1.bf16.msra.mxu0 %v2236_v37  ;;  %v618_v32 = vsel %vm7978_vm1, %v7977_v53, %v610_v30 }
 0x34c   :  { %v2238_v49 = vadd.bf16 %v2175_v61, %v1066_v23  ;;  %v1071_v55 = vmul.bf16 %v3822_v18, %v618_v32  ;;  %v3823_v32 = vld [vmem:[%s7441_s3 + $0x168] ss:$28 sps:$4 sm:$0xff]  }
 0x34d   :  { %2831 = vmatmul.mubr.bf16.gmra.mrb[60].mxu1 %v6497_v47  ;;  %v1608_v2 = vpop.permute.xlu1 %1607  ;;  %v612_v12 = vpop.permute.xlu0 %611 }
 0x34e   :  { %3075 = vmatpush1.bf16.msra.mxu1 %v2238_v49  ;;  %3587 = vmatprep.mubr.msk.bf16.mxu1 %vm2436_vm13, %v6508_v26  ;;  %v619_v21 = vsel %vm7979_vm2, %v610_v30, %v612_v12  ;;  %v1680_v16 = vsel %vm1639_vm14, %v5832_v3, %v1608_v2  ;;  %v6554_v3 = vld [vmem:[%s7442_s2 + $0xe0] ss:$8 sps:$4 sm:$0xff]  }
 0x34f   :  { %3076 = vmatprep.subr.bf16.mxu1 %v7929_v31  ;;  %v1072_v27 = vmul.bf16 %v7980_v13, %v619_v21 }
 0x351   :  { %v1610_v46 = vpop.permute.xlu0 %1609 }
 0x352   :  { %2628 = vmatmul.mubr.bf16.gmra.mrb[60].mxu0 %v6462_v40  ;;  %v1752_v39 = vpop.permute.xlu1 %1751  ;;  %v1681_v52 = vsel %vm1639_vm14, %v1608_v2, %v1610_v46 }
 0x353   :  { %3570 = vmatprep.mubr.msk.bf16.mxu0 %vm2436_vm13, %v6469_v43  ;;  %v1793_v1 = vsel %vm1766_vm12, %v1681_v52, %v1752_v39 }
 0x355   :  { %2841 = vmatmul.mubr.bf16.gmra.mrb[64].mxu1 %v6520_v19 }
 0x356   :  { %v1916_v45 = vpop.permute.xlu1 %1915  ;;  %3588 = vmatprep.mubr.msk.bf16.mxu1 %vm2436_vm13, %v6527_v41 }
 0x357   :  { %v1914_v44 = vpop.permute.xlu0 %1913 }
 0x358   :  { %v1986_v37 = vsel %vm547_vm4, %v5598_v28, %v1914_v44  ;;  %v1987_v56 = vsel %vm547_vm4, %v1914_v44, %v1916_v45  ;;  %v6561_v28 = vld [vmem:[%s7442_s2 + $0xf4] ss:$8 sps:$4 sm:$0xff]   ;;  %v3824_v44 = vld [vmem:[%s7442_s2 + $0x4] ss:$8 sps:$4 sm:$0xff]  }
 0x359   :  { %v2180_v38 = vsel %vm6132_vm10, %v1680_v16, %v1986_v37  ;;  %v2181_v23 = vsel %vm6118_vm15, %v1793_v1, %v1987_v56  ;;  %v7982_v37 = vld [vmem:[#allocation67_spill] sm:$0xff] }
 0x35a   :  { %2638 = vmatmul.mubr.bf16.gmra.mrb[64].mxu0 %v6497_v47  ;;  %v2243_v30 = vadd.bf16 %v2180_v38, %v1071_v55  ;;  %v2244_v61 = vadd.bf16 %v2181_v23, %v1072_v27 }
 0x35b   :  { %v1918_v59 = vpop.permute.xlu1 %1917  ;;  %3571 = vmatprep.mubr.msk.bf16.mxu0 %vm2436_vm13, %v6508_v26 }
 0x35c   :  { %v1988_v49 = vsel %vm547_vm4, %v1916_v45, %v1918_v59  ;;  %v627_v2 = vpop.permute.xlu0 %626  ;;  %2883 = vmatprep.subr.bf16.mxu0 %v2244_v61 }
 0x35d   :  { %v2182_v46 = vsel %vm6155_vm0, %v1752_v39, %v1988_v49  ;;  %v631_v53 = vsel %vm7981_vm3, %v612_v12, %v627_v2  ;;  %2884 = vmatpush1.bf16.msra.mxu0 %v2243_v30  ;;  %2851 = vmatmul.mubr.bf16.gmra.mrb[68].mxu1 %v6554_v3  ;;  %v6577_v12 = vld [vmem:[%s7442_s2 + $0xf0] ss:$8 sps:$4 sm:$0xff]  }
 0x35e   :  { %v1073_v21 = vmul.bf16 %v3823_v32, %v631_v53  ;;  %3589 = vmatprep.mubr.msk.bf16.mxu1 %vm2436_vm13, %v6561_v28 }
 0x35f   :  { %v646_v52 = vpop.permute.xlu1 %645 }
 0x360   :  { %v2245_v45 = vadd.bf16 %v2182_v46, %v1073_v21  ;;  %v644_v18 = vpop.permute.xlu0 %643  ;;  %v3825_v46 = vld [vmem:[%s7441_s3 + $0x198] ss:$28 sps:$4 sm:$0xff]  }
 0x361   :  { %v653_v27 = vsel %vm647_vm7, %v644_v18, %v646_v52  ;;  %v652_v56 = vsel %vm647_vm7, %v7982_v37, %v644_v18  ;;  %vm7985_vm7 = vcmask 97280  }
 0x362   :  { %3077 = vmatpush1.bf16.msra.mxu1 %v2245_v45  ;;  %2648 = vmatmul.mubr.bf16.gmra.mrb[68].mxu0 %v6520_v19  ;;  %v1079_v61 = vmul.bf16 %v6061_v33, %v653_v27  ;;  %v1078_v53 = vmul.bf16 %v3825_v46, %v652_v56 }
 0x363   :  { %v1624_v39 = vpop.permute.xlu1 %1623  ;;  %3078 = vmatprep.subr.bf16.mxu1 %v7929_v31  ;;  %3572 = vmatprep.mubr.msk.bf16.mxu0 %vm2436_vm13, %v6527_v41 }
 0x364   :  { %v1622_v55 = vpop.permute.xlu0 %1621 }
 0x365   :  { %2861 = vmatmul.mubr.bf16.gmra.mrb[72].mxu1 %v6577_v12  ;;  %v1686_v23 = vsel %vm1639_vm14, %v5845_v20, %v1622_v55  ;;  %v1687_v30 = vsel %vm1639_vm14, %v1622_v55, %v1624_v39  ;;  %v3826_v39 = vld [vmem:[%s7441_s3 + $0x1a0] ss:$28 sps:$4 sm:$0xff]  }
 0x366   :  { %3606 = vmatprep.mubr.msk.bf16.mxu1 %vm2436_vm13, %v3824_v44 }
 0x367   :  { %v1928_v16 = vpop.permute.xlu1 %1927 }
 0x368   :  { %v1754_v13 = vpop.permute.xlu0 %1753  ;;  %v1992_v1 = vsel %vm547_vm4, %v5702_v11, %v1928_v16 }
 0x369   :  { %v2187_v11 = vsel %vm6132_vm10, %v1686_v23, %v1992_v1  ;;  %v1797_v49 = vsel %vm1766_vm12, %v1687_v30, %v1754_v13  ;;  %v7984_v23 = vld [vmem:[#allocation68_spill] sm:$0xff] }
 0x36a   :  { %2658 = vmatmul.mubr.bf16.gmra.mrb[72].mxu0 %v6554_v3  ;;  %v2250_v33 = vadd.bf16 %v2187_v11, %v1078_v53  ;;  %v3827_v11 = vld [vmem:[%s7441_s3 + $0x1d0] ss:$28 sps:$4 sm:$0xff]  }
 0x36b   :  { %v661_v38 = vpop.permute.xlu1 %660  ;;  %3573 = vmatprep.mubr.msk.bf16.mxu0 %vm2436_vm13, %v6561_v28 }
 0x36c   :  { %v1930_v59 = vpop.permute.xlu0 %1929  ;;  %v665_v32 = vsel %vm7983_vm5, %v646_v52, %v661_v38 }
 0x36d   :  { %v1993_v2 = vsel %vm547_vm4, %v1928_v16, %v1930_v59  ;;  %v1080_v55 = vmul.bf16 %v3826_v39, %v665_v32 }
 0x36e   :  { %v2188_v20 = vsel %vm6118_vm15, %v1797_v49, %v1993_v2 }
 0x36f   :  { %v678_v21 = vpop.permute.xlu1 %677  ;;  %v2251_v45 = vadd.bf16 %v2188_v20, %v1079_v61 }
 0x370   :  { %v1932_v18 = vpop.permute.xlu0 %1931  ;;  %v686_v30 = vsel %vm681_vm8, %v7984_v23, %v678_v21 }
 0x371   :  { %v1994_v16 = vsel %vm547_vm4, %v1930_v59, %v1932_v18  ;;  %2885 = vmatprep.subr.bf16.mxu0 %v2251_v45  ;;  %v1085_v49 = vmul.bf16 %v3827_v11, %v686_v30 }
 0x372   :  { %v2189_v27 = vsel %vm6155_vm0, %v1754_v13, %v1994_v16  ;;  %2886 = vmatpush1.bf16.msra.mxu0 %v2250_v33 }
 0x373   :  { %v2252_v52 = vadd.bf16 %v2189_v27, %v1080_v55  ;;  %v1636_v1 = vpop.permute.xlu1 %1635  ;;  %2668 = vmatmul.mubr.bf16.gmra.mrb[76].mxu0 %v6577_v12 }
 0x374   :  { %v680_v37 = vpop.permute.xlu0 %679  ;;  %3590 = vmatprep.mubr.msk.bf16.mxu0 %vm2436_vm13, %v3824_v44  ;;  %v1692_v44 = vsel %vm1639_vm14, %v5869_v42, %v1636_v1 }
 0x375   :  { %3079 = vmatpush1.bf16.msra.mxu1 %v2252_v52  ;;  %v687_v59 = vsel %vm681_vm8, %v678_v21, %v680_v37 }
 0x376   :  { %3080 = vmatprep.subr.bf16.mxu1 %v7929_v31  ;;  %v1086_v31 = vmul.bf16 %v6191_v35, %v687_v59 }
 0x377   :  { %v1756_v56 = vpop.permute.xlu1 %1755 }
 0x378   :  { %v1638_v38 = vpop.permute.xlu0 %1637 }
 0x379   :  { %v1693_v13 = vsel %vm1639_vm14, %v1636_v1, %v1638_v38 }
 0x37a   :  { %v1801_v46 = vsel %vm1766_vm12, %v1693_v13, %v1756_v56 }
 0x37b   :  { %v1944_v61 = vpop.permute.xlu1 %1943 }
 0x37c   :  { %v1942_v2 = vpop.permute.xlu0 %1941 }
 0x37d   :  { %v1998_v53 = vsel %vm547_vm4, %v5939_v6, %v1942_v2  ;;  %v1999_v32 = vsel %vm547_vm4, %v1942_v2, %v1944_v61  ;;  %v3828_v6 = vld [vmem:[%s7441_s3 + $0x1d8] ss:$28 sps:$4 sm:$0xff]  }
 0x37e   :  { %v2194_v20 = vsel %vm6132_vm10, %v1692_v44, %v1998_v53  ;;  %v2195_v21 = vsel %vm6118_vm15, %v1801_v46, %v1999_v32 }
 0x37f   :  { %v2257_v45 = vadd.bf16 %v2194_v20, %v1085_v49  ;;  %v1946_v33 = vpop.permute.xlu1 %1945  ;;  %v2258_v18 = vadd.bf16 %v2195_v21, %v1086_v31 }
 0x380   :  { %v2000_v42 = vsel %vm547_vm4, %v1944_v61, %v1946_v33  ;;  %v695_v39 = vpop.permute.xlu0 %694 }
 0x381   :  { %v2196_v35 = vsel %vm6155_vm0, %v1756_v56, %v2000_v42  ;;  %v699_v55 = vsel %vm7985_vm7, %v680_v37, %v695_v39  ;;  %2887 = vmatprep.subr.bf16.mxu0 %v2258_v18 }
 0x382   :  { %v1087_v57 = vmul.bf16 %v3828_v6, %v699_v55  ;;  %2888 = vmatpush1.bf16.msra.mxu0 %v2257_v45 }
 0x384   :  { %v2259_v29 = vadd.bf16 %v2196_v35, %v1087_v57 }
 0x385   :  { %2904 = vmatmul.mubr.bf16.vlgmr.msra.gmra.mrb[80].mxu0 %v6010_v7 }
 0x386   :  { %3081 = vmatpush1.bf16.msra.mxu1 %v2259_v29  ;;  %3591 = vmatprep.mubr.msk.bf16.mxu0 %vm2436_vm13, %v6027_v25 }
 0x389   :  { %3097 = vmatmul.mubr.bf16.vlgmr.msra.gmra.mrb[76].mxu1 %v6010_v7 }
 0x38a   :  { %3607 = vmatprep.mubr.msk.bf16.mxu1 %vm2436_vm13, %v6027_v25 }
 0x38d   :  { %2914 = vmatmul.mubr.bf16.gmra.mrb[84].mxu0 %v6111_v9 }
 0x38e   :  { %3592 = vmatprep.mubr.msk.bf16.mxu0 %vm2436_vm13, %v6126_v22 }
 0x391   :  { %3105 = vmatmul.mubr.bf16.gmra.mrb[80].mxu1 %v6111_v9 }
 0x392   :  { %3608 = vmatprep.mubr.msk.bf16.mxu1 %vm2436_vm13, %v6126_v22 }
 0x395   :  { %2924 = vmatmul.mubr.bf16.gmra.mrb[88].mxu0 %v6179_v15 }
 0x396   :  { %3593 = vmatprep.mubr.msk.bf16.mxu0 %vm2436_vm13, %v6186_v10 }
 0x399   :  { %3113 = vmatmul.mubr.bf16.gmra.mrb[84].mxu1 %v6179_v15 }
 0x39a   :  { %3609 = vmatprep.mubr.msk.bf16.mxu1 %vm2436_vm13, %v6186_v10 }
 0x39d   :  { %2934 = vmatmul.mubr.bf16.gmra.mrb[92].mxu0 %v6215_v5 }
 0x39e   :  { %3594 = vmatprep.mubr.msk.bf16.mxu0 %vm2436_vm13, %v6223_v34 }
 0x3a1   :  { %3121 = vmatmul.mubr.bf16.gmra.mrb[88].mxu1 %v6215_v5 }
 0x3a2   :  { %3610 = vmatprep.mubr.msk.bf16.mxu1 %vm2436_vm13, %v6223_v34 }
 0x3a5   :  { %2944 = vmatmul.mubr.bf16.gmra.mrb[96].mxu0 %v6262_v36 }
 0x3a6   :  { %3595 = vmatprep.mubr.msk.bf16.mxu0 %vm2436_vm13, %v6269_v51 }
 0x3a9   :  { %3129 = vmatmul.mubr.bf16.gmra.mrb[92].mxu1 %v6262_v36 }
 0x3aa   :  { %3611 = vmatprep.mubr.msk.bf16.mxu1 %vm2436_vm13, %v6269_v51 }
 0x3ad   :  { %2954 = vmatmul.mubr.bf16.gmra.mrb[100].mxu0 %v6283_v58 }
 0x3ae   :  { %3596 = vmatprep.mubr.msk.bf16.mxu0 %vm2436_vm13, %v6290_v14 }
 0x3b1   :  { %3137 = vmatmul.mubr.bf16.gmra.mrb[96].mxu1 %v6283_v58 }
 0x3b2   :  { %3612 = vmatprep.mubr.msk.bf16.mxu1 %vm2436_vm13, %v6290_v14 }
 0x3b5   :  { %2964 = vmatmul.mubr.bf16.gmra.mrb[104].mxu0 %v6320_v4 }
 0x3b6   :  { %3597 = vmatprep.mubr.msk.bf16.mxu0 %vm2436_vm13, %v6331_v62 }
 0x3b9   :  { %3145 = vmatmul.mubr.bf16.gmra.mrb[100].mxu1 %v6320_v4 }
 0x3ba   :  { %3613 = vmatprep.mubr.msk.bf16.mxu1 %vm2436_vm13, %v6331_v62 }
 0x3bd   :  { %2974 = vmatmul.mubr.bf16.gmra.mrb[108].mxu0 %v6343_v0 }
 0x3be   :  { %3598 = vmatprep.mubr.msk.bf16.mxu0 %vm2436_vm13, %v6350_v54 }
 0x3c0   :  { %v2712_v7 = vpop.f32.mrb[12].mxu1 }
 0x3c1   :  { %3227 = vst [vmem:[%s7444_s5 + $0x10] sm:$0xff] %v2712_v7  ;;  %v2714_v25 = vpop.f32.mrb[13].mxu1  ;;  %3153 = vmatmul.mubr.bf16.gmra.mrb[104].mxu1 %v6343_v0 }
 0x3c2   :  { %3228 = vst [vmem:[%s7444_s5 + $0x18] sm:$0xff] %v2714_v25  ;;  %v2716_v9 = vpop.f32.mrb[14].mxu1  ;;  %3614 = vmatprep.mubr.msk.bf16.mxu1 %vm2436_vm13, %v6350_v54 }
 0x3c3   :  { %3234 = vst [vmem:[%s7444_s5 + $0x48] sm:$0xff] %v2716_v9  ;;  %v2718_v22 = vpop.f32.mrb[15].mxu1 }
 0x3c4   :  { %3235 = vst [vmem:[%s7444_s5 + $0x50] sm:$0xff] %v2718_v22 }
 0x3c5   :  { %2984 = vmatmul.mubr.bf16.gmra.mrb[112].mxu0 %v6379_v8 }
 0x3c6   :  { %3599 = vmatprep.mubr.msk.bf16.mxu0 %vm2436_vm13, %v6387_v60 }
 0x3c8   :  { %v2722_v50 = vpop.f32.mrb[16].mxu1 }
 0x3c9   :  { %3241 = vst [vmem:[%s7444_s5 + $0x80] sm:$0xff] %v2722_v50  ;;  %v2724_v15 = vpop.f32.mrb[17].mxu1  ;;  %3161 = vmatmul.mubr.bf16.gmra.mrb[108].mxu1 %v6379_v8 }
 0x3ca   :  { %3242 = vst [vmem:[%s7444_s5 + $0x88] sm:$0xff] %v2724_v15  ;;  %v2726_v10 = vpop.f32.mrb[18].mxu1  ;;  %3615 = vmatprep.mubr.msk.bf16.mxu1 %vm2436_vm13, %v6387_v60 }
 0x3cb   :  { %3248 = vst [vmem:[%s7444_s5 + $0xb8] sm:$0xff] %v2726_v10  ;;  %v2728_v5 = vpop.f32.mrb[19].mxu1 }
 0x3cc   :  { %3249 = vst [vmem:[%s7444_s5 + $0xc0] sm:$0xff] %v2728_v5 }
 0x3cd   :  { %2994 = vmatmul.mubr.bf16.gmra.mrb[116].mxu0 %v6403_v17  ;;  %v2519_v34 = vpop.f32.mrb[16].mxu0 }
 0x3ce   :  { %3600 = vmatprep.mubr.msk.bf16.mxu0 %vm2436_vm13, %v6410_v24  ;;  %3225 = vst [vmem:[%s7444_s5] sm:$0xff] %v2519_v34  ;;  %v2521_v36 = vpop.f32.mrb[17].mxu0 }
 0x3cf   :  { %3226 = vst [vmem:[%s7444_s5 + $0x8] sm:$0xff] %v2521_v36  ;;  %v2523_v51 = vpop.f32.mrb[18].mxu0 }
 0x3d0   :  { %3232 = vst [vmem:[%s7444_s5 + $0x38] sm:$0xff] %v2523_v51  ;;  %v2525_v58 = vpop.f32.mrb[19].mxu0  ;;  %v2732_v14 = vpop.f32.mrb[20].mxu1 }
 0x3d1   :  { %3169 = vmatmul.mubr.bf16.gmra.mrb[112].mxu1 %v6403_v17  ;;  %3233 = vst [vmem:[%s7444_s5 + $0x40] sm:$0xff] %v2525_v58  ;;  %3255 = vst [vmem:[%s7444_s5 + $0xf0] sm:$0xff] %v2732_v14  ;;  %v2734_v4 = vpop.f32.mrb[21].mxu1 }
 0x3d2   :  { %3616 = vmatprep.mubr.msk.bf16.mxu1 %vm2436_vm13, %v6410_v24  ;;  %3256 = vst [vmem:[%s7444_s5 + $0xf8] sm:$0xff] %v2734_v4  ;;  %v2736_v62 = vpop.f32.mrb[22].mxu1 }
 0x3d3   :  { %3262 = vst [vmem:[%s7444_s5 + $0x128] sm:$0xff] %v2736_v62  ;;  %v2738_v0 = vpop.f32.mrb[23].mxu1 }
 0x3d4   :  { %3263 = vst [vmem:[%s7444_s5 + $0x130] sm:$0xff] %v2738_v0 }
 0x3d5   :  { %3004 = vmatmul.mubr.bf16.gmra.mrb[120].mxu0 %v6445_v48  ;;  %v2529_v54 = vpop.f32.mrb[20].mxu0 }
 0x3d6   :  { %3601 = vmatprep.mubr.msk.bf16.mxu0 %vm2436_vm13, %v6452_v63  ;;  %3239 = vst [vmem:[%s7444_s5 + $0x70] sm:$0xff] %v2529_v54  ;;  %v2531_v8 = vpop.f32.mrb[21].mxu0 }
 0x3d7   :  { %3240 = vst [vmem:[%s7444_s5 + $0x78] sm:$0xff] %v2531_v8  ;;  %v2533_v60 = vpop.f32.mrb[22].mxu0 }
 0x3d8   :  { %3246 = vst [vmem:[%s7444_s5 + $0xa8] sm:$0xff] %v2533_v60  ;;  %v2535_v17 = vpop.f32.mrb[23].mxu0  ;;  %v2742_v24 = vpop.f32.mrb[24].mxu1 }
 0x3d9   :  { %3177 = vmatmul.mubr.bf16.gmra.mrb[116].mxu1 %v6445_v48  ;;  %3247 = vst [vmem:[%s7444_s5 + $0xb0] sm:$0xff] %v2535_v17  ;;  %3269 = vst [vmem:[%s7444_s5 + $0x160] sm:$0xff] %v2742_v24  ;;  %v2744_v16 = vpop.f32.mrb[25].mxu1 }
 0x3da   :  { %3617 = vmatprep.mubr.msk.bf16.mxu1 %vm2436_vm13, %v6452_v63  ;;  %3270 = vst [vmem:[%s7444_s5 + $0x168] sm:$0xff] %v2744_v16  ;;  %v2746_v27 = vpop.f32.mrb[26].mxu1 }
 0x3db   :  { %3276 = vst [vmem:[%s7444_s5 + $0x198] sm:$0xff] %v2746_v27  ;;  %v2748_v48 = vpop.f32.mrb[27].mxu1 }
 0x3dc   :  { %3277 = vst [vmem:[%s7444_s5 + $0x1a0] sm:$0xff] %v2748_v48 }
 0x3dd   :  { %3014 = vmatmul.mubr.bf16.gmra.mrb[124].mxu0 %v6462_v40  ;;  %v2539_v52 = vpop.f32.mrb[24].mxu0 }
 0x3de   :  { %3602 = vmatprep.mubr.msk.bf16.mxu0 %vm2436_vm13, %v6469_v43  ;;  %3253 = vst [vmem:[%s7444_s5 + $0xe0] sm:$0xff] %v2539_v52  ;;  %v2541_v63 = vpop.f32.mrb[25].mxu0 }
 0x3df   :  { %3254 = vst [vmem:[%s7444_s5 + $0xe8] sm:$0xff] %v2541_v63  ;;  %v2543_v1 = vpop.f32.mrb[26].mxu0 }
 0x3e0   :  { %3260 = vst [vmem:[%s7444_s5 + $0x118] sm:$0xff] %v2543_v1  ;;  %v2545_v37 = vpop.f32.mrb[27].mxu0  ;;  %v2752_v56 = vpop.f32.mrb[28].mxu1 }
 0x3e1   :  { %3185 = vmatmul.mubr.bf16.gmra.mrb[120].mxu1 %v6462_v40  ;;  %3261 = vst [vmem:[%s7444_s5 + $0x120] sm:$0xff] %v2545_v37  ;;  %3283 = vst [vmem:[%s7444_s5 + $0x1d0] sm:$0xff] %v2752_v56  ;;  %v2754_v38 = vpop.f32.mrb[29].mxu1 }
 0x3e2   :  { %3618 = vmatprep.mubr.msk.bf16.mxu1 %vm2436_vm13, %v6469_v43  ;;  %3284 = vst [vmem:[%s7444_s5 + $0x1d8] sm:$0xff] %v2754_v38  ;;  %v2756_v23 = vpop.f32.mrb[30].mxu1 }
 0x3e3   :  { %3290 = vst [vmem:[%s7444_s5 + $0x208] sm:$0xff] %v2756_v23  ;;  %v2758_v40 = vpop.f32.mrb[31].mxu1 }
 0x3e4   :  { %3291 = vst [vmem:[%s7444_s5 + $0x210] sm:$0xff] %v2758_v40 }
 0x3e5   :  { %3024 = vmatmul.mubr.bf16.gmra.mrb[128].mxu0 %v6497_v47  ;;  %v2549_v30 = vpop.f32.mrb[28].mxu0 }
 0x3e6   :  { %3603 = vmatprep.mubr.msk.bf16.mxu0 %vm2436_vm13, %v6508_v26  ;;  %3267 = vst [vmem:[%s7444_s5 + $0x150] sm:$0xff] %v2549_v30  ;;  %v2551_v43 = vpop.f32.mrb[29].mxu0 }
 0x3e7   :  { %3268 = vst [vmem:[%s7444_s5 + $0x158] sm:$0xff] %v2551_v43  ;;  %v2553_v59 = vpop.f32.mrb[30].mxu0 }
 0x3e8   :  { %3274 = vst [vmem:[%s7444_s5 + $0x188] sm:$0xff] %v2553_v59  ;;  %v2555_v13 = vpop.f32.mrb[31].mxu0  ;;  %v2762_v61 = vpop.f32.mrb[32].mxu1 }
 0x3e9   :  { %3193 = vmatmul.mubr.bf16.gmra.mrb[124].mxu1 %v6497_v47  ;;  %3275 = vst [vmem:[%s7444_s5 + $0x190] sm:$0xff] %v2555_v13  ;;  %3297 = vst [vmem:[%s7444_s5 + $0x240] sm:$0xff] %v2762_v61  ;;  %v2764_v11 = vpop.f32.mrb[33].mxu1 }
 0x3ea   :  { %3619 = vmatprep.mubr.msk.bf16.mxu1 %vm2436_vm13, %v6508_v26  ;;  %3298 = vst [vmem:[%s7444_s5 + $0x248] sm:$0xff] %v2764_v11  ;;  %v2766_v49 = vpop.f32.mrb[34].mxu1 }
 0x3eb   :  { %3304 = vst [vmem:[%s7444_s5 + $0x278] sm:$0xff] %v2766_v49  ;;  %v2768_v47 = vpop.f32.mrb[35].mxu1 }
 0x3ec   :  { %3305 = vst [vmem:[%s7444_s5 + $0x280] sm:$0xff] %v2768_v47 }
 0x3ed   :  { %3034 = vmatmul.mubr.bf16.gmra.mrb[132].mxu0 %v6520_v19  ;;  %v2559_v44 = vpop.f32.mrb[32].mxu0 }
 0x3ee   :  { %3604 = vmatprep.mubr.msk.bf16.mxu0 %vm2436_vm13, %v6527_v41  ;;  %3281 = vst [vmem:[%s7444_s5 + $0x1c0] sm:$0xff] %v2559_v44  ;;  %v2561_v26 = vpop.f32.mrb[33].mxu0 }
 0x3ef   :  { %3282 = vst [vmem:[%s7444_s5 + $0x1c8] sm:$0xff] %v2561_v26  ;;  %v2563_v2 = vpop.f32.mrb[34].mxu0 }
 0x3f0   :  { %3288 = vst [vmem:[%s7444_s5 + $0x1f8] sm:$0xff] %v2563_v2  ;;  %v2565_v31 = vpop.f32.mrb[35].mxu0  ;;  %v2772_v46 = vpop.f32.mrb[36].mxu1 }
 0x3f1   :  { %3201 = vmatmul.mubr.bf16.gmra.mrb[128].mxu1 %v6520_v19  ;;  %3289 = vst [vmem:[%s7444_s5 + $0x200] sm:$0xff] %v2565_v31  ;;  %3311 = vst [vmem:[%s7444_s5 + $0x2b0] sm:$0xff] %v2772_v46  ;;  %v2774_v53 = vpop.f32.mrb[37].mxu1 }
 0x3f2   :  { %3620 = vmatprep.mubr.msk.bf16.mxu1 %vm2436_vm13, %v6527_v41  ;;  %3312 = vst [vmem:[%s7444_s5 + $0x2b8] sm:$0xff] %v2774_v53  ;;  %v2776_v32 = vpop.f32.mrb[38].mxu1 }
 0x3f3   :  { %3318 = vst [vmem:[%s7444_s5 + $0x2e8] sm:$0xff] %v2776_v32  ;;  %v2778_v19 = vpop.f32.mrb[39].mxu1 }
 0x3f4   :  { %3319 = vst [vmem:[%s7444_s5 + $0x2f0] sm:$0xff] %v2778_v19 }
 0x3f5   :  { %3044 = vmatmul.mubr.bf16.gmra.mrb[136].mxu0 %v6554_v3  ;;  %v2569_v20 = vpop.f32.mrb[36].mxu0 }
 0x3f6   :  { %3605 = vmatprep.mubr.msk.bf16.mxu0 %vm2436_vm13, %v6561_v28  ;;  %3295 = vst [vmem:[%s7444_s5 + $0x230] sm:$0xff] %v2569_v20  ;;  %v2571_v41 = vpop.f32.mrb[37].mxu0 }
 0x3f7   :  { %3296 = vst [vmem:[%s7444_s5 + $0x238] sm:$0xff] %v2571_v41  ;;  %v2573_v21 = vpop.f32.mrb[38].mxu0 }
 0x3f8   :  { %3302 = vst [vmem:[%s7444_s5 + $0x268] sm:$0xff] %v2573_v21  ;;  %v2575_v45 = vpop.f32.mrb[39].mxu0  ;;  %v2782_v33 = vpop.f32.mrb[40].mxu1 }
 0x3f9   :  { %3209 = vmatmul.mubr.bf16.gmra.mrb[132].mxu1 %v6554_v3  ;;  %3303 = vst [vmem:[%s7444_s5 + $0x270] sm:$0xff] %v2575_v45  ;;  %3325 = vst [vmem:[%s7444_s5 + $0x320] sm:$0xff] %v2782_v33  ;;  %v2784_v18 = vpop.f32.mrb[41].mxu1 }
 0x3fa   :  { %3621 = vmatprep.mubr.msk.bf16.mxu1 %vm2436_vm13, %v6561_v28  ;;  %3326 = vst [vmem:[%s7444_s5 + $0x328] sm:$0xff] %v2784_v18  ;;  %v2786_v42 = vpop.f32.mrb[42].mxu1 }
 0x3fb   :  { %3332 = vst [vmem:[%s7444_s5 + $0x358] sm:$0xff] %v2786_v42  ;;  %v2788_v3 = vpop.f32.mrb[43].mxu1 }
 0x3fc   :  { %3333 = vst [vmem:[%s7444_s5 + $0x360] sm:$0xff] %v2788_v3 }
 0x3fd   :  { %3054 = vmatmul.mubr.bf16.gmra.mrb[140].mxu0 %v6577_v12  ;;  %v2579_v39 = vpop.f32.mrb[40].mxu0 }
 0x3fe   :  { %3309 = vst [vmem:[%s7444_s5 + $0x2a0] sm:$0xff] %v2579_v39  ;;  %v2581_v28 = vpop.f32.mrb[41].mxu0 }
 0x3ff   :  { %3310 = vst [vmem:[%s7444_s5 + $0x2a8] sm:$0xff] %v2581_v28  ;;  %v2583_v35 = vpop.f32.mrb[42].mxu0 }
 0x400   :  { %3316 = vst [vmem:[%s7444_s5 + $0x2d8] sm:$0xff] %v2583_v35  ;;  %v2585_v55 = vpop.f32.mrb[43].mxu0  ;;  %v2792_v6 = vpop.f32.mrb[44].mxu1 }
 0x401   :  { %3217 = vmatmul.mubr.bf16.gmra.mrb[136].mxu1 %v6577_v12  ;;  %3317 = vst [vmem:[%s7444_s5 + $0x2e0] sm:$0xff] %v2585_v55  ;;  %3339 = vst [vmem:[%s7444_s5 + $0x390] sm:$0xff] %v2792_v6  ;;  %v2794_v57 = vpop.f32.mrb[45].mxu1 }
 0x402   :  { %3340 = vst [vmem:[%s7444_s5 + $0x398] sm:$0xff] %v2794_v57  ;;  %v2796_v29 = vpop.f32.mrb[46].mxu1 }
 0x403   :  { %3346 = vst [vmem:[%s7444_s5 + $0x3c8] sm:$0xff] %v2796_v29  ;;  %v2798_v12 = vpop.f32.mrb[47].mxu1 }
 0x404   :  { %3347 = vst [vmem:[%s7444_s5 + $0x3d0] sm:$0xff] %v2798_v12 }
 0x405   :  { %v2589_v7 = vpop.f32.mrb[44].mxu0 }
 0x406   :  { %3323 = vst [vmem:[%s7444_s5 + $0x310] sm:$0xff] %v2589_v7  ;;  %v2591_v25 = vpop.f32.mrb[45].mxu0 }
 0x407   :  { %3324 = vst [vmem:[%s7444_s5 + $0x318] sm:$0xff] %v2591_v25  ;;  %v2593_v9 = vpop.f32.mrb[46].mxu0 }
 0x408   :  { %3330 = vst [vmem:[%s7444_s5 + $0x348] sm:$0xff] %v2593_v9  ;;  %v2595_v22 = vpop.f32.mrb[47].mxu0  ;;  %v2802_v50 = vpop.f32.mrb[48].mxu1 }
 0x409   :  { %3331 = vst [vmem:[%s7444_s5 + $0x350] sm:$0xff] %v2595_v22  ;;  %3353 = vst [vmem:[%s7444_s5 + $0x400] sm:$0xff] %v2802_v50  ;;  %v2804_v15 = vpop.f32.mrb[49].mxu1 }
 0x40a   :  { %3354 = vst [vmem:[%s7444_s5 + $0x408] sm:$0xff] %v2804_v15  ;;  %v2806_v10 = vpop.f32.mrb[50].mxu1 }
 0x40b   :  { %3360 = vst [vmem:[%s7444_s5 + $0x438] sm:$0xff] %v2806_v10  ;;  %v2808_v5 = vpop.f32.mrb[51].mxu1 }
 0x40c   :  { %3361 = vst [vmem:[%s7444_s5 + $0x440] sm:$0xff] %v2808_v5 }
 0x40d   :  { %v2599_v34 = vpop.f32.mrb[48].mxu0 }
 0x40e   :  { %3337 = vst [vmem:[%s7444_s5 + $0x380] sm:$0xff] %v2599_v34  ;;  %v2601_v36 = vpop.f32.mrb[49].mxu0 }
 0x40f   :  { %3338 = vst [vmem:[%s7444_s5 + $0x388] sm:$0xff] %v2601_v36  ;;  %v2603_v51 = vpop.f32.mrb[50].mxu0 }
 0x410   :  { %3344 = vst [vmem:[%s7444_s5 + $0x3b8] sm:$0xff] %v2603_v51  ;;  %v2605_v58 = vpop.f32.mrb[51].mxu0  ;;  %v2812_v14 = vpop.f32.mrb[52].mxu1 }
 0x411   :  { %3345 = vst [vmem:[%s7444_s5 + $0x3c0] sm:$0xff] %v2605_v58  ;;  %3367 = vst [vmem:[%s7444_s5 + $0x470] sm:$0xff] %v2812_v14  ;;  %v2814_v4 = vpop.f32.mrb[53].mxu1 }
 0x412   :  { %3368 = vst [vmem:[%s7444_s5 + $0x478] sm:$0xff] %v2814_v4  ;;  %v2816_v62 = vpop.f32.mrb[54].mxu1 }
 0x413   :  { %3374 = vst [vmem:[%s7444_s5 + $0x4a8] sm:$0xff] %v2816_v62  ;;  %v2818_v0 = vpop.f32.mrb[55].mxu1 }
 0x414   :  { %3375 = vst [vmem:[%s7444_s5 + $0x4b0] sm:$0xff] %v2818_v0 }
 0x415   :  { %v2609_v54 = vpop.f32.mrb[52].mxu0 }
 0x416   :  { %3351 = vst [vmem:[%s7444_s5 + $0x3f0] sm:$0xff] %v2609_v54  ;;  %v2611_v8 = vpop.f32.mrb[53].mxu0 }
 0x417   :  { %3352 = vst [vmem:[%s7444_s5 + $0x3f8] sm:$0xff] %v2611_v8  ;;  %v2613_v60 = vpop.f32.mrb[54].mxu0 }
 0x418   :  { %3358 = vst [vmem:[%s7444_s5 + $0x428] sm:$0xff] %v2613_v60  ;;  %v2615_v17 = vpop.f32.mrb[55].mxu0  ;;  %v2822_v24 = vpop.f32.mrb[56].mxu1 }
 0x419   :  { %3359 = vst [vmem:[%s7444_s5 + $0x430] sm:$0xff] %v2615_v17  ;;  %3381 = vst [vmem:[%s7444_s5 + $0x4e0] sm:$0xff] %v2822_v24  ;;  %v2824_v16 = vpop.f32.mrb[57].mxu1 }
 0x41a   :  { %3382 = vst [vmem:[%s7444_s5 + $0x4e8] sm:$0xff] %v2824_v16  ;;  %v2826_v27 = vpop.f32.mrb[58].mxu1 }
 0x41b   :  { %3388 = vst [vmem:[%s7444_s5 + $0x518] sm:$0xff] %v2826_v27  ;;  %v2828_v48 = vpop.f32.mrb[59].mxu1 }
 0x41c   :  { %3389 = vst [vmem:[%s7444_s5 + $0x520] sm:$0xff] %v2828_v48 }
 0x41d   :  { %v2619_v52 = vpop.f32.mrb[56].mxu0 }
 0x41e   :  { %3365 = vst [vmem:[%s7444_s5 + $0x460] sm:$0xff] %v2619_v52  ;;  %v2621_v63 = vpop.f32.mrb[57].mxu0 }
 0x41f   :  { %3366 = vst [vmem:[%s7444_s5 + $0x468] sm:$0xff] %v2621_v63  ;;  %v2623_v1 = vpop.f32.mrb[58].mxu0 }
 0x420   :  { %3372 = vst [vmem:[%s7444_s5 + $0x498] sm:$0xff] %v2623_v1  ;;  %v2625_v37 = vpop.f32.mrb[59].mxu0  ;;  %v2832_v56 = vpop.f32.mrb[60].mxu1 }
 0x421   :  { %3373 = vst [vmem:[%s7444_s5 + $0x4a0] sm:$0xff] %v2625_v37  ;;  %3395 = vst [vmem:[%s7444_s5 + $0x550] sm:$0xff] %v2832_v56  ;;  %v2834_v38 = vpop.f32.mrb[61].mxu1 }
 0x422   :  { %3396 = vst [vmem:[%s7444_s5 + $0x558] sm:$0xff] %v2834_v38  ;;  %v2836_v23 = vpop.f32.mrb[62].mxu1 }
 0x423   :  { %3402 = vst [vmem:[%s7444_s5 + $0x588] sm:$0xff] %v2836_v23  ;;  %v2838_v40 = vpop.f32.mrb[63].mxu1 }
 0x424   :  { %3403 = vst [vmem:[%s7444_s5 + $0x590] sm:$0xff] %v2838_v40 }
 0x425   :  { %v2629_v30 = vpop.f32.mrb[60].mxu0 }
 0x426   :  { %3379 = vst [vmem:[%s7444_s5 + $0x4d0] sm:$0xff] %v2629_v30  ;;  %v2631_v43 = vpop.f32.mrb[61].mxu0 }
 0x427   :  { %3380 = vst [vmem:[%s7444_s5 + $0x4d8] sm:$0xff] %v2631_v43  ;;  %v2633_v59 = vpop.f32.mrb[62].mxu0 }
 0x428   :  { %3386 = vst [vmem:[%s7444_s5 + $0x508] sm:$0xff] %v2633_v59  ;;  %v2635_v13 = vpop.f32.mrb[63].mxu0  ;;  %v2842_v61 = vpop.f32.mrb[64].mxu1 }
 0x429   :  { %3387 = vst [vmem:[%s7444_s5 + $0x510] sm:$0xff] %v2635_v13  ;;  %3409 = vst [vmem:[%s7444_s5 + $0x5c0] sm:$0xff] %v2842_v61  ;;  %v2844_v11 = vpop.f32.mrb[65].mxu1 }
 0x42a   :  { %3410 = vst [vmem:[%s7444_s5 + $0x5c8] sm:$0xff] %v2844_v11  ;;  %v2846_v49 = vpop.f32.mrb[66].mxu1 }
 0x42b   :  { %3416 = vst [vmem:[%s7444_s5 + $0x5f8] sm:$0xff] %v2846_v49  ;;  %v2848_v47 = vpop.f32.mrb[67].mxu1 }
 0x42c   :  { %3417 = vst [vmem:[%s7444_s5 + $0x600] sm:$0xff] %v2848_v47 }
 0x42d   :  { %v2639_v44 = vpop.f32.mrb[64].mxu0 }
 0x42e   :  { %3393 = vst [vmem:[%s7444_s5 + $0x540] sm:$0xff] %v2639_v44  ;;  %v2641_v26 = vpop.f32.mrb[65].mxu0 }
 0x42f   :  { %3394 = vst [vmem:[%s7444_s5 + $0x548] sm:$0xff] %v2641_v26  ;;  %v2643_v2 = vpop.f32.mrb[66].mxu0 }
 0x430   :  { %3400 = vst [vmem:[%s7444_s5 + $0x578] sm:$0xff] %v2643_v2  ;;  %v2645_v31 = vpop.f32.mrb[67].mxu0  ;;  %v2852_v46 = vpop.f32.mrb[68].mxu1 }
 0x431   :  { %3401 = vst [vmem:[%s7444_s5 + $0x580] sm:$0xff] %v2645_v31  ;;  %3423 = vst [vmem:[%s7444_s5 + $0x630] sm:$0xff] %v2852_v46  ;;  %v2854_v53 = vpop.f32.mrb[69].mxu1 }
 0x432   :  { %3424 = vst [vmem:[%s7444_s5 + $0x638] sm:$0xff] %v2854_v53  ;;  %v2856_v32 = vpop.f32.mrb[70].mxu1 }
 0x433   :  { %3430 = vst [vmem:[%s7444_s5 + $0x668] sm:$0xff] %v2856_v32  ;;  %v2858_v19 = vpop.f32.mrb[71].mxu1 }
 0x434   :  { %3431 = vst [vmem:[%s7444_s5 + $0x670] sm:$0xff] %v2858_v19 }
 0x435   :  { %v2649_v20 = vpop.f32.mrb[68].mxu0 }
 0x436   :  { %3407 = vst [vmem:[%s7444_s5 + $0x5b0] sm:$0xff] %v2649_v20  ;;  %v2651_v41 = vpop.f32.mrb[69].mxu0 }
 0x437   :  { %3408 = vst [vmem:[%s7444_s5 + $0x5b8] sm:$0xff] %v2651_v41  ;;  %v2653_v21 = vpop.f32.mrb[70].mxu0 }
 0x438   :  { %3414 = vst [vmem:[%s7444_s5 + $0x5e8] sm:$0xff] %v2653_v21  ;;  %v2655_v45 = vpop.f32.mrb[71].mxu0  ;;  %v2862_v33 = vpop.f32.mrb[72].mxu1 }
 0x439   :  { %3415 = vst [vmem:[%s7444_s5 + $0x5f0] sm:$0xff] %v2655_v45  ;;  %3437 = vst [vmem:[%s7444_s5 + $0x6a0] sm:$0xff] %v2862_v33  ;;  %v2864_v18 = vpop.f32.mrb[73].mxu1 }
 0x43a   :  { %3438 = vst [vmem:[%s7444_s5 + $0x6a8] sm:$0xff] %v2864_v18  ;;  %v2866_v42 = vpop.f32.mrb[74].mxu1 }
 0x43b   :  { %3444 = vst [vmem:[%s7444_s5 + $0x6d8] sm:$0xff] %v2866_v42  ;;  %v2868_v3 = vpop.f32.mrb[75].mxu1 }
 0x43c   :  { %3445 = vst [vmem:[%s7444_s5 + $0x6e0] sm:$0xff] %v2868_v3 }
 0x43d   :  { %v2659_v39 = vpop.f32.mrb[72].mxu0 }
 0x43e   :  { %3421 = vst [vmem:[%s7444_s5 + $0x620] sm:$0xff] %v2659_v39  ;;  %v2661_v28 = vpop.f32.mrb[73].mxu0 }
 0x43f   :  { %3422 = vst [vmem:[%s7444_s5 + $0x628] sm:$0xff] %v2661_v28  ;;  %v2663_v35 = vpop.f32.mrb[74].mxu0 }
 0x440   :  { %3428 = vst [vmem:[%s7444_s5 + $0x658] sm:$0xff] %v2663_v35  ;;  %v2665_v55 = vpop.f32.mrb[75].mxu0 }
 0x441   :  { %3429 = vst [vmem:[%s7444_s5 + $0x660] sm:$0xff] %v2665_v55 }
 0x446   :  { %v2669_v6 = vpop.f32.mrb[76].mxu0 }
 0x447   :  { %3435 = vst [vmem:[%s7444_s5 + $0x690] sm:$0xff] %v2669_v6  ;;  %v2671_v57 = vpop.f32.mrb[77].mxu0 }
 0x448   :  { %3436 = vst [vmem:[%s7444_s5 + $0x698] sm:$0xff] %v2671_v57  ;;  %v2673_v29 = vpop.f32.mrb[78].mxu0 }
 0x449   :  { %3442 = vst [vmem:[%s7444_s5 + $0x6c8] sm:$0xff] %v2673_v29  ;;  %v2675_v12 = vpop.f32.mrb[79].mxu0 }
 0x44a   :  { %3443 = vst [vmem:[%s7444_s5 + $0x6d0] sm:$0xff] %v2675_v12 }
 0x458   :  { %v2905_v7 = vpop.f32.mrb[80].mxu0 }
 0x459   :  { %3229 = vst [vmem:[%s7444_s5 + $0x20] sm:$0xff] %v2905_v7  ;;  %v2907_v25 = vpop.f32.mrb[81].mxu0 }
 0x45a   :  { %3230 = vst [vmem:[%s7444_s5 + $0x28] sm:$0xff] %v2907_v25  ;;  %v2909_v9 = vpop.f32.mrb[82].mxu0 }
 0x45b   :  { %3236 = vst [vmem:[%s7444_s5 + $0x58] sm:$0xff] %v2909_v9  ;;  %v2911_v22 = vpop.f32.mrb[83].mxu0 }
 0x45c   :  { %v3098_v50 = vpop.f32.mrb[76].mxu1  ;;  %3237 = vst [vmem:[%s7444_s5 + $0x60] sm:$0xff] %v2911_v22 }
 0x45d   :  { %3231 = vst.msk [vmem:[%s7444_s5 + $0x30] sm:$0xff] %vm2436_vm13, %v3098_v50  ;;  %v3100_v15 = vpop.f32.mrb[77].mxu1 }
 0x45e   :  { %v3101_v10 = vpop.f32.mrb[78].mxu1 }
 0x45f   :  { %3238 = vst.msk [vmem:[%s7444_s5 + $0x68] sm:$0xff] %vm2436_vm13, %v3101_v10  ;;  %v3103_v5 = vpop.f32.mrb[79].mxu1 }
 0x460   :  { %v2915_v34 = vpop.f32.mrb[84].mxu0 }
 0x461   :  { %3243 = vst [vmem:[%s7444_s5 + $0x90] sm:$0xff] %v2915_v34  ;;  %v2917_v36 = vpop.f32.mrb[85].mxu0 }
 0x462   :  { %3244 = vst [vmem:[%s7444_s5 + $0x98] sm:$0xff] %v2917_v36  ;;  %v2919_v51 = vpop.f32.mrb[86].mxu0 }
 0x463   :  { %3250 = vst [vmem:[%s7444_s5 + $0xc8] sm:$0xff] %v2919_v51  ;;  %v2921_v58 = vpop.f32.mrb[87].mxu0 }
 0x464   :  { %v3106_v14 = vpop.f32.mrb[80].mxu1  ;;  %3251 = vst [vmem:[%s7444_s5 + $0xd0] sm:$0xff] %v2921_v58 }
 0x465   :  { %3245 = vst.msk [vmem:[%s7444_s5 + $0xa0] sm:$0xff] %vm2436_vm13, %v3106_v14  ;;  %v3108_v4 = vpop.f32.mrb[81].mxu1 }
 0x466   :  { %v3109_v62 = vpop.f32.mrb[82].mxu1 }
 0x467   :  { %3252 = vst.msk [vmem:[%s7444_s5 + $0xd8] sm:$0xff] %vm2436_vm13, %v3109_v62  ;;  %v3111_v0 = vpop.f32.mrb[83].mxu1 }
 0x468   :  { %v2925_v54 = vpop.f32.mrb[88].mxu0 }
 0x469   :  { %3257 = vst [vmem:[%s7444_s5 + $0x100] sm:$0xff] %v2925_v54  ;;  %v2927_v8 = vpop.f32.mrb[89].mxu0 }
 0x46a   :  { %3258 = vst [vmem:[%s7444_s5 + $0x108] sm:$0xff] %v2927_v8  ;;  %v2929_v60 = vpop.f32.mrb[90].mxu0 }
 0x46b   :  { %3264 = vst [vmem:[%s7444_s5 + $0x138] sm:$0xff] %v2929_v60  ;;  %v2931_v17 = vpop.f32.mrb[91].mxu0 }
 0x46c   :  { %v3114_v24 = vpop.f32.mrb[84].mxu1  ;;  %3265 = vst [vmem:[%s7444_s5 + $0x140] sm:$0xff] %v2931_v17 }
 0x46d   :  { %3259 = vst.msk [vmem:[%s7444_s5 + $0x110] sm:$0xff] %vm2436_vm13, %v3114_v24  ;;  %v3116_v16 = vpop.f32.mrb[85].mxu1 }
 0x46e   :  { %v3117_v27 = vpop.f32.mrb[86].mxu1 }
 0x46f   :  { %3266 = vst.msk [vmem:[%s7444_s5 + $0x148] sm:$0xff] %vm2436_vm13, %v3117_v27  ;;  %v3119_v48 = vpop.f32.mrb[87].mxu1 }
 0x470   :  { %v2935_v52 = vpop.f32.mrb[92].mxu0 }
 0x471   :  { %3271 = vst [vmem:[%s7444_s5 + $0x170] sm:$0xff] %v2935_v52  ;;  %v2937_v63 = vpop.f32.mrb[93].mxu0 }
 0x472   :  { %3272 = vst [vmem:[%s7444_s5 + $0x178] sm:$0xff] %v2937_v63  ;;  %v2939_v1 = vpop.f32.mrb[94].mxu0 }
 0x473   :  { %3278 = vst [vmem:[%s7444_s5 + $0x1a8] sm:$0xff] %v2939_v1  ;;  %v2941_v37 = vpop.f32.mrb[95].mxu0 }
 0x474   :  { %v3122_v56 = vpop.f32.mrb[88].mxu1  ;;  %3279 = vst [vmem:[%s7444_s5 + $0x1b0] sm:$0xff] %v2941_v37 }
 0x475   :  { %3273 = vst.msk [vmem:[%s7444_s5 + $0x180] sm:$0xff] %vm2436_vm13, %v3122_v56  ;;  %v3124_v38 = vpop.f32.mrb[89].mxu1 }
 0x476   :  { %v3125_v23 = vpop.f32.mrb[90].mxu1 }
 0x477   :  { %3280 = vst.msk [vmem:[%s7444_s5 + $0x1b8] sm:$0xff] %vm2436_vm13, %v3125_v23  ;;  %v3127_v40 = vpop.f32.mrb[91].mxu1 }
 0x478   :  { %v2945_v30 = vpop.f32.mrb[96].mxu0 }
 0x479   :  { %3285 = vst [vmem:[%s7444_s5 + $0x1e0] sm:$0xff] %v2945_v30  ;;  %v2947_v43 = vpop.f32.mrb[97].mxu0 }
 0x47a   :  { %3286 = vst [vmem:[%s7444_s5 + $0x1e8] sm:$0xff] %v2947_v43  ;;  %v2949_v59 = vpop.f32.mrb[98].mxu0 }
 0x47b   :  { %3292 = vst [vmem:[%s7444_s5 + $0x218] sm:$0xff] %v2949_v59  ;;  %v2951_v13 = vpop.f32.mrb[99].mxu0 }
 0x47c   :  { %v3130_v61 = vpop.f32.mrb[92].mxu1  ;;  %3293 = vst [vmem:[%s7444_s5 + $0x220] sm:$0xff] %v2951_v13 }
 0x47d   :  { %3287 = vst.msk [vmem:[%s7444_s5 + $0x1f0] sm:$0xff] %vm2436_vm13, %v3130_v61  ;;  %v3132_v11 = vpop.f32.mrb[93].mxu1 }
 0x47e   :  { %v3133_v49 = vpop.f32.mrb[94].mxu1 }
 0x47f   :  { %3294 = vst.msk [vmem:[%s7444_s5 + $0x228] sm:$0xff] %vm2436_vm13, %v3133_v49  ;;  %v3135_v47 = vpop.f32.mrb[95].mxu1 }
 0x480   :  { %v2955_v44 = vpop.f32.mrb[100].mxu0 }
 0x481   :  { %3299 = vst [vmem:[%s7444_s5 + $0x250] sm:$0xff] %v2955_v44  ;;  %v2957_v26 = vpop.f32.mrb[101].mxu0 }
 0x482   :  { %3300 = vst [vmem:[%s7444_s5 + $0x258] sm:$0xff] %v2957_v26  ;;  %v2959_v2 = vpop.f32.mrb[102].mxu0 }
 0x483   :  { %3306 = vst [vmem:[%s7444_s5 + $0x288] sm:$0xff] %v2959_v2  ;;  %v2961_v31 = vpop.f32.mrb[103].mxu0 }
 0x484   :  { %v3138_v46 = vpop.f32.mrb[96].mxu1  ;;  %3307 = vst [vmem:[%s7444_s5 + $0x290] sm:$0xff] %v2961_v31 }
 0x485   :  { %3301 = vst.msk [vmem:[%s7444_s5 + $0x260] sm:$0xff] %vm2436_vm13, %v3138_v46  ;;  %v3140_v53 = vpop.f32.mrb[97].mxu1 }
 0x486   :  { %v3141_v32 = vpop.f32.mrb[98].mxu1 }
 0x487   :  { %3308 = vst.msk [vmem:[%s7444_s5 + $0x298] sm:$0xff] %vm2436_vm13, %v3141_v32  ;;  %v3143_v19 = vpop.f32.mrb[99].mxu1 }
 0x488   :  { %v2965_v20 = vpop.f32.mrb[104].mxu0 }
 0x489   :  { %3313 = vst [vmem:[%s7444_s5 + $0x2c0] sm:$0xff] %v2965_v20  ;;  %v2967_v41 = vpop.f32.mrb[105].mxu0 }
 0x48a   :  { %3314 = vst [vmem:[%s7444_s5 + $0x2c8] sm:$0xff] %v2967_v41  ;;  %v2969_v21 = vpop.f32.mrb[106].mxu0 }
 0x48b   :  { %3320 = vst [vmem:[%s7444_s5 + $0x2f8] sm:$0xff] %v2969_v21  ;;  %v2971_v45 = vpop.f32.mrb[107].mxu0 }
 0x48c   :  { %v3146_v33 = vpop.f32.mrb[100].mxu1  ;;  %3321 = vst [vmem:[%s7444_s5 + $0x300] sm:$0xff] %v2971_v45 }
 0x48d   :  { %3315 = vst.msk [vmem:[%s7444_s5 + $0x2d0] sm:$0xff] %vm2436_vm13, %v3146_v33  ;;  %v3148_v18 = vpop.f32.mrb[101].mxu1 }
 0x48e   :  { %v3149_v42 = vpop.f32.mrb[102].mxu1 }
 0x48f   :  { %3322 = vst.msk [vmem:[%s7444_s5 + $0x308] sm:$0xff] %vm2436_vm13, %v3149_v42  ;;  %v3151_v3 = vpop.f32.mrb[103].mxu1 }
 0x490   :  { %v2975_v39 = vpop.f32.mrb[108].mxu0 }
 0x491   :  { %3327 = vst [vmem:[%s7444_s5 + $0x330] sm:$0xff] %v2975_v39  ;;  %v2977_v28 = vpop.f32.mrb[109].mxu0 }
 0x492   :  { %3328 = vst [vmem:[%s7444_s5 + $0x338] sm:$0xff] %v2977_v28  ;;  %v2979_v35 = vpop.f32.mrb[110].mxu0 }
 0x493   :  { %3334 = vst [vmem:[%s7444_s5 + $0x368] sm:$0xff] %v2979_v35  ;;  %v2981_v55 = vpop.f32.mrb[111].mxu0 }
 0x494   :  { %v3154_v6 = vpop.f32.mrb[104].mxu1  ;;  %3335 = vst [vmem:[%s7444_s5 + $0x370] sm:$0xff] %v2981_v55 }
 0x495   :  { %3329 = vst.msk [vmem:[%s7444_s5 + $0x340] sm:$0xff] %vm2436_vm13, %v3154_v6  ;;  %v3156_v57 = vpop.f32.mrb[105].mxu1 }
 0x496   :  { %v3157_v29 = vpop.f32.mrb[106].mxu1 }
 0x497   :  { %3336 = vst.msk [vmem:[%s7444_s5 + $0x378] sm:$0xff] %vm2436_vm13, %v3157_v29  ;;  %v3159_v12 = vpop.f32.mrb[107].mxu1 }
 0x498   :  { %v2985_v7 = vpop.f32.mrb[112].mxu0 }
 0x499   :  { %3341 = vst [vmem:[%s7444_s5 + $0x3a0] sm:$0xff] %v2985_v7  ;;  %v2987_v25 = vpop.f32.mrb[113].mxu0 }
 0x49a   :  { %3342 = vst [vmem:[%s7444_s5 + $0x3a8] sm:$0xff] %v2987_v25  ;;  %v2989_v9 = vpop.f32.mrb[114].mxu0 }
 0x49b   :  { %3348 = vst [vmem:[%s7444_s5 + $0x3d8] sm:$0xff] %v2989_v9  ;;  %v2991_v22 = vpop.f32.mrb[115].mxu0 }
 0x49c   :  { %v3162_v50 = vpop.f32.mrb[108].mxu1  ;;  %3349 = vst [vmem:[%s7444_s5 + $0x3e0] sm:$0xff] %v2991_v22 }
 0x49d   :  { %3343 = vst.msk [vmem:[%s7444_s5 + $0x3b0] sm:$0xff] %vm2436_vm13, %v3162_v50  ;;  %v3164_v15 = vpop.f32.mrb[109].mxu1 }
 0x49e   :  { %v3165_v10 = vpop.f32.mrb[110].mxu1 }
 0x49f   :  { %3350 = vst.msk [vmem:[%s7444_s5 + $0x3e8] sm:$0xff] %vm2436_vm13, %v3165_v10  ;;  %v3167_v5 = vpop.f32.mrb[111].mxu1 }
 0x4a0   :  { %v2995_v34 = vpop.f32.mrb[116].mxu0 }
 0x4a1   :  { %3355 = vst [vmem:[%s7444_s5 + $0x410] sm:$0xff] %v2995_v34  ;;  %v2997_v36 = vpop.f32.mrb[117].mxu0 }
 0x4a2   :  { %3356 = vst [vmem:[%s7444_s5 + $0x418] sm:$0xff] %v2997_v36  ;;  %v2999_v51 = vpop.f32.mrb[118].mxu0 }
 0x4a3   :  { %3362 = vst [vmem:[%s7444_s5 + $0x448] sm:$0xff] %v2999_v51  ;;  %v3001_v58 = vpop.f32.mrb[119].mxu0 }
 0x4a4   :  { %v3170_v14 = vpop.f32.mrb[112].mxu1  ;;  %3363 = vst [vmem:[%s7444_s5 + $0x450] sm:$0xff] %v3001_v58 }
 0x4a5   :  { %3357 = vst.msk [vmem:[%s7444_s5 + $0x420] sm:$0xff] %vm2436_vm13, %v3170_v14  ;;  %v3172_v4 = vpop.f32.mrb[113].mxu1 }
 0x4a6   :  { %v3173_v62 = vpop.f32.mrb[114].mxu1 }
 0x4a7   :  { %3364 = vst.msk [vmem:[%s7444_s5 + $0x458] sm:$0xff] %vm2436_vm13, %v3173_v62  ;;  %v3175_v0 = vpop.f32.mrb[115].mxu1 }
 0x4a8   :  { %v3005_v54 = vpop.f32.mrb[120].mxu0 }
 0x4a9   :  { %3369 = vst [vmem:[%s7444_s5 + $0x480] sm:$0xff] %v3005_v54  ;;  %v3007_v8 = vpop.f32.mrb[121].mxu0 }
 0x4aa   :  { %3370 = vst [vmem:[%s7444_s5 + $0x488] sm:$0xff] %v3007_v8  ;;  %v3009_v60 = vpop.f32.mrb[122].mxu0 }
 0x4ab   :  { %3376 = vst [vmem:[%s7444_s5 + $0x4b8] sm:$0xff] %v3009_v60  ;;  %v3011_v17 = vpop.f32.mrb[123].mxu0 }
 0x4ac   :  { %v3178_v24 = vpop.f32.mrb[116].mxu1  ;;  %3377 = vst [vmem:[%s7444_s5 + $0x4c0] sm:$0xff] %v3011_v17 }
 0x4ad   :  { %3371 = vst.msk [vmem:[%s7444_s5 + $0x490] sm:$0xff] %vm2436_vm13, %v3178_v24  ;;  %v3180_v16 = vpop.f32.mrb[117].mxu1 }
 0x4ae   :  { %v3181_v27 = vpop.f32.mrb[118].mxu1 }
 0x4af   :  { %3378 = vst.msk [vmem:[%s7444_s5 + $0x4c8] sm:$0xff] %vm2436_vm13, %v3181_v27  ;;  %v3183_v48 = vpop.f32.mrb[119].mxu1 }
 0x4b0   :  { %v3015_v52 = vpop.f32.mrb[124].mxu0 }
 0x4b1   :  { %3383 = vst [vmem:[%s7444_s5 + $0x4f0] sm:$0xff] %v3015_v52  ;;  %v3017_v63 = vpop.f32.mrb[125].mxu0 }
 0x4b2   :  { %3384 = vst [vmem:[%s7444_s5 + $0x4f8] sm:$0xff] %v3017_v63  ;;  %v3019_v1 = vpop.f32.mrb[126].mxu0 }
 0x4b3   :  { %3390 = vst [vmem:[%s7444_s5 + $0x528] sm:$0xff] %v3019_v1  ;;  %v3021_v37 = vpop.f32.mrb[127].mxu0 }
 0x4b4   :  { %v3186_v56 = vpop.f32.mrb[120].mxu1  ;;  %3391 = vst [vmem:[%s7444_s5 + $0x530] sm:$0xff] %v3021_v37 }
 0x4b5   :  { %3385 = vst.msk [vmem:[%s7444_s5 + $0x500] sm:$0xff] %vm2436_vm13, %v3186_v56  ;;  %v3188_v38 = vpop.f32.mrb[121].mxu1 }
 0x4b6   :  { %v3189_v23 = vpop.f32.mrb[122].mxu1 }
 0x4b7   :  { %3392 = vst.msk [vmem:[%s7444_s5 + $0x538] sm:$0xff] %vm2436_vm13, %v3189_v23  ;;  %v3191_v40 = vpop.f32.mrb[123].mxu1 }
 0x4b8   :  { %v3025_v30 = vpop.f32.mrb[128].mxu0 }
 0x4b9   :  { %3397 = vst [vmem:[%s7444_s5 + $0x560] sm:$0xff] %v3025_v30  ;;  %v3027_v43 = vpop.f32.mrb[129].mxu0 }
 0x4ba   :  { %3398 = vst [vmem:[%s7444_s5 + $0x568] sm:$0xff] %v3027_v43  ;;  %v3029_v59 = vpop.f32.mrb[130].mxu0 }
 0x4bb   :  { %3404 = vst [vmem:[%s7444_s5 + $0x598] sm:$0xff] %v3029_v59  ;;  %v3031_v13 = vpop.f32.mrb[131].mxu0 }
 0x4bc   :  { %v3194_v61 = vpop.f32.mrb[124].mxu1  ;;  %3405 = vst [vmem:[%s7444_s5 + $0x5a0] sm:$0xff] %v3031_v13 }
 0x4bd   :  { %3399 = vst.msk [vmem:[%s7444_s5 + $0x570] sm:$0xff] %vm2436_vm13, %v3194_v61  ;;  %v3196_v11 = vpop.f32.mrb[125].mxu1 }
 0x4be   :  { %v3197_v49 = vpop.f32.mrb[126].mxu1 }
 0x4bf   :  { %3406 = vst.msk [vmem:[%s7444_s5 + $0x5a8] sm:$0xff] %vm2436_vm13, %v3197_v49  ;;  %v3199_v47 = vpop.f32.mrb[127].mxu1 }
 0x4c0   :  { %v3035_v44 = vpop.f32.mrb[132].mxu0 }
 0x4c1   :  { %3411 = vst [vmem:[%s7444_s5 + $0x5d0] sm:$0xff] %v3035_v44  ;;  %v3037_v26 = vpop.f32.mrb[133].mxu0 }
 0x4c2   :  { %3412 = vst [vmem:[%s7444_s5 + $0x5d8] sm:$0xff] %v3037_v26  ;;  %v3039_v2 = vpop.f32.mrb[134].mxu0 }
 0x4c3   :  { %3418 = vst [vmem:[%s7444_s5 + $0x608] sm:$0xff] %v3039_v2  ;;  %v3041_v31 = vpop.f32.mrb[135].mxu0 }
 0x4c4   :  { %v3202_v46 = vpop.f32.mrb[128].mxu1  ;;  %3419 = vst [vmem:[%s7444_s5 + $0x610] sm:$0xff] %v3041_v31 }
 0x4c5   :  { %3413 = vst.msk [vmem:[%s7444_s5 + $0x5e0] sm:$0xff] %vm2436_vm13, %v3202_v46  ;;  %v3204_v53 = vpop.f32.mrb[129].mxu1 }
 0x4c6   :  { %v3205_v32 = vpop.f32.mrb[130].mxu1 }
 0x4c7   :  { %3420 = vst.msk [vmem:[%s7444_s5 + $0x618] sm:$0xff] %vm2436_vm13, %v3205_v32  ;;  %v3207_v19 = vpop.f32.mrb[131].mxu1 }
 0x4c8   :  { %v3045_v20 = vpop.f32.mrb[136].mxu0 }
 0x4c9   :  { %3425 = vst [vmem:[%s7444_s5 + $0x640] sm:$0xff] %v3045_v20  ;;  %v3047_v41 = vpop.f32.mrb[137].mxu0 }
 0x4ca   :  { %3426 = vst [vmem:[%s7444_s5 + $0x648] sm:$0xff] %v3047_v41  ;;  %v3049_v21 = vpop.f32.mrb[138].mxu0 }
 0x4cb   :  { %3432 = vst [vmem:[%s7444_s5 + $0x678] sm:$0xff] %v3049_v21  ;;  %v3051_v45 = vpop.f32.mrb[139].mxu0 }
 0x4cc   :  { %v3210_v33 = vpop.f32.mrb[132].mxu1  ;;  %3433 = vst [vmem:[%s7444_s5 + $0x680] sm:$0xff] %v3051_v45 }
 0x4cd   :  { %3427 = vst.msk [vmem:[%s7444_s5 + $0x650] sm:$0xff] %vm2436_vm13, %v3210_v33  ;;  %v3212_v18 = vpop.f32.mrb[133].mxu1 }
 0x4ce   :  { %v3213_v42 = vpop.f32.mrb[134].mxu1 }
 0x4cf   :  { %3434 = vst.msk [vmem:[%s7444_s5 + $0x688] sm:$0xff] %vm2436_vm13, %v3213_v42  ;;  %v3215_v3 = vpop.f32.mrb[135].mxu1 }
 0x4d0   :  { %v3055_v39 = vpop.f32.mrb[140].mxu0 }
 0x4d1   :  { %3439 = vst [vmem:[%s7444_s5 + $0x6b0] sm:$0xff] %v3055_v39  ;;  %v3057_v28 = vpop.f32.mrb[141].mxu0 }
 0x4d2   :  { %3440 = vst [vmem:[%s7444_s5 + $0x6b8] sm:$0xff] %v3057_v28  ;;  %v3059_v35 = vpop.f32.mrb[142].mxu0 }
 0x4d3   :  { %3446 = vst [vmem:[%s7444_s5 + $0x6e8] sm:$0xff] %v3059_v35  ;;  %v3061_v55 = vpop.f32.mrb[143].mxu0 }
 0x4d4   :  { %v3218_v6 = vpop.f32.mrb[136].mxu1  ;;  %3447 = vst [vmem:[%s7444_s5 + $0x6f0] sm:$0xff] %v3061_v55 }
 0x4d5   :  { %3441 = vst.msk [vmem:[%s7444_s5 + $0x6c0] sm:$0xff] %vm2436_vm13, %v3218_v6  ;;  %v3220_v57 = vpop.f32.mrb[137].mxu1 }
 0x4d6   :  { %v3221_v29 = vpop.f32.mrb[138].mxu1 }
 0x4d7   :  { %3448 = vst.msk [vmem:[%s7444_s5 + $0x6f8] sm:$0xff] %vm2436_vm13, %v3221_v29  ;;  %v3223_v12 = vpop.f32.mrb[139].mxu1 }

</bundles_post_ra>
